<compile_context>
chip_gen: v6e
topology: v6e:2x2x1
jax: 0.10.0
libtpu: 0.0.40
codegen_flags: <defaults>
</compile_context>

<pallas_src>
import jax
import jax.numpy as jnp
from jax import lax
from jax.experimental import pallas as pl
from jax.experimental.pallas import tpu as pltpu

# ----------------------------- configuration ---------------------------------
PATCH_RES = 224                            # transforms.Resize((224, 224))
CV2_RES = 256                              # cv2.resize(patch, (256, 256))
LANES = 128
N_PIX = PATCH_RES * PATCH_RES              # 50176
N_HALVES = 2                               # one half-patch per grid step / TC
HALF_ROWS = N_PIX // (N_HALVES * LANES)    # 196 rows of 128 pixels per half
CHUNK_ROWS = 32                            # 1 uint8 vreg / 2 bf16 / 4 f32 vregs
HALF_ROWS_PAD = 224                        # 7 * 32: vreg-aligned for u8/bf16/f32
N_CHUNKS = HALF_ROWS_PAD // CHUNK_ROWS     # 7 chunks per half
HIDDEN = 32
N_ACC = 4                                  # partial logit accumulators

IMAGENET_MEAN = jnp.array([0.485, 0.456, 0.406], dtype=jnp.float32)   # (3,)
IMAGENET_STD = jnp.array([0.229, 0.224, 0.225], dtype=jnp.float32)    # (3,)


def _select_tpu_config():
    kind = ""
    try:
        kind = jax.devices()[0].device_kind.lower()
    except Exception:
        pass
    # bf16 VALU exists on v6e/v7x; keep f32 compute on v5e / unknown chips.
    compute_dtype = jnp.bfloat16 if ("v6" in kind or "v7" in kind) else jnp.float32
    # v7x has 2 TensorCores per chip: CORE_PARALLEL maps one half-patch per TC.
    half_sem = pltpu.CORE_PARALLEL if "v7" in kind else pltpu.PARALLEL
    return compute_dtype, (half_sem,)


COMPUTE_DTYPE, HALF_DIM_SEMANTICS = _select_tpu_config()


# ------------------------------ Pallas kernel ---------------------------------
def _make_patch_kernel(compute_dtype):
    def patch_model_kernel(x_ref, w1_ref, b1_ref, w2_ref, b2_ref, o_ref):
        """x_ref: (3, 1, HALF_ROWS_PAD, 128) uint8 raw pixels (channel-planar).
        w1_ref (3, HIDDEN), b1_ref (HIDDEN,), w2_ref (HIDDEN,), b2_ref (1,) f32 in
        SMEM; ToTensor + Normalize already folded into w1/b1 by the wrapper.
        o_ref: (1, HALF_ROWS_PAD, 128) uint8 mask."""
        cdt = compute_dtype

        # Hoist the tiny-parameter scalar reads (and their casts) out of the loop.
        w1s = [[w1_ref[c, j].astype(cdt) for c in range(3)] for j in range(HIDDEN)]
        b1s = [b1_ref[j].astype(cdt) for j in range(HIDDEN)]
        w2s = [w2_ref[j].astype(cdt) for j in range(HIDDEN)]
        b2s = b2_ref[0].astype(cdt)

        def chunk_body(c, carry):
            r0 = pl.multiple_of(c * CHUNK_ROWS, CHUNK_ROWS)
            # One uint8 vreg per plane per chunk; convert on the VPU in-kernel.
            xr = x_ref[0, 0, pl.ds(r0, CHUNK_ROWS), :].astype(jnp.float32).astype(cdt)
            xg = x_ref[1, 0, pl.ds(r0, CHUNK_ROWS), :].astype(jnp.float32).astype(cdt)
            xb = x_ref[2, 0, pl.ds(r0, CHUNK_ROWS), :].astype(jnp.float32).astype(cdt)

            # per-pixel MLP 3 -> 32 -> 1 on the VPU (scalar-weighted FMAs); the
            # hidden tensor never materializes, and the second-layer sum uses
            # N_ACC partial accumulators so add latency stays hidden.
            acc = [None] * N_ACC
            for j in range(HIDDEN):
                h = xr * w1s[j][0] + xg * w1s[j][1] + xb * w1s[j][2] + b1s[j]
                t = jnp.maximum(h, 0) * w2s[j]
                k = j % N_ACC
                acc[k] = t if acc[k] is None else acc[k] + t
            logit = (acc[0] + acc[1]) + (acc[2] + acc[3]) + b2s

            # sigmoid(logit) > 0.5  <=>  logit > 0  (exact; no EUP work)
            o_ref[0, pl.ds(r0, CHUNK_ROWS), :] = (logit > 0).astype(jnp.uint8)
            return carry

        lax.fori_loop(0, N_CHUNKS, chunk_body, 0)

    return patch_model_kernel


def run_patch_model(patch224_u8, w1, b1, w2, b2):
    """patch224_u8: (224, 224, 3) uint8. Returns (224, 224) uint8 0/1 mask."""
    # Channel-planar, lane-dense, vreg-aligned layout: (3, N_HALVES, 224, 128),
    # padded from 196 to 224 rows per half.  No second transpose — the in_spec
    # index_map picks the per-core half.
    planes = jnp.transpose(patch224_u8, (2, 0, 1))                   # (3, 224, 224)
    planes = planes.reshape(3, N_HALVES, HALF_ROWS, LANES)           # (3, 2, 196, 128)
    planes = jnp.pad(planes,
                     ((0, 0), (0, 0), (0, HALF_ROWS_PAD - HALF_ROWS), (0, 0)))

    # Fold ToTensor (x/255) + Normalize ((x-mean)/std) into the first layer:
    #   xn_c = x_c / (255*std_c) - mean_c/std_c
    w1_eff = (w1 / (255.0 * IMAGENET_STD)[:, None]).astype(jnp.float32)      # (3, H)
    b1_eff = (b1.reshape(-1) - (IMAGENET_MEAN / IMAGENET_STD) @ w1).astype(jnp.float32)
    w2_eff = w2.reshape(-1).astype(jnp.float32)                              # (H,)
    b2_eff = b2.reshape(-1).astype(jnp.float32)                              # (1,)

    out = pl.pallas_call(
        _make_patch_kernel(COMPUTE_DTYPE),
        out_shape=jax.ShapeDtypeStruct((N_HALVES, HALF_ROWS_PAD, LANES), jnp.uint8),
        grid=(N_HALVES,),
        in_specs=[
            pl.BlockSpec((3, 1, HALF_ROWS_PAD, LANES), lambda i: (0, i, 0, 0)),
            pl.BlockSpec(memory_space=pltpu.MemorySpace.SMEM),       # w1 (folded)
            pl.BlockSpec(memory_space=pltpu.MemorySpace.SMEM),       # b1 (folded)
            pl.BlockSpec(memory_space=pltpu.MemorySpace.SMEM),       # w2
            pl.BlockSpec(memory_space=pltpu.MemorySpace.SMEM),       # b2
        ],
        out_specs=pl.BlockSpec((1, HALF_ROWS_PAD, LANES), lambda i: (i, 0, 0)),
        compiler_params=pltpu.CompilerParams(
            dimension_semantics=HALF_DIM_SEMANTICS),
    )(planes, w1_eff, b1_eff, w2_eff, b2_eff)

    return out[:, :HALF_ROWS, :].reshape(PATCH_RES, PATCH_RES)


# ------------------------------- glue / stubs ---------------------------------
def yolo_stub(image):
    # TODO(synk): the real yolo_model is an external detector with a data-dependent
    # number of boxes; here we return one fixed (x, y, w, h) detection.
    H, W, _ = image.shape
    return [(W // 8, H // 8, (5 * W) // 8, (6 * H) // 8)]   # (x, y, w, h) corners


def combined_model_forward(image, w1, b1, w2, b2):
    """image: (H, W, 3) float32 in [0, 255] (HWC). Returns (H, W) uint8 mask."""
    H, W, _ = image.shape
    predicted_mask = jnp.zeros((H, W), dtype=jnp.uint8)
    for (x, y, w, h) in yolo_stub(image):
        patch = image[y:h, x:w, :]                                   # (h-y, w-x, 3)
        # TODO(synk): cv2.resize / PIL round-trip replaced by jax.image.resize
        # (bilinear here does not bit-match cv2.INTER_LINEAR / antialiased PIL).
        resized_patch = jax.image.resize(
            patch, (CV2_RES, CV2_RES, 3), method='bilinear')
        resized_patch = jnp.clip(jnp.round(resized_patch), 0.0, 255.0)   # .astype(u8)
        # TODO(synk): this 256->224 bilinear resize is a separable linear map and
        # could be fused into the Pallas kernel as two small matmuls on the idle MXU.
        patch224 = jax.image.resize(
            resized_patch, (PATCH_RES, PATCH_RES, 3), method='bilinear')
        patch224_u8 = jnp.clip(jnp.round(patch224), 0.0, 255.0).astype(jnp.uint8)
        mask224 = run_patch_model(patch224_u8, w1, b1, w2, b2)       # Pallas hot path
        box_mask = jax.image.resize(mask224, (h - y, w - x), method='nearest')
        predicted_mask = predicted_mask.at[y:h, x:w].set(box_mask.astype(jnp.uint8))
    return predicted_mask


combined_model_forward_jit = jax.jit(combined_model_forward)


# --------------------------------- main ---------------------------------------
if __name__ == "__main__":
    key = jax.random.PRNGKey(0)
    k_img, k_w1, k_b1, k_w2, k_b2 = jax.random.split(key, 5)

    # small HWC image, values in [0, 255] like the numpy uint8 input of the module
    image = jax.random.uniform(k_img, (64, 64, 3), jnp.float32, 0.0, 255.0)

    # deterministic synthetic patch_model parameters (3 -> 32 -> 1 per-pixel MLP)
    w1 = jax.random.normal(k_w1, (3, HIDDEN), jnp.float32) * 0.5
    b1 = jax.random.normal(k_b1, (1, HIDDEN), jnp.float32) * 0.1
    w2 = jax.random.normal(k_w2, (HIDDEN, 1), jnp.float32) * 0.5
    b2 = jax.random.normal(k_b2, (1, 1), jnp.float32) * 0.1

    out = combined_model_forward_jit(image, w1, b1, w2, b2)
    out = jax.block_until_ready(out)
    assert out.shape == (64, 64) and out.dtype == jnp.uint8
    print("KERNEL_OK")
</pallas_src>

<mosaic_0001>
module attributes {stable_mosaic.version = 11 : i64} {
  func.func @patch_model_kernel(%arg0: i32, %arg1: memref<3x1x224x128xi8, #tpu.memory_space<vmem>>, %arg2: memref<3x32xf32, #tpu.memory_space<smem>>, %arg3: memref<32xf32, #tpu.memory_space<smem>>, %arg4: memref<32xf32, #tpu.memory_space<smem>>, %arg5: memref<1xf32, #tpu.memory_space<smem>>, %arg6: memref<1x224x128xi8, #tpu.memory_space<vmem>>) attributes {dimension_semantics = [#tpu.dimension_semantics<parallel>], iteration_bounds = array<i64: 2>, scalar_prefetch = 0 : i64, scratch_operands = 0 : i64, tpu.core_type = #tpu.core_type<tc>, window_params = [{transform_indices = @transform_0, window_bounds = array<i64: 3, 1, 224, 128>}, {transform_indices = @transform_1, window_bounds = array<i64: 3, 32>}, {transform_indices = @transform_2, window_bounds = array<i64: 32>}, {transform_indices = @transform_3, window_bounds = array<i64: 32>}, {transform_indices = @transform_4, window_bounds = array<i64: 1>}, {transform_indices = @transform_5, window_bounds = array<i64: 1, 224, 128>}]} {
    %c0 = arith.constant 0 : index
    %c0_0 = arith.constant 0 : index
    %0 = memref.load %arg2[%c0, %c0_0] : memref<3x32xf32, #tpu.memory_space<smem>>
    %c1 = arith.constant 1 : index
    %c0_1 = arith.constant 0 : index
    %1 = memref.load %arg2[%c1, %c0_1] : memref<3x32xf32, #tpu.memory_space<smem>>
    %c2 = arith.constant 2 : index
    %c0_2 = arith.constant 0 : index
    %2 = memref.load %arg2[%c2, %c0_2] : memref<3x32xf32, #tpu.memory_space<smem>>
    %c0_3 = arith.constant 0 : index
    %c1_4 = arith.constant 1 : index
    %3 = memref.load %arg2[%c0_3, %c1_4] : memref<3x32xf32, #tpu.memory_space<smem>>
    %c1_5 = arith.constant 1 : index
    %c1_6 = arith.constant 1 : index
    %4 = memref.load %arg2[%c1_5, %c1_6] : memref<3x32xf32, #tpu.memory_space<smem>>
    %c2_7 = arith.constant 2 : index
    %c1_8 = arith.constant 1 : index
    %5 = memref.load %arg2[%c2_7, %c1_8] : memref<3x32xf32, #tpu.memory_space<smem>>
    %c0_9 = arith.constant 0 : index
    %c2_10 = arith.constant 2 : index
    %6 = memref.load %arg2[%c0_9, %c2_10] : memref<3x32xf32, #tpu.memory_space<smem>>
    %c1_11 = arith.constant 1 : index
    %c2_12 = arith.constant 2 : index
    %7 = memref.load %arg2[%c1_11, %c2_12] : memref<3x32xf32, #tpu.memory_space<smem>>
    %c2_13 = arith.constant 2 : index
    %c2_14 = arith.constant 2 : index
    %8 = memref.load %arg2[%c2_13, %c2_14] : memref<3x32xf32, #tpu.memory_space<smem>>
    %c0_15 = arith.constant 0 : index
    %c3 = arith.constant 3 : index
    %9 = memref.load %arg2[%c0_15, %c3] : memref<3x32xf32, #tpu.memory_space<smem>>
    %c1_16 = arith.constant 1 : index
    %c3_17 = arith.constant 3 : index
    %10 = memref.load %arg2[%c1_16, %c3_17] : memref<3x32xf32, #tpu.memory_space<smem>>
    %c2_18 = arith.constant 2 : index
    %c3_19 = arith.constant 3 : index
    %11 = memref.load %arg2[%c2_18, %c3_19] : memref<3x32xf32, #tpu.memory_space<smem>>
    %c0_20 = arith.constant 0 : index
    %c4 = arith.constant 4 : index
    %12 = memref.load %arg2[%c0_20, %c4] : memref<3x32xf32, #tpu.memory_space<smem>>
    %c1_21 = arith.constant 1 : index
    %c4_22 = arith.constant 4 : index
    %13 = memref.load %arg2[%c1_21, %c4_22] : memref<3x32xf32, #tpu.memory_space<smem>>
    %c2_23 = arith.constant 2 : index
    %c4_24 = arith.constant 4 : index
    %14 = memref.load %arg2[%c2_23, %c4_24] : memref<3x32xf32, #tpu.memory_space<smem>>
    %c0_25 = arith.constant 0 : index
    %c5 = arith.constant 5 : index
    %15 = memref.load %arg2[%c0_25, %c5] : memref<3x32xf32, #tpu.memory_space<smem>>
    %c1_26 = arith.constant 1 : index
    %c5_27 = arith.constant 5 : index
    %16 = memref.load %arg2[%c1_26, %c5_27] : memref<3x32xf32, #tpu.memory_space<smem>>
    %c2_28 = arith.constant 2 : index
    %c5_29 = arith.constant 5 : index
    %17 = memref.load %arg2[%c2_28, %c5_29] : memref<3x32xf32, #tpu.memory_space<smem>>
    %c0_30 = arith.constant 0 : index
    %c6 = arith.constant 6 : index
    %18 = memref.load %arg2[%c0_30, %c6] : memref<3x32xf32, #tpu.memory_space<smem>>
    %c1_31 = arith.constant 1 : index
    %c6_32 = arith.constant 6 : index
    %19 = memref.load %arg2[%c1_31, %c6_32] : memref<3x32xf32, #tpu.memory_space<smem>>
    %c2_33 = arith.constant 2 : index
    %c6_34 = arith.constant 6 : index
    %20 = memref.load %arg2[%c2_33, %c6_34] : memref<3x32xf32, #tpu.memory_space<smem>>
    %c0_35 = arith.constant 0 : index
    %c7 = arith.constant 7 : index
    %21 = memref.load %arg2[%c0_35, %c7] : memref<3x32xf32, #tpu.memory_space<smem>>
    %c1_36 = arith.constant 1 : index
    %c7_37 = arith.constant 7 : index
    %22 = memref.load %arg2[%c1_36, %c7_37] : memref<3x32xf32, #tpu.memory_space<smem>>
    %c2_38 = arith.constant 2 : index
    %c7_39 = arith.constant 7 : index
    %23 = memref.load %arg2[%c2_38, %c7_39] : memref<3x32xf32, #tpu.memory_space<smem>>
    %c0_40 = arith.constant 0 : index
    %c8 = arith.constant 8 : index
    %24 = memref.load %arg2[%c0_40, %c8] : memref<3x32xf32, #tpu.memory_space<smem>>
    %c1_41 = arith.constant 1 : index
    %c8_42 = arith.constant 8 : index
    %25 = memref.load %arg2[%c1_41, %c8_42] : memref<3x32xf32, #tpu.memory_space<smem>>
    %c2_43 = arith.constant 2 : index
    %c8_44 = arith.constant 8 : index
    %26 = memref.load %arg2[%c2_43, %c8_44] : memref<3x32xf32, #tpu.memory_space<smem>>
    %c0_45 = arith.constant 0 : index
    %c9 = arith.constant 9 : index
    %27 = memref.load %arg2[%c0_45, %c9] : memref<3x32xf32, #tpu.memory_space<smem>>
    %c1_46 = arith.constant 1 : index
    %c9_47 = arith.constant 9 : index
    %28 = memref.load %arg2[%c1_46, %c9_47] : memref<3x32xf32, #tpu.memory_space<smem>>
    %c2_48 = arith.constant 2 : index
    %c9_49 = arith.constant 9 : index
    %29 = memref.load %arg2[%c2_48, %c9_49] : memref<3x32xf32, #tpu.memory_space<smem>>
    %c0_50 = arith.constant 0 : index
    %c10 = arith.constant 10 : index
    %30 = memref.load %arg2[%c0_50, %c10] : memref<3x32xf32, #tpu.memory_space<smem>>
    %c1_51 = arith.constant 1 : index
    %c10_52 = arith.constant 10 : index
    %31 = memref.load %arg2[%c1_51, %c10_52] : memref<3x32xf32, #tpu.memory_space<smem>>
    %c2_53 = arith.constant 2 : index
    %c10_54 = arith.constant 10 : index
    %32 = memref.load %arg2[%c2_53, %c10_54] : memref<3x32xf32, #tpu.memory_space<smem>>
    %c0_55 = arith.constant 0 : index
    %c11 = arith.constant 11 : index
    %33 = memref.load %arg2[%c0_55, %c11] : memref<3x32xf32, #tpu.memory_space<smem>>
    %c1_56 = arith.constant 1 : index
    %c11_57 = arith.constant 11 : index
    %34 = memref.load %arg2[%c1_56, %c11_57] : memref<3x32xf32, #tpu.memory_space<smem>>
    %c2_58 = arith.constant 2 : index
    %c11_59 = arith.constant 11 : index
    %35 = memref.load %arg2[%c2_58, %c11_59] : memref<3x32xf32, #tpu.memory_space<smem>>
    %c0_60 = arith.constant 0 : index
    %c12 = arith.constant 12 : index
    %36 = memref.load %arg2[%c0_60, %c12] : memref<3x32xf32, #tpu.memory_space<smem>>
    %c1_61 = arith.constant 1 : index
    %c12_62 = arith.constant 12 : index
    %37 = memref.load %arg2[%c1_61, %c12_62] : memref<3x32xf32, #tpu.memory_space<smem>>
    %c2_63 = arith.constant 2 : index
    %c12_64 = arith.constant 12 : index
    %38 = memref.load %arg2[%c2_63, %c12_64] : memref<3x32xf32, #tpu.memory_space<smem>>
    %c0_65 = arith.constant 0 : index
    %c13 = arith.constant 13 : index
    %39 = memref.load %arg2[%c0_65, %c13] : memref<3x32xf32, #tpu.memory_space<smem>>
    %c1_66 = arith.constant 1 : index
    %c13_67 = arith.constant 13 : index
    %40 = memref.load %arg2[%c1_66, %c13_67] : memref<3x32xf32, #tpu.memory_space<smem>>
    %c2_68 = arith.constant 2 : index
    %c13_69 = arith.constant 13 : index
    %41 = memref.load %arg2[%c2_68, %c13_69] : memref<3x32xf32, #tpu.memory_space<smem>>
    %c0_70 = arith.constant 0 : index
    %c14 = arith.constant 14 : index
    %42 = memref.load %arg2[%c0_70, %c14] : memref<3x32xf32, #tpu.memory_space<smem>>
    %c1_71 = arith.constant 1 : index
    %c14_72 = arith.constant 14 : index
    %43 = memref.load %arg2[%c1_71, %c14_72] : memref<3x32xf32, #tpu.memory_space<smem>>
    %c2_73 = arith.constant 2 : index
    %c14_74 = arith.constant 14 : index
    %44 = memref.load %arg2[%c2_73, %c14_74] : memref<3x32xf32, #tpu.memory_space<smem>>
    %c0_75 = arith.constant 0 : index
    %c15 = arith.constant 15 : index
    %45 = memref.load %arg2[%c0_75, %c15] : memref<3x32xf32, #tpu.memory_space<smem>>
    %c1_76 = arith.constant 1 : index
    %c15_77 = arith.constant 15 : index
    %46 = memref.load %arg2[%c1_76, %c15_77] : memref<3x32xf32, #tpu.memory_space<smem>>
    %c2_78 = arith.constant 2 : index
    %c15_79 = arith.constant 15 : index
    %47 = memref.load %arg2[%c2_78, %c15_79] : memref<3x32xf32, #tpu.memory_space<smem>>
    %c0_80 = arith.constant 0 : index
    %c16 = arith.constant 16 : index
    %48 = memref.load %arg2[%c0_80, %c16] : memref<3x32xf32, #tpu.memory_space<smem>>
    %c1_81 = arith.constant 1 : index
    %c16_82 = arith.constant 16 : index
    %49 = memref.load %arg2[%c1_81, %c16_82] : memref<3x32xf32, #tpu.memory_space<smem>>
    %c2_83 = arith.constant 2 : index
    %c16_84 = arith.constant 16 : index
    %50 = memref.load %arg2[%c2_83, %c16_84] : memref<3x32xf32, #tpu.memory_space<smem>>
    %c0_85 = arith.constant 0 : index
    %c17 = arith.constant 17 : index
    %51 = memref.load %arg2[%c0_85, %c17] : memref<3x32xf32, #tpu.memory_space<smem>>
    %c1_86 = arith.constant 1 : index
    %c17_87 = arith.constant 17 : index
    %52 = memref.load %arg2[%c1_86, %c17_87] : memref<3x32xf32, #tpu.memory_space<smem>>
    %c2_88 = arith.constant 2 : index
    %c17_89 = arith.constant 17 : index
    %53 = memref.load %arg2[%c2_88, %c17_89] : memref<3x32xf32, #tpu.memory_space<smem>>
    %c0_90 = arith.constant 0 : index
    %c18 = arith.constant 18 : index
    %54 = memref.load %arg2[%c0_90, %c18] : memref<3x32xf32, #tpu.memory_space<smem>>
    %c1_91 = arith.constant 1 : index
    %c18_92 = arith.constant 18 : index
    %55 = memref.load %arg2[%c1_91, %c18_92] : memref<3x32xf32, #tpu.memory_space<smem>>
    %c2_93 = arith.constant 2 : index
    %c18_94 = arith.constant 18 : index
    %56 = memref.load %arg2[%c2_93, %c18_94] : memref<3x32xf32, #tpu.memory_space<smem>>
    %c0_95 = arith.constant 0 : index
    %c19 = arith.constant 19 : index
    %57 = memref.load %arg2[%c0_95, %c19] : memref<3x32xf32, #tpu.memory_space<smem>>
    %c1_96 = arith.constant 1 : index
    %c19_97 = arith.constant 19 : index
    %58 = memref.load %arg2[%c1_96, %c19_97] : memref<3x32xf32, #tpu.memory_space<smem>>
    %c2_98 = arith.constant 2 : index
    %c19_99 = arith.constant 19 : index
    %59 = memref.load %arg2[%c2_98, %c19_99] : memref<3x32xf32, #tpu.memory_space<smem>>
    %c0_100 = arith.constant 0 : index
    %c20 = arith.constant 20 : index
    %60 = memref.load %arg2[%c0_100, %c20] : memref<3x32xf32, #tpu.memory_space<smem>>
    %c1_101 = arith.constant 1 : index
    %c20_102 = arith.constant 20 : index
    %61 = memref.load %arg2[%c1_101, %c20_102] : memref<3x32xf32, #tpu.memory_space<smem>>
    %c2_103 = arith.constant 2 : index
    %c20_104 = arith.constant 20 : index
    %62 = memref.load %arg2[%c2_103, %c20_104] : memref<3x32xf32, #tpu.memory_space<smem>>
    %c0_105 = arith.constant 0 : index
    %c21 = arith.constant 21 : index
    %63 = memref.load %arg2[%c0_105, %c21] : memref<3x32xf32, #tpu.memory_space<smem>>
    %c1_106 = arith.constant 1 : index
    %c21_107 = arith.constant 21 : index
    %64 = memref.load %arg2[%c1_106, %c21_107] : memref<3x32xf32, #tpu.memory_space<smem>>
    %c2_108 = arith.constant 2 : index
    %c21_109 = arith.constant 21 : index
    %65 = memref.load %arg2[%c2_108, %c21_109] : memref<3x32xf32, #tpu.memory_space<smem>>
    %c0_110 = arith.constant 0 : index
    %c22 = arith.constant 22 : index
    %66 = memref.load %arg2[%c0_110, %c22] : memref<3x32xf32, #tpu.memory_space<smem>>
    %c1_111 = arith.constant 1 : index
    %c22_112 = arith.constant 22 : index
    %67 = memref.load %arg2[%c1_111, %c22_112] : memref<3x32xf32, #tpu.memory_space<smem>>
    %c2_113 = arith.constant 2 : index
    %c22_114 = arith.constant 22 : index
    %68 = memref.load %arg2[%c2_113, %c22_114] : memref<3x32xf32, #tpu.memory_space<smem>>
    %c0_115 = arith.constant 0 : index
    %c23 = arith.constant 23 : index
    %69 = memref.load %arg2[%c0_115, %c23] : memref<3x32xf32, #tpu.memory_space<smem>>
    %c1_116 = arith.constant 1 : index
    %c23_117 = arith.constant 23 : index
    %70 = memref.load %arg2[%c1_116, %c23_117] : memref<3x32xf32, #tpu.memory_space<smem>>
    %c2_118 = arith.constant 2 : index
    %c23_119 = arith.constant 23 : index
    %71 = memref.load %arg2[%c2_118, %c23_119] : memref<3x32xf32, #tpu.memory_space<smem>>
    %c0_120 = arith.constant 0 : index
    %c24 = arith.constant 24 : index
    %72 = memref.load %arg2[%c0_120, %c24] : memref<3x32xf32, #tpu.memory_space<smem>>
    %c1_121 = arith.constant 1 : index
    %c24_122 = arith.constant 24 : index
    %73 = memref.load %arg2[%c1_121, %c24_122] : memref<3x32xf32, #tpu.memory_space<smem>>
    %c2_123 = arith.constant 2 : index
    %c24_124 = arith.constant 24 : index
    %74 = memref.load %arg2[%c2_123, %c24_124] : memref<3x32xf32, #tpu.memory_space<smem>>
    %c0_125 = arith.constant 0 : index
    %c25 = arith.constant 25 : index
    %75 = memref.load %arg2[%c0_125, %c25] : memref<3x32xf32, #tpu.memory_space<smem>>
    %c1_126 = arith.constant 1 : index
    %c25_127 = arith.constant 25 : index
    %76 = memref.load %arg2[%c1_126, %c25_127] : memref<3x32xf32, #tpu.memory_space<smem>>
    %c2_128 = arith.constant 2 : index
    %c25_129 = arith.constant 25 : index
    %77 = memref.load %arg2[%c2_128, %c25_129] : memref<3x32xf32, #tpu.memory_space<smem>>
    %c0_130 = arith.constant 0 : index
    %c26 = arith.constant 26 : index
    %78 = memref.load %arg2[%c0_130, %c26] : memref<3x32xf32, #tpu.memory_space<smem>>
    %c1_131 = arith.constant 1 : index
    %c26_132 = arith.constant 26 : index
    %79 = memref.load %arg2[%c1_131, %c26_132] : memref<3x32xf32, #tpu.memory_space<smem>>
    %c2_133 = arith.constant 2 : index
    %c26_134 = arith.constant 26 : index
    %80 = memref.load %arg2[%c2_133, %c26_134] : memref<3x32xf32, #tpu.memory_space<smem>>
    %c0_135 = arith.constant 0 : index
    %c27 = arith.constant 27 : index
    %81 = memref.load %arg2[%c0_135, %c27] : memref<3x32xf32, #tpu.memory_space<smem>>
    %c1_136 = arith.constant 1 : index
    %c27_137 = arith.constant 27 : index
    %82 = memref.load %arg2[%c1_136, %c27_137] : memref<3x32xf32, #tpu.memory_space<smem>>
    %c2_138 = arith.constant 2 : index
    %c27_139 = arith.constant 27 : index
    %83 = memref.load %arg2[%c2_138, %c27_139] : memref<3x32xf32, #tpu.memory_space<smem>>
    %c0_140 = arith.constant 0 : index
    %c28 = arith.constant 28 : index
    %84 = memref.load %arg2[%c0_140, %c28] : memref<3x32xf32, #tpu.memory_space<smem>>
    %c1_141 = arith.constant 1 : index
    %c28_142 = arith.constant 28 : index
    %85 = memref.load %arg2[%c1_141, %c28_142] : memref<3x32xf32, #tpu.memory_space<smem>>
    %c2_143 = arith.constant 2 : index
    %c28_144 = arith.constant 28 : index
    %86 = memref.load %arg2[%c2_143, %c28_144] : memref<3x32xf32, #tpu.memory_space<smem>>
    %c0_145 = arith.constant 0 : index
    %c29 = arith.constant 29 : index
    %87 = memref.load %arg2[%c0_145, %c29] : memref<3x32xf32, #tpu.memory_space<smem>>
    %c1_146 = arith.constant 1 : index
    %c29_147 = arith.constant 29 : index
    %88 = memref.load %arg2[%c1_146, %c29_147] : memref<3x32xf32, #tpu.memory_space<smem>>
    %c2_148 = arith.constant 2 : index
    %c29_149 = arith.constant 29 : index
    %89 = memref.load %arg2[%c2_148, %c29_149] : memref<3x32xf32, #tpu.memory_space<smem>>
    %c0_150 = arith.constant 0 : index
    %c30 = arith.constant 30 : index
    %90 = memref.load %arg2[%c0_150, %c30] : memref<3x32xf32, #tpu.memory_space<smem>>
    %c1_151 = arith.constant 1 : index
    %c30_152 = arith.constant 30 : index
    %91 = memref.load %arg2[%c1_151, %c30_152] : memref<3x32xf32, #tpu.memory_space<smem>>
    %c2_153 = arith.constant 2 : index
    %c30_154 = arith.constant 30 : index
    %92 = memref.load %arg2[%c2_153, %c30_154] : memref<3x32xf32, #tpu.memory_space<smem>>
    %c0_155 = arith.constant 0 : index
    %c31 = arith.constant 31 : index
    %93 = memref.load %arg2[%c0_155, %c31] : memref<3x32xf32, #tpu.memory_space<smem>>
    %c1_156 = arith.constant 1 : index
    %c31_157 = arith.constant 31 : index
    %94 = memref.load %arg2[%c1_156, %c31_157] : memref<3x32xf32, #tpu.memory_space<smem>>
    %c2_158 = arith.constant 2 : index
    %c31_159 = arith.constant 31 : index
    %95 = memref.load %arg2[%c2_158, %c31_159] : memref<3x32xf32, #tpu.memory_space<smem>>
    %c0_160 = arith.constant 0 : index
    %96 = memref.load %arg3[%c0_160] : memref<32xf32, #tpu.memory_space<smem>>
    %c1_161 = arith.constant 1 : index
    %97 = memref.load %arg3[%c1_161] : memref<32xf32, #tpu.memory_space<smem>>
    %c2_162 = arith.constant 2 : index
    %98 = memref.load %arg3[%c2_162] : memref<32xf32, #tpu.memory_space<smem>>
    %c3_163 = arith.constant 3 : index
    %99 = memref.load %arg3[%c3_163] : memref<32xf32, #tpu.memory_space<smem>>
    %c4_164 = arith.constant 4 : index
    %100 = memref.load %arg3[%c4_164] : memref<32xf32, #tpu.memory_space<smem>>
    %c5_165 = arith.constant 5 : index
    %101 = memref.load %arg3[%c5_165] : memref<32xf32, #tpu.memory_space<smem>>
    %c6_166 = arith.constant 6 : index
    %102 = memref.load %arg3[%c6_166] : memref<32xf32, #tpu.memory_space<smem>>
    %c7_167 = arith.constant 7 : index
    %103 = memref.load %arg3[%c7_167] : memref<32xf32, #tpu.memory_space<smem>>
    %c8_168 = arith.constant 8 : index
    %104 = memref.load %arg3[%c8_168] : memref<32xf32, #tpu.memory_space<smem>>
    %c9_169 = arith.constant 9 : index
    %105 = memref.load %arg3[%c9_169] : memref<32xf32, #tpu.memory_space<smem>>
    %c10_170 = arith.constant 10 : index
    %106 = memref.load %arg3[%c10_170] : memref<32xf32, #tpu.memory_space<smem>>
    %c11_171 = arith.constant 11 : index
    %107 = memref.load %arg3[%c11_171] : memref<32xf32, #tpu.memory_space<smem>>
    %c12_172 = arith.constant 12 : index
    %108 = memref.load %arg3[%c12_172] : memref<32xf32, #tpu.memory_space<smem>>
    %c13_173 = arith.constant 13 : index
    %109 = memref.load %arg3[%c13_173] : memref<32xf32, #tpu.memory_space<smem>>
    %c14_174 = arith.constant 14 : index
    %110 = memref.load %arg3[%c14_174] : memref<32xf32, #tpu.memory_space<smem>>
    %c15_175 = arith.constant 15 : index
    %111 = memref.load %arg3[%c15_175] : memref<32xf32, #tpu.memory_space<smem>>
    %c16_176 = arith.constant 16 : index
    %112 = memref.load %arg3[%c16_176] : memref<32xf32, #tpu.memory_space<smem>>
    %c17_177 = arith.constant 17 : index
    %113 = memref.load %arg3[%c17_177] : memref<32xf32, #tpu.memory_space<smem>>
    %c18_178 = arith.constant 18 : index
    %114 = memref.load %arg3[%c18_178] : memref<32xf32, #tpu.memory_space<smem>>
    %c19_179 = arith.constant 19 : index
    %115 = memref.load %arg3[%c19_179] : memref<32xf32, #tpu.memory_space<smem>>
    %c20_180 = arith.constant 20 : index
    %116 = memref.load %arg3[%c20_180] : memref<32xf32, #tpu.memory_space<smem>>
    %c21_181 = arith.constant 21 : index
    %117 = memref.load %arg3[%c21_181] : memref<32xf32, #tpu.memory_space<smem>>
    %c22_182 = arith.constant 22 : index
    %118 = memref.load %arg3[%c22_182] : memref<32xf32, #tpu.memory_space<smem>>
    %c23_183 = arith.constant 23 : index
    %119 = memref.load %arg3[%c23_183] : memref<32xf32, #tpu.memory_space<smem>>
    %c24_184 = arith.constant 24 : index
    %120 = memref.load %arg3[%c24_184] : memref<32xf32, #tpu.memory_space<smem>>
    %c25_185 = arith.constant 25 : index
    %121 = memref.load %arg3[%c25_185] : memref<32xf32, #tpu.memory_space<smem>>
    %c26_186 = arith.constant 26 : index
    %122 = memref.load %arg3[%c26_186] : memref<32xf32, #tpu.memory_space<smem>>
    %c27_187 = arith.constant 27 : index
    %123 = memref.load %arg3[%c27_187] : memref<32xf32, #tpu.memory_space<smem>>
    %c28_188 = arith.constant 28 : index
    %124 = memref.load %arg3[%c28_188] : memref<32xf32, #tpu.memory_space<smem>>
    %c29_189 = arith.constant 29 : index
    %125 = memref.load %arg3[%c29_189] : memref<32xf32, #tpu.memory_space<smem>>
    %c30_190 = arith.constant 30 : index
    %126 = memref.load %arg3[%c30_190] : memref<32xf32, #tpu.memory_space<smem>>
    %c31_191 = arith.constant 31 : index
    %127 = memref.load %arg3[%c31_191] : memref<32xf32, #tpu.memory_space<smem>>
    %c0_192 = arith.constant 0 : index
    %128 = memref.load %arg4[%c0_192] : memref<32xf32, #tpu.memory_space<smem>>
    %c1_193 = arith.constant 1 : index
    %129 = memref.load %arg4[%c1_193] : memref<32xf32, #tpu.memory_space<smem>>
    %c2_194 = arith.constant 2 : index
    %130 = memref.load %arg4[%c2_194] : memref<32xf32, #tpu.memory_space<smem>>
    %c3_195 = arith.constant 3 : index
    %131 = memref.load %arg4[%c3_195] : memref<32xf32, #tpu.memory_space<smem>>
    %c4_196 = arith.constant 4 : index
    %132 = memref.load %arg4[%c4_196] : memref<32xf32, #tpu.memory_space<smem>>
    %c5_197 = arith.constant 5 : index
    %133 = memref.load %arg4[%c5_197] : memref<32xf32, #tpu.memory_space<smem>>
    %c6_198 = arith.constant 6 : index
    %134 = memref.load %arg4[%c6_198] : memref<32xf32, #tpu.memory_space<smem>>
    %c7_199 = arith.constant 7 : index
    %135 = memref.load %arg4[%c7_199] : memref<32xf32, #tpu.memory_space<smem>>
    %c8_200 = arith.constant 8 : index
    %136 = memref.load %arg4[%c8_200] : memref<32xf32, #tpu.memory_space<smem>>
    %c9_201 = arith.constant 9 : index
    %137 = memref.load %arg4[%c9_201] : memref<32xf32, #tpu.memory_space<smem>>
    %c10_202 = arith.constant 10 : index
    %138 = memref.load %arg4[%c10_202] : memref<32xf32, #tpu.memory_space<smem>>
    %c11_203 = arith.constant 11 : index
    %139 = memref.load %arg4[%c11_203] : memref<32xf32, #tpu.memory_space<smem>>
    %c12_204 = arith.constant 12 : index
    %140 = memref.load %arg4[%c12_204] : memref<32xf32, #tpu.memory_space<smem>>
    %c13_205 = arith.constant 13 : index
    %141 = memref.load %arg4[%c13_205] : memref<32xf32, #tpu.memory_space<smem>>
    %c14_206 = arith.constant 14 : index
    %142 = memref.load %arg4[%c14_206] : memref<32xf32, #tpu.memory_space<smem>>
    %c15_207 = arith.constant 15 : index
    %143 = memref.load %arg4[%c15_207] : memref<32xf32, #tpu.memory_space<smem>>
    %c16_208 = arith.constant 16 : index
    %144 = memref.load %arg4[%c16_208] : memref<32xf32, #tpu.memory_space<smem>>
    %c17_209 = arith.constant 17 : index
    %145 = memref.load %arg4[%c17_209] : memref<32xf32, #tpu.memory_space<smem>>
    %c18_210 = arith.constant 18 : index
    %146 = memref.load %arg4[%c18_210] : memref<32xf32, #tpu.memory_space<smem>>
    %c19_211 = arith.constant 19 : index
    %147 = memref.load %arg4[%c19_211] : memref<32xf32, #tpu.memory_space<smem>>
    %c20_212 = arith.constant 20 : index
    %148 = memref.load %arg4[%c20_212] : memref<32xf32, #tpu.memory_space<smem>>
    %c21_213 = arith.constant 21 : index
    %149 = memref.load %arg4[%c21_213] : memref<32xf32, #tpu.memory_space<smem>>
    %c22_214 = arith.constant 22 : index
    %150 = memref.load %arg4[%c22_214] : memref<32xf32, #tpu.memory_space<smem>>
    %c23_215 = arith.constant 23 : index
    %151 = memref.load %arg4[%c23_215] : memref<32xf32, #tpu.memory_space<smem>>
    %c24_216 = arith.constant 24 : index
    %152 = memref.load %arg4[%c24_216] : memref<32xf32, #tpu.memory_space<smem>>
    %c25_217 = arith.constant 25 : index
    %153 = memref.load %arg4[%c25_217] : memref<32xf32, #tpu.memory_space<smem>>
    %c26_218 = arith.constant 26 : index
    %154 = memref.load %arg4[%c26_218] : memref<32xf32, #tpu.memory_space<smem>>
    %c27_219 = arith.constant 27 : index
    %155 = memref.load %arg4[%c27_219] : memref<32xf32, #tpu.memory_space<smem>>
    %c28_220 = arith.constant 28 : index
    %156 = memref.load %arg4[%c28_220] : memref<32xf32, #tpu.memory_space<smem>>
    %c29_221 = arith.constant 29 : index
    %157 = memref.load %arg4[%c29_221] : memref<32xf32, #tpu.memory_space<smem>>
    %c30_222 = arith.constant 30 : index
    %158 = memref.load %arg4[%c30_222] : memref<32xf32, #tpu.memory_space<smem>>
    %c31_223 = arith.constant 31 : index
    %159 = memref.load %arg4[%c31_223] : memref<32xf32, #tpu.memory_space<smem>>
    %c0_224 = arith.constant 0 : index
    %160 = memref.load %arg5[%c0_224] : memref<1xf32, #tpu.memory_space<smem>>
    %c0_i32 = arith.constant 0 : i32
    %c7_i32 = arith.constant 7 : i32
    %161 = arith.addi %c0_i32, %c7_i32 : i32
    %c1_i32 = arith.constant 1 : i32
    scf.for %arg7 = %c0_i32 to %161 step %c1_i32  : i32 {
      %c32_i32 = arith.constant 32 : i32
      %162 = arith.muli %arg7, %c32_i32 : i32
      %163 = tpu.assume_multiple %162, 32 : i32
      %c0_226 = arith.constant 0 : index
      %c0_227 = arith.constant 0 : index
      %164 = arith.index_cast %163 : i32 to index
      %c0_228 = arith.constant 0 : index
      %165 = vector.load %arg1[%c0_226, %c0_227, %164, %c0_228] : memref<3x1x224x128xi8, #tpu.memory_space<vmem>>, vector<1x1x32x128xi8>
      %166 = vector.shape_cast %165 : vector<1x1x32x128xi8> to vector<32x128xi8>
      %167 = arith.uitofp %166 : vector<32x128xi8> to vector<32x128xf32>
      %c1_229 = arith.constant 1 : index
      %c0_230 = arith.constant 0 : index
      %168 = arith.index_cast %163 : i32 to index
      %c0_231 = arith.constant 0 : index
      %169 = vector.load %arg1[%c1_229, %c0_230, %168, %c0_231] : memref<3x1x224x128xi8, #tpu.memory_space<vmem>>, vector<1x1x32x128xi8>
      %170 = vector.shape_cast %169 : vector<1x1x32x128xi8> to vector<32x128xi8>
      %171 = arith.uitofp %170 : vector<32x128xi8> to vector<32x128xf32>
      %c2_232 = arith.constant 2 : index
      %c0_233 = arith.constant 0 : index
      %172 = arith.index_cast %163 : i32 to index
      %c0_234 = arith.constant 0 : index
      %173 = vector.load %arg1[%c2_232, %c0_233, %172, %c0_234] : memref<3x1x224x128xi8, #tpu.memory_space<vmem>>, vector<1x1x32x128xi8>
      %174 = vector.shape_cast %173 : vector<1x1x32x128xi8> to vector<32x128xi8>
      %175 = arith.uitofp %174 : vector<32x128xi8> to vector<32x128xf32>
      %176 = vector.broadcast %0 : f32 to vector<32x128xf32>
      %177 = arith.mulf %167, %176 : vector<32x128xf32>
      %178 = vector.broadcast %1 : f32 to vector<32x128xf32>
      %179 = arith.mulf %171, %178 : vector<32x128xf32>
      %180 = arith.addf %177, %179 : vector<32x128xf32>
      %181 = vector.broadcast %2 : f32 to vector<32x128xf32>
      %182 = arith.mulf %175, %181 : vector<32x128xf32>
      %183 = arith.addf %180, %182 : vector<32x128xf32>
      %184 = vector.broadcast %96 : f32 to vector<32x128xf32>
      %185 = arith.addf %183, %184 : vector<32x128xf32>
      %cst = arith.constant 0.000000e+00 : f32
      %186 = vector.broadcast %cst : f32 to vector<32x128xf32>
      %187 = arith.maximumf %185, %186 : vector<32x128xf32>
      %188 = vector.broadcast %128 : f32 to vector<32x128xf32>
      %189 = arith.mulf %187, %188 : vector<32x128xf32>
      %190 = vector.broadcast %3 : f32 to vector<32x128xf32>
      %191 = arith.mulf %167, %190 : vector<32x128xf32>
      %192 = vector.broadcast %4 : f32 to vector<32x128xf32>
      %193 = arith.mulf %171, %192 : vector<32x128xf32>
      %194 = arith.addf %191, %193 : vector<32x128xf32>
      %195 = vector.broadcast %5 : f32 to vector<32x128xf32>
      %196 = arith.mulf %175, %195 : vector<32x128xf32>
      %197 = arith.addf %194, %196 : vector<32x128xf32>
      %198 = vector.broadcast %97 : f32 to vector<32x128xf32>
      %199 = arith.addf %197, %198 : vector<32x128xf32>
      %cst_235 = arith.constant 0.000000e+00 : f32
      %200 = vector.broadcast %cst_235 : f32 to vector<32x128xf32>
      %201 = arith.maximumf %199, %200 : vector<32x128xf32>
      %202 = vector.broadcast %129 : f32 to vector<32x128xf32>
      %203 = arith.mulf %201, %202 : vector<32x128xf32>
      %204 = vector.broadcast %6 : f32 to vector<32x128xf32>
      %205 = arith.mulf %167, %204 : vector<32x128xf32>
      %206 = vector.broadcast %7 : f32 to vector<32x128xf32>
      %207 = arith.mulf %171, %206 : vector<32x128xf32>
      %208 = arith.addf %205, %207 : vector<32x128xf32>
      %209 = vector.broadcast %8 : f32 to vector<32x128xf32>
      %210 = arith.mulf %175, %209 : vector<32x128xf32>
      %211 = arith.addf %208, %210 : vector<32x128xf32>
      %212 = vector.broadcast %98 : f32 to vector<32x128xf32>
      %213 = arith.addf %211, %212 : vector<32x128xf32>
      %cst_236 = arith.constant 0.000000e+00 : f32
      %214 = vector.broadcast %cst_236 : f32 to vector<32x128xf32>
      %215 = arith.maximumf %213, %214 : vector<32x128xf32>
      %216 = vector.broadcast %130 : f32 to vector<32x128xf32>
      %217 = arith.mulf %215, %216 : vector<32x128xf32>
      %218 = vector.broadcast %9 : f32 to vector<32x128xf32>
      %219 = arith.mulf %167, %218 : vector<32x128xf32>
      %220 = vector.broadcast %10 : f32 to vector<32x128xf32>
      %221 = arith.mulf %171, %220 : vector<32x128xf32>
      %222 = arith.addf %219, %221 : vector<32x128xf32>
      %223 = vector.broadcast %11 : f32 to vector<32x128xf32>
      %224 = arith.mulf %175, %223 : vector<32x128xf32>
      %225 = arith.addf %222, %224 : vector<32x128xf32>
      %226 = vector.broadcast %99 : f32 to vector<32x128xf32>
      %227 = arith.addf %225, %226 : vector<32x128xf32>
      %cst_237 = arith.constant 0.000000e+00 : f32
      %228 = vector.broadcast %cst_237 : f32 to vector<32x128xf32>
      %229 = arith.maximumf %227, %228 : vector<32x128xf32>
      %230 = vector.broadcast %131 : f32 to vector<32x128xf32>
      %231 = arith.mulf %229, %230 : vector<32x128xf32>
      %232 = vector.broadcast %12 : f32 to vector<32x128xf32>
      %233 = arith.mulf %167, %232 : vector<32x128xf32>
      %234 = vector.broadcast %13 : f32 to vector<32x128xf32>
      %235 = arith.mulf %171, %234 : vector<32x128xf32>
      %236 = arith.addf %233, %235 : vector<32x128xf32>
      %237 = vector.broadcast %14 : f32 to vector<32x128xf32>
      %238 = arith.mulf %175, %237 : vector<32x128xf32>
      %239 = arith.addf %236, %238 : vector<32x128xf32>
      %240 = vector.broadcast %100 : f32 to vector<32x128xf32>
      %241 = arith.addf %239, %240 : vector<32x128xf32>
      %cst_238 = arith.constant 0.000000e+00 : f32
      %242 = vector.broadcast %cst_238 : f32 to vector<32x128xf32>
      %243 = arith.maximumf %241, %242 : vector<32x128xf32>
      %244 = vector.broadcast %132 : f32 to vector<32x128xf32>
      %245 = arith.mulf %243, %244 : vector<32x128xf32>
      %246 = arith.addf %189, %245 : vector<32x128xf32>
      %247 = vector.broadcast %15 : f32 to vector<32x128xf32>
      %248 = arith.mulf %167, %247 : vector<32x128xf32>
      %249 = vector.broadcast %16 : f32 to vector<32x128xf32>
      %250 = arith.mulf %171, %249 : vector<32x128xf32>
      %251 = arith.addf %248, %250 : vector<32x128xf32>
      %252 = vector.broadcast %17 : f32 to vector<32x128xf32>
      %253 = arith.mulf %175, %252 : vector<32x128xf32>
      %254 = arith.addf %251, %253 : vector<32x128xf32>
      %255 = vector.broadcast %101 : f32 to vector<32x128xf32>
      %256 = arith.addf %254, %255 : vector<32x128xf32>
      %cst_239 = arith.constant 0.000000e+00 : f32
      %257 = vector.broadcast %cst_239 : f32 to vector<32x128xf32>
      %258 = arith.maximumf %256, %257 : vector<32x128xf32>
      %259 = vector.broadcast %133 : f32 to vector<32x128xf32>
      %260 = arith.mulf %258, %259 : vector<32x128xf32>
      %261 = arith.addf %203, %260 : vector<32x128xf32>
      %262 = vector.broadcast %18 : f32 to vector<32x128xf32>
      %263 = arith.mulf %167, %262 : vector<32x128xf32>
      %264 = vector.broadcast %19 : f32 to vector<32x128xf32>
      %265 = arith.mulf %171, %264 : vector<32x128xf32>
      %266 = arith.addf %263, %265 : vector<32x128xf32>
      %267 = vector.broadcast %20 : f32 to vector<32x128xf32>
      %268 = arith.mulf %175, %267 : vector<32x128xf32>
      %269 = arith.addf %266, %268 : vector<32x128xf32>
      %270 = vector.broadcast %102 : f32 to vector<32x128xf32>
      %271 = arith.addf %269, %270 : vector<32x128xf32>
      %cst_240 = arith.constant 0.000000e+00 : f32
      %272 = vector.broadcast %cst_240 : f32 to vector<32x128xf32>
      %273 = arith.maximumf %271, %272 : vector<32x128xf32>
      %274 = vector.broadcast %134 : f32 to vector<32x128xf32>
      %275 = arith.mulf %273, %274 : vector<32x128xf32>
      %276 = arith.addf %217, %275 : vector<32x128xf32>
      %277 = vector.broadcast %21 : f32 to vector<32x128xf32>
      %278 = arith.mulf %167, %277 : vector<32x128xf32>
      %279 = vector.broadcast %22 : f32 to vector<32x128xf32>
      %280 = arith.mulf %171, %279 : vector<32x128xf32>
      %281 = arith.addf %278, %280 : vector<32x128xf32>
      %282 = vector.broadcast %23 : f32 to vector<32x128xf32>
      %283 = arith.mulf %175, %282 : vector<32x128xf32>
      %284 = arith.addf %281, %283 : vector<32x128xf32>
      %285 = vector.broadcast %103 : f32 to vector<32x128xf32>
      %286 = arith.addf %284, %285 : vector<32x128xf32>
      %cst_241 = arith.constant 0.000000e+00 : f32
      %287 = vector.broadcast %cst_241 : f32 to vector<32x128xf32>
      %288 = arith.maximumf %286, %287 : vector<32x128xf32>
      %289 = vector.broadcast %135 : f32 to vector<32x128xf32>
      %290 = arith.mulf %288, %289 : vector<32x128xf32>
      %291 = arith.addf %231, %290 : vector<32x128xf32>
      %292 = vector.broadcast %24 : f32 to vector<32x128xf32>
      %293 = arith.mulf %167, %292 : vector<32x128xf32>
      %294 = vector.broadcast %25 : f32 to vector<32x128xf32>
      %295 = arith.mulf %171, %294 : vector<32x128xf32>
      %296 = arith.addf %293, %295 : vector<32x128xf32>
      %297 = vector.broadcast %26 : f32 to vector<32x128xf32>
      %298 = arith.mulf %175, %297 : vector<32x128xf32>
      %299 = arith.addf %296, %298 : vector<32x128xf32>
      %300 = vector.broadcast %104 : f32 to vector<32x128xf32>
      %301 = arith.addf %299, %300 : vector<32x128xf32>
      %cst_242 = arith.constant 0.000000e+00 : f32
      %302 = vector.broadcast %cst_242 : f32 to vector<32x128xf32>
      %303 = arith.maximumf %301, %302 : vector<32x128xf32>
      %304 = vector.broadcast %136 : f32 to vector<32x128xf32>
      %305 = arith.mulf %303, %304 : vector<32x128xf32>
      %306 = arith.addf %246, %305 : vector<32x128xf32>
      %307 = vector.broadcast %27 : f32 to vector<32x128xf32>
      %308 = arith.mulf %167, %307 : vector<32x128xf32>
      %309 = vector.broadcast %28 : f32 to vector<32x128xf32>
      %310 = arith.mulf %171, %309 : vector<32x128xf32>
      %311 = arith.addf %308, %310 : vector<32x128xf32>
      %312 = vector.broadcast %29 : f32 to vector<32x128xf32>
      %313 = arith.mulf %175, %312 : vector<32x128xf32>
      %314 = arith.addf %311, %313 : vector<32x128xf32>
      %315 = vector.broadcast %105 : f32 to vector<32x128xf32>
      %316 = arith.addf %314, %315 : vector<32x128xf32>
      %cst_243 = arith.constant 0.000000e+00 : f32
      %317 = vector.broadcast %cst_243 : f32 to vector<32x128xf32>
      %318 = arith.maximumf %316, %317 : vector<32x128xf32>
      %319 = vector.broadcast %137 : f32 to vector<32x128xf32>
      %320 = arith.mulf %318, %319 : vector<32x128xf32>
      %321 = arith.addf %261, %320 : vector<32x128xf32>
      %322 = vector.broadcast %30 : f32 to vector<32x128xf32>
      %323 = arith.mulf %167, %322 : vector<32x128xf32>
      %324 = vector.broadcast %31 : f32 to vector<32x128xf32>
      %325 = arith.mulf %171, %324 : vector<32x128xf32>
      %326 = arith.addf %323, %325 : vector<32x128xf32>
      %327 = vector.broadcast %32 : f32 to vector<32x128xf32>
      %328 = arith.mulf %175, %327 : vector<32x128xf32>
      %329 = arith.addf %326, %328 : vector<32x128xf32>
      %330 = vector.broadcast %106 : f32 to vector<32x128xf32>
      %331 = arith.addf %329, %330 : vector<32x128xf32>
      %cst_244 = arith.constant 0.000000e+00 : f32
      %332 = vector.broadcast %cst_244 : f32 to vector<32x128xf32>
      %333 = arith.maximumf %331, %332 : vector<32x128xf32>
      %334 = vector.broadcast %138 : f32 to vector<32x128xf32>
      %335 = arith.mulf %333, %334 : vector<32x128xf32>
      %336 = arith.addf %276, %335 : vector<32x128xf32>
      %337 = vector.broadcast %33 : f32 to vector<32x128xf32>
      %338 = arith.mulf %167, %337 : vector<32x128xf32>
      %339 = vector.broadcast %34 : f32 to vector<32x128xf32>
      %340 = arith.mulf %171, %339 : vector<32x128xf32>
      %341 = arith.addf %338, %340 : vector<32x128xf32>
      %342 = vector.broadcast %35 : f32 to vector<32x128xf32>
      %343 = arith.mulf %175, %342 : vector<32x128xf32>
      %344 = arith.addf %341, %343 : vector<32x128xf32>
      %345 = vector.broadcast %107 : f32 to vector<32x128xf32>
      %346 = arith.addf %344, %345 : vector<32x128xf32>
      %cst_245 = arith.constant 0.000000e+00 : f32
      %347 = vector.broadcast %cst_245 : f32 to vector<32x128xf32>
      %348 = arith.maximumf %346, %347 : vector<32x128xf32>
      %349 = vector.broadcast %139 : f32 to vector<32x128xf32>
      %350 = arith.mulf %348, %349 : vector<32x128xf32>
      %351 = arith.addf %291, %350 : vector<32x128xf32>
      %352 = vector.broadcast %36 : f32 to vector<32x128xf32>
      %353 = arith.mulf %167, %352 : vector<32x128xf32>
      %354 = vector.broadcast %37 : f32 to vector<32x128xf32>
      %355 = arith.mulf %171, %354 : vector<32x128xf32>
      %356 = arith.addf %353, %355 : vector<32x128xf32>
      %357 = vector.broadcast %38 : f32 to vector<32x128xf32>
      %358 = arith.mulf %175, %357 : vector<32x128xf32>
      %359 = arith.addf %356, %358 : vector<32x128xf32>
      %360 = vector.broadcast %108 : f32 to vector<32x128xf32>
      %361 = arith.addf %359, %360 : vector<32x128xf32>
      %cst_246 = arith.constant 0.000000e+00 : f32
      %362 = vector.broadcast %cst_246 : f32 to vector<32x128xf32>
      %363 = arith.maximumf %361, %362 : vector<32x128xf32>
      %364 = vector.broadcast %140 : f32 to vector<32x128xf32>
      %365 = arith.mulf %363, %364 : vector<32x128xf32>
      %366 = arith.addf %306, %365 : vector<32x128xf32>
      %367 = vector.broadcast %39 : f32 to vector<32x128xf32>
      %368 = arith.mulf %167, %367 : vector<32x128xf32>
      %369 = vector.broadcast %40 : f32 to vector<32x128xf32>
      %370 = arith.mulf %171, %369 : vector<32x128xf32>
      %371 = arith.addf %368, %370 : vector<32x128xf32>
      %372 = vector.broadcast %41 : f32 to vector<32x128xf32>
      %373 = arith.mulf %175, %372 : vector<32x128xf32>
      %374 = arith.addf %371, %373 : vector<32x128xf32>
      %375 = vector.broadcast %109 : f32 to vector<32x128xf32>
      %376 = arith.addf %374, %375 : vector<32x128xf32>
      %cst_247 = arith.constant 0.000000e+00 : f32
      %377 = vector.broadcast %cst_247 : f32 to vector<32x128xf32>
      %378 = arith.maximumf %376, %377 : vector<32x128xf32>
      %379 = vector.broadcast %141 : f32 to vector<32x128xf32>
      %380 = arith.mulf %378, %379 : vector<32x128xf32>
      %381 = arith.addf %321, %380 : vector<32x128xf32>
      %382 = vector.broadcast %42 : f32 to vector<32x128xf32>
      %383 = arith.mulf %167, %382 : vector<32x128xf32>
      %384 = vector.broadcast %43 : f32 to vector<32x128xf32>
      %385 = arith.mulf %171, %384 : vector<32x128xf32>
      %386 = arith.addf %383, %385 : vector<32x128xf32>
      %387 = vector.broadcast %44 : f32 to vector<32x128xf32>
      %388 = arith.mulf %175, %387 : vector<32x128xf32>
      %389 = arith.addf %386, %388 : vector<32x128xf32>
      %390 = vector.broadcast %110 : f32 to vector<32x128xf32>
      %391 = arith.addf %389, %390 : vector<32x128xf32>
      %cst_248 = arith.constant 0.000000e+00 : f32
      %392 = vector.broadcast %cst_248 : f32 to vector<32x128xf32>
      %393 = arith.maximumf %391, %392 : vector<32x128xf32>
      %394 = vector.broadcast %142 : f32 to vector<32x128xf32>
      %395 = arith.mulf %393, %394 : vector<32x128xf32>
      %396 = arith.addf %336, %395 : vector<32x128xf32>
      %397 = vector.broadcast %45 : f32 to vector<32x128xf32>
      %398 = arith.mulf %167, %397 : vector<32x128xf32>
      %399 = vector.broadcast %46 : f32 to vector<32x128xf32>
      %400 = arith.mulf %171, %399 : vector<32x128xf32>
      %401 = arith.addf %398, %400 : vector<32x128xf32>
      %402 = vector.broadcast %47 : f32 to vector<32x128xf32>
      %403 = arith.mulf %175, %402 : vector<32x128xf32>
      %404 = arith.addf %401, %403 : vector<32x128xf32>
      %405 = vector.broadcast %111 : f32 to vector<32x128xf32>
      %406 = arith.addf %404, %405 : vector<32x128xf32>
      %cst_249 = arith.constant 0.000000e+00 : f32
      %407 = vector.broadcast %cst_249 : f32 to vector<32x128xf32>
      %408 = arith.maximumf %406, %407 : vector<32x128xf32>
      %409 = vector.broadcast %143 : f32 to vector<32x128xf32>
      %410 = arith.mulf %408, %409 : vector<32x128xf32>
      %411 = arith.addf %351, %410 : vector<32x128xf32>
      %412 = vector.broadcast %48 : f32 to vector<32x128xf32>
      %413 = arith.mulf %167, %412 : vector<32x128xf32>
      %414 = vector.broadcast %49 : f32 to vector<32x128xf32>
      %415 = arith.mulf %171, %414 : vector<32x128xf32>
      %416 = arith.addf %413, %415 : vector<32x128xf32>
      %417 = vector.broadcast %50 : f32 to vector<32x128xf32>
      %418 = arith.mulf %175, %417 : vector<32x128xf32>
      %419 = arith.addf %416, %418 : vector<32x128xf32>
      %420 = vector.broadcast %112 : f32 to vector<32x128xf32>
      %421 = arith.addf %419, %420 : vector<32x128xf32>
      %cst_250 = arith.constant 0.000000e+00 : f32
      %422 = vector.broadcast %cst_250 : f32 to vector<32x128xf32>
      %423 = arith.maximumf %421, %422 : vector<32x128xf32>
      %424 = vector.broadcast %144 : f32 to vector<32x128xf32>
      %425 = arith.mulf %423, %424 : vector<32x128xf32>
      %426 = arith.addf %366, %425 : vector<32x128xf32>
      %427 = vector.broadcast %51 : f32 to vector<32x128xf32>
      %428 = arith.mulf %167, %427 : vector<32x128xf32>
      %429 = vector.broadcast %52 : f32 to vector<32x128xf32>
      %430 = arith.mulf %171, %429 : vector<32x128xf32>
      %431 = arith.addf %428, %430 : vector<32x128xf32>
      %432 = vector.broadcast %53 : f32 to vector<32x128xf32>
      %433 = arith.mulf %175, %432 : vector<32x128xf32>
      %434 = arith.addf %431, %433 : vector<32x128xf32>
      %435 = vector.broadcast %113 : f32 to vector<32x128xf32>
      %436 = arith.addf %434, %435 : vector<32x128xf32>
      %cst_251 = arith.constant 0.000000e+00 : f32
      %437 = vector.broadcast %cst_251 : f32 to vector<32x128xf32>
      %438 = arith.maximumf %436, %437 : vector<32x128xf32>
      %439 = vector.broadcast %145 : f32 to vector<32x128xf32>
      %440 = arith.mulf %438, %439 : vector<32x128xf32>
      %441 = arith.addf %381, %440 : vector<32x128xf32>
      %442 = vector.broadcast %54 : f32 to vector<32x128xf32>
      %443 = arith.mulf %167, %442 : vector<32x128xf32>
      %444 = vector.broadcast %55 : f32 to vector<32x128xf32>
      %445 = arith.mulf %171, %444 : vector<32x128xf32>
      %446 = arith.addf %443, %445 : vector<32x128xf32>
      %447 = vector.broadcast %56 : f32 to vector<32x128xf32>
      %448 = arith.mulf %175, %447 : vector<32x128xf32>
      %449 = arith.addf %446, %448 : vector<32x128xf32>
      %450 = vector.broadcast %114 : f32 to vector<32x128xf32>
      %451 = arith.addf %449, %450 : vector<32x128xf32>
      %cst_252 = arith.constant 0.000000e+00 : f32
      %452 = vector.broadcast %cst_252 : f32 to vector<32x128xf32>
      %453 = arith.maximumf %451, %452 : vector<32x128xf32>
      %454 = vector.broadcast %146 : f32 to vector<32x128xf32>
      %455 = arith.mulf %453, %454 : vector<32x128xf32>
      %456 = arith.addf %396, %455 : vector<32x128xf32>
      %457 = vector.broadcast %57 : f32 to vector<32x128xf32>
      %458 = arith.mulf %167, %457 : vector<32x128xf32>
      %459 = vector.broadcast %58 : f32 to vector<32x128xf32>
      %460 = arith.mulf %171, %459 : vector<32x128xf32>
      %461 = arith.addf %458, %460 : vector<32x128xf32>
      %462 = vector.broadcast %59 : f32 to vector<32x128xf32>
      %463 = arith.mulf %175, %462 : vector<32x128xf32>
      %464 = arith.addf %461, %463 : vector<32x128xf32>
      %465 = vector.broadcast %115 : f32 to vector<32x128xf32>
      %466 = arith.addf %464, %465 : vector<32x128xf32>
      %cst_253 = arith.constant 0.000000e+00 : f32
      %467 = vector.broadcast %cst_253 : f32 to vector<32x128xf32>
      %468 = arith.maximumf %466, %467 : vector<32x128xf32>
      %469 = vector.broadcast %147 : f32 to vector<32x128xf32>
      %470 = arith.mulf %468, %469 : vector<32x128xf32>
      %471 = arith.addf %411, %470 : vector<32x128xf32>
      %472 = vector.broadcast %60 : f32 to vector<32x128xf32>
      %473 = arith.mulf %167, %472 : vector<32x128xf32>
      %474 = vector.broadcast %61 : f32 to vector<32x128xf32>
      %475 = arith.mulf %171, %474 : vector<32x128xf32>
      %476 = arith.addf %473, %475 : vector<32x128xf32>
      %477 = vector.broadcast %62 : f32 to vector<32x128xf32>
      %478 = arith.mulf %175, %477 : vector<32x128xf32>
      %479 = arith.addf %476, %478 : vector<32x128xf32>
      %480 = vector.broadcast %116 : f32 to vector<32x128xf32>
      %481 = arith.addf %479, %480 : vector<32x128xf32>
      %cst_254 = arith.constant 0.000000e+00 : f32
      %482 = vector.broadcast %cst_254 : f32 to vector<32x128xf32>
      %483 = arith.maximumf %481, %482 : vector<32x128xf32>
      %484 = vector.broadcast %148 : f32 to vector<32x128xf32>
      %485 = arith.mulf %483, %484 : vector<32x128xf32>
      %486 = arith.addf %426, %485 : vector<32x128xf32>
      %487 = vector.broadcast %63 : f32 to vector<32x128xf32>
      %488 = arith.mulf %167, %487 : vector<32x128xf32>
      %489 = vector.broadcast %64 : f32 to vector<32x128xf32>
      %490 = arith.mulf %171, %489 : vector<32x128xf32>
      %491 = arith.addf %488, %490 : vector<32x128xf32>
      %492 = vector.broadcast %65 : f32 to vector<32x128xf32>
      %493 = arith.mulf %175, %492 : vector<32x128xf32>
      %494 = arith.addf %491, %493 : vector<32x128xf32>
      %495 = vector.broadcast %117 : f32 to vector<32x128xf32>
      %496 = arith.addf %494, %495 : vector<32x128xf32>
      %cst_255 = arith.constant 0.000000e+00 : f32
      %497 = vector.broadcast %cst_255 : f32 to vector<32x128xf32>
      %498 = arith.maximumf %496, %497 : vector<32x128xf32>
      %499 = vector.broadcast %149 : f32 to vector<32x128xf32>
      %500 = arith.mulf %498, %499 : vector<32x128xf32>
      %501 = arith.addf %441, %500 : vector<32x128xf32>
      %502 = vector.broadcast %66 : f32 to vector<32x128xf32>
      %503 = arith.mulf %167, %502 : vector<32x128xf32>
      %504 = vector.broadcast %67 : f32 to vector<32x128xf32>
      %505 = arith.mulf %171, %504 : vector<32x128xf32>
      %506 = arith.addf %503, %505 : vector<32x128xf32>
      %507 = vector.broadcast %68 : f32 to vector<32x128xf32>
      %508 = arith.mulf %175, %507 : vector<32x128xf32>
      %509 = arith.addf %506, %508 : vector<32x128xf32>
      %510 = vector.broadcast %118 : f32 to vector<32x128xf32>
      %511 = arith.addf %509, %510 : vector<32x128xf32>
      %cst_256 = arith.constant 0.000000e+00 : f32
      %512 = vector.broadcast %cst_256 : f32 to vector<32x128xf32>
      %513 = arith.maximumf %511, %512 : vector<32x128xf32>
      %514 = vector.broadcast %150 : f32 to vector<32x128xf32>
      %515 = arith.mulf %513, %514 : vector<32x128xf32>
      %516 = arith.addf %456, %515 : vector<32x128xf32>
      %517 = vector.broadcast %69 : f32 to vector<32x128xf32>
      %518 = arith.mulf %167, %517 : vector<32x128xf32>
      %519 = vector.broadcast %70 : f32 to vector<32x128xf32>
      %520 = arith.mulf %171, %519 : vector<32x128xf32>
      %521 = arith.addf %518, %520 : vector<32x128xf32>
      %522 = vector.broadcast %71 : f32 to vector<32x128xf32>
      %523 = arith.mulf %175, %522 : vector<32x128xf32>
      %524 = arith.addf %521, %523 : vector<32x128xf32>
      %525 = vector.broadcast %119 : f32 to vector<32x128xf32>
      %526 = arith.addf %524, %525 : vector<32x128xf32>
      %cst_257 = arith.constant 0.000000e+00 : f32
      %527 = vector.broadcast %cst_257 : f32 to vector<32x128xf32>
      %528 = arith.maximumf %526, %527 : vector<32x128xf32>
      %529 = vector.broadcast %151 : f32 to vector<32x128xf32>
      %530 = arith.mulf %528, %529 : vector<32x128xf32>
      %531 = arith.addf %471, %530 : vector<32x128xf32>
      %532 = vector.broadcast %72 : f32 to vector<32x128xf32>
      %533 = arith.mulf %167, %532 : vector<32x128xf32>
      %534 = vector.broadcast %73 : f32 to vector<32x128xf32>
      %535 = arith.mulf %171, %534 : vector<32x128xf32>
      %536 = arith.addf %533, %535 : vector<32x128xf32>
      %537 = vector.broadcast %74 : f32 to vector<32x128xf32>
      %538 = arith.mulf %175, %537 : vector<32x128xf32>
      %539 = arith.addf %536, %538 : vector<32x128xf32>
      %540 = vector.broadcast %120 : f32 to vector<32x128xf32>
      %541 = arith.addf %539, %540 : vector<32x128xf32>
      %cst_258 = arith.constant 0.000000e+00 : f32
      %542 = vector.broadcast %cst_258 : f32 to vector<32x128xf32>
      %543 = arith.maximumf %541, %542 : vector<32x128xf32>
      %544 = vector.broadcast %152 : f32 to vector<32x128xf32>
      %545 = arith.mulf %543, %544 : vector<32x128xf32>
      %546 = arith.addf %486, %545 : vector<32x128xf32>
      %547 = vector.broadcast %75 : f32 to vector<32x128xf32>
      %548 = arith.mulf %167, %547 : vector<32x128xf32>
      %549 = vector.broadcast %76 : f32 to vector<32x128xf32>
      %550 = arith.mulf %171, %549 : vector<32x128xf32>
      %551 = arith.addf %548, %550 : vector<32x128xf32>
      %552 = vector.broadcast %77 : f32 to vector<32x128xf32>
      %553 = arith.mulf %175, %552 : vector<32x128xf32>
      %554 = arith.addf %551, %553 : vector<32x128xf32>
      %555 = vector.broadcast %121 : f32 to vector<32x128xf32>
      %556 = arith.addf %554, %555 : vector<32x128xf32>
      %cst_259 = arith.constant 0.000000e+00 : f32
      %557 = vector.broadcast %cst_259 : f32 to vector<32x128xf32>
      %558 = arith.maximumf %556, %557 : vector<32x128xf32>
      %559 = vector.broadcast %153 : f32 to vector<32x128xf32>
      %560 = arith.mulf %558, %559 : vector<32x128xf32>
      %561 = arith.addf %501, %560 : vector<32x128xf32>
      %562 = vector.broadcast %78 : f32 to vector<32x128xf32>
      %563 = arith.mulf %167, %562 : vector<32x128xf32>
      %564 = vector.broadcast %79 : f32 to vector<32x128xf32>
      %565 = arith.mulf %171, %564 : vector<32x128xf32>
      %566 = arith.addf %563, %565 : vector<32x128xf32>
      %567 = vector.broadcast %80 : f32 to vector<32x128xf32>
      %568 = arith.mulf %175, %567 : vector<32x128xf32>
      %569 = arith.addf %566, %568 : vector<32x128xf32>
      %570 = vector.broadcast %122 : f32 to vector<32x128xf32>
      %571 = arith.addf %569, %570 : vector<32x128xf32>
      %cst_260 = arith.constant 0.000000e+00 : f32
      %572 = vector.broadcast %cst_260 : f32 to vector<32x128xf32>
      %573 = arith.maximumf %571, %572 : vector<32x128xf32>
      %574 = vector.broadcast %154 : f32 to vector<32x128xf32>
      %575 = arith.mulf %573, %574 : vector<32x128xf32>
      %576 = arith.addf %516, %575 : vector<32x128xf32>
      %577 = vector.broadcast %81 : f32 to vector<32x128xf32>
      %578 = arith.mulf %167, %577 : vector<32x128xf32>
      %579 = vector.broadcast %82 : f32 to vector<32x128xf32>
      %580 = arith.mulf %171, %579 : vector<32x128xf32>
      %581 = arith.addf %578, %580 : vector<32x128xf32>
      %582 = vector.broadcast %83 : f32 to vector<32x128xf32>
      %583 = arith.mulf %175, %582 : vector<32x128xf32>
      %584 = arith.addf %581, %583 : vector<32x128xf32>
      %585 = vector.broadcast %123 : f32 to vector<32x128xf32>
      %586 = arith.addf %584, %585 : vector<32x128xf32>
      %cst_261 = arith.constant 0.000000e+00 : f32
      %587 = vector.broadcast %cst_261 : f32 to vector<32x128xf32>
      %588 = arith.maximumf %586, %587 : vector<32x128xf32>
      %589 = vector.broadcast %155 : f32 to vector<32x128xf32>
      %590 = arith.mulf %588, %589 : vector<32x128xf32>
      %591 = arith.addf %531, %590 : vector<32x128xf32>
      %592 = vector.broadcast %84 : f32 to vector<32x128xf32>
      %593 = arith.mulf %167, %592 : vector<32x128xf32>
      %594 = vector.broadcast %85 : f32 to vector<32x128xf32>
      %595 = arith.mulf %171, %594 : vector<32x128xf32>
      %596 = arith.addf %593, %595 : vector<32x128xf32>
      %597 = vector.broadcast %86 : f32 to vector<32x128xf32>
      %598 = arith.mulf %175, %597 : vector<32x128xf32>
      %599 = arith.addf %596, %598 : vector<32x128xf32>
      %600 = vector.broadcast %124 : f32 to vector<32x128xf32>
      %601 = arith.addf %599, %600 : vector<32x128xf32>
      %cst_262 = arith.constant 0.000000e+00 : f32
      %602 = vector.broadcast %cst_262 : f32 to vector<32x128xf32>
      %603 = arith.maximumf %601, %602 : vector<32x128xf32>
      %604 = vector.broadcast %156 : f32 to vector<32x128xf32>
      %605 = arith.mulf %603, %604 : vector<32x128xf32>
      %606 = arith.addf %546, %605 : vector<32x128xf32>
      %607 = vector.broadcast %87 : f32 to vector<32x128xf32>
      %608 = arith.mulf %167, %607 : vector<32x128xf32>
      %609 = vector.broadcast %88 : f32 to vector<32x128xf32>
      %610 = arith.mulf %171, %609 : vector<32x128xf32>
      %611 = arith.addf %608, %610 : vector<32x128xf32>
      %612 = vector.broadcast %89 : f32 to vector<32x128xf32>
      %613 = arith.mulf %175, %612 : vector<32x128xf32>
      %614 = arith.addf %611, %613 : vector<32x128xf32>
      %615 = vector.broadcast %125 : f32 to vector<32x128xf32>
      %616 = arith.addf %614, %615 : vector<32x128xf32>
      %cst_263 = arith.constant 0.000000e+00 : f32
      %617 = vector.broadcast %cst_263 : f32 to vector<32x128xf32>
      %618 = arith.maximumf %616, %617 : vector<32x128xf32>
      %619 = vector.broadcast %157 : f32 to vector<32x128xf32>
      %620 = arith.mulf %618, %619 : vector<32x128xf32>
      %621 = arith.addf %561, %620 : vector<32x128xf32>
      %622 = vector.broadcast %90 : f32 to vector<32x128xf32>
      %623 = arith.mulf %167, %622 : vector<32x128xf32>
      %624 = vector.broadcast %91 : f32 to vector<32x128xf32>
      %625 = arith.mulf %171, %624 : vector<32x128xf32>
      %626 = arith.addf %623, %625 : vector<32x128xf32>
      %627 = vector.broadcast %92 : f32 to vector<32x128xf32>
      %628 = arith.mulf %175, %627 : vector<32x128xf32>
      %629 = arith.addf %626, %628 : vector<32x128xf32>
      %630 = vector.broadcast %126 : f32 to vector<32x128xf32>
      %631 = arith.addf %629, %630 : vector<32x128xf32>
      %cst_264 = arith.constant 0.000000e+00 : f32
      %632 = vector.broadcast %cst_264 : f32 to vector<32x128xf32>
      %633 = arith.maximumf %631, %632 : vector<32x128xf32>
      %634 = vector.broadcast %158 : f32 to vector<32x128xf32>
      %635 = arith.mulf %633, %634 : vector<32x128xf32>
      %636 = arith.addf %576, %635 : vector<32x128xf32>
      %637 = vector.broadcast %93 : f32 to vector<32x128xf32>
      %638 = arith.mulf %167, %637 : vector<32x128xf32>
      %639 = vector.broadcast %94 : f32 to vector<32x128xf32>
      %640 = arith.mulf %171, %639 : vector<32x128xf32>
      %641 = arith.addf %638, %640 : vector<32x128xf32>
      %642 = vector.broadcast %95 : f32 to vector<32x128xf32>
      %643 = arith.mulf %175, %642 : vector<32x128xf32>
      %644 = arith.addf %641, %643 : vector<32x128xf32>
      %645 = vector.broadcast %127 : f32 to vector<32x128xf32>
      %646 = arith.addf %644, %645 : vector<32x128xf32>
      %cst_265 = arith.constant 0.000000e+00 : f32
      %647 = vector.broadcast %cst_265 : f32 to vector<32x128xf32>
      %648 = arith.maximumf %646, %647 : vector<32x128xf32>
      %649 = vector.broadcast %159 : f32 to vector<32x128xf32>
      %650 = arith.mulf %648, %649 : vector<32x128xf32>
      %651 = arith.addf %591, %650 : vector<32x128xf32>
      %652 = arith.addf %606, %621 : vector<32x128xf32>
      %653 = arith.addf %636, %651 : vector<32x128xf32>
      %654 = arith.addf %652, %653 : vector<32x128xf32>
      %655 = vector.broadcast %160 : f32 to vector<32x128xf32>
      %656 = arith.addf %654, %655 : vector<32x128xf32>
      %cst_266 = arith.constant 0.000000e+00 : f32
      %657 = vector.broadcast %cst_266 : f32 to vector<32x128xf32>
      %658 = arith.cmpf ogt, %656, %657 : vector<32x128xf32>
      %659 = arith.extui %658 : vector<32x128xi1> to vector<32x128xi8>
      %c0_267 = arith.constant 0 : index
      %660 = arith.index_cast %163 : i32 to index
      %c0_268 = arith.constant 0 : index
      %661 = vector.load %arg6[%c0_267, %660, %c0_268] : memref<1x224x128xi8, #tpu.memory_space<vmem>>, vector<1x32x128xi8>
      %662 = vector.shape_cast %661 : vector<1x32x128xi8> to vector<32x128xi8>
      %663 = vector.shape_cast %659 : vector<32x128xi8> to vector<1x32x128xi8>
      tpu.vector_store %arg6[%c0_267, %660, %c0_268], %663 {strides = array<i32>} : memref<1x224x128xi8, #tpu.memory_space<vmem>>, vector<1x32x128xi8>,
    }
    %c7_i32_225 = arith.constant 7 : i32
    return
  }
  func.func @transform_0(%arg0: i32) -> (i32, i32, i32, i32) {
    %c0_i32 = arith.constant 0 : i32
    %c0_i32_0 = arith.constant 0 : i32
    %c0_i32_1 = arith.constant 0 : i32
    %c0_i32_2 = arith.constant 0 : i32
    return %c0_i32, %arg0, %c0_i32_0, %c0_i32_1 : i32, i32, i32, i32
  }
  func.func @transform_1(%arg0: i32) -> (i32, i32) {
    %c0_i32 = arith.constant 0 : i32
    %c0_i32_0 = arith.constant 0 : i32
    %c0_i32_1 = arith.constant 0 : i32
    return %c0_i32, %c0_i32_0 : i32, i32
  }
  func.func @transform_2(%arg0: i32) -> i32 {
    %c0_i32 = arith.constant 0 : i32
    %c0_i32_0 = arith.constant 0 : i32
    return %c0_i32 : i32
  }
  func.func @transform_3(%arg0: i32) -> i32 {
    %c0_i32 = arith.constant 0 : i32
    %c0_i32_0 = arith.constant 0 : i32
    return %c0_i32 : i32
  }
  func.func @transform_4(%arg0: i32) -> i32 {
    %c0_i32 = arith.constant 0 : i32
    %c0_i32_0 = arith.constant 0 : i32
    return %c0_i32 : i32
  }
  func.func @transform_5(%arg0: i32) -> (i32, i32, i32) {
    %c0_i32 = arith.constant 0 : i32
    %c0_i32_0 = arith.constant 0 : i32
    %c0_i32_1 = arith.constant 0 : i32
    return %arg0, %c0_i32, %c0_i32_0 : i32, i32, i32
  }
}

</mosaic_0001>

<bundles_post_ra>
// kernel: combined_model_forward.1
= control target key start
LH: loop header
LB: loop body
LE: loop exit
PB: predicated region body
PF: predicated region fallthrough
CT: control target
= control target key end

     0   :  { %s3971_s0 = inlined_call_operand.vmem [shape: u8[3,2,224,128], index: 0, kind: input, shape index: {}]   ;;  %s3972_s1 = inlined_call_operand.vmem [shape: f32[3,32], index: 1, kind: input, shape index: {}]   ;;  %s3973_s2 = inlined_call_operand.vmem [shape: f32[32], index: 2, kind: input, shape index: {}]   ;;  %s3974_s3 = inlined_call_operand.vmem [shape: f32[32], index: 3, kind: input, shape index: {}]   ;;  %s3975_s4 = inlined_call_operand.<no memory space> [shape: f32[1], index: 4, kind: input, shape index: {}]   ;;  %s3976_s5 = inlined_call_operand.vmem [shape: u8[2,224,128], index: 5, kind: output, shape index: {}]  }
   0x1   :  { %3983 = sst [smem:[#allocation154_spill]] %s3971_s0 }
   0x2   :  { %3984 = sst [smem:[#allocation155_spill]] %s3972_s1 }
   0x3   :  { %3985 = sst [smem:[#allocation156_spill]] %s3973_s2 }
   0x4   :  { %3986 = sst [smem:[#allocation157_spill]] %s3974_s3 }
   0x5   :  { %3987 = sst [smem:[#allocation158_spill]] %s3976_s5 }
   0x6   :  { %10 = sst [smem:[#allocation2]] %s3975_s4 }
   0x7   :  { %11 = vsyncpa [#allocation5], 0 }
   0x8   :  { %12 = vsyncpa [#allocation7], 0  ;;  %s2417_s20 = smov 0   ;;  %s2419_s21 = smov 0  }
   0x9   :  { %s2421_s22 = smov 0  }
   0xa LB: > { %3988 = sst [smem:[#allocation11_spill]] %s2370_s21  ;;  %s2433_s4 = sadd.s32 4294967295, %s2374_s22   ;;  %s2374_s22 = sphi %s2421_s22, %s4287_s22   ;;  %s2370_s21 = sphi %s2419_s21, %s4289_s21   ;;  %s2366_s20 = sphi %s2417_s20, %s4288_s20  }
   0xb   : > { %s2436_s23 = sadd.s32 1, %s2374_s22   ;;  %s25_s25 = sadd.s32 1, %s2370_s21 }
   0xc   : > { %3989 = sst [smem:[#allocation12_spill]] %s2436_s23  ;;  %s22_s24 = ssub.s32 %s2374_s22, %s2436_s23 }
   0xd   : > { %p23_p0 = scmp.eq.s32.totalorder %s22_s24, 0  ;;  %p32_p1 = scmp.ne.s32.totalorder %s2370_s21, %s2366_s20 }
   0xe   : > { %p33_p2 = scmp.eq.s32.totalorder %s2374_s22, 0  ;;  %p2050_p3 = scmp.ge.s32.totalorder %s2374_s22, 1 }
   0xf   : > { %s2446_s26 = scalar_select %p23_p0, %s2370_s21, %s25_s25  }
  0x10   : > { %p2448_p4 = por %p33_p2, %p32_p1  ;;  %p159_p5 = scmp.lt.s32.totalorder %s2374_s22, 3 }
  0x11   : > { %3990 = sst [smem:[#allocation13_spill]] %s2446_s26  ;;  %p3977_p6 = scmp.eq.s32.totalorder %s2433_s4, 0 }
  0x12   : > { %s3991_s27 = scalar_select %p2448_p4, 1, 0 }
  0x13   : > { %p2454_p7 = pnand %p2050_p3, %p159_p5  ;;  %s3993_s2 = sld [smem:[#allocation156_spill]] }
  0x14   : > { %s3994_s1 = sld [smem:[#allocation155_spill]] }
  0x15   : > { %s3992_s28 = scalar_select %p2454_p7, 1, 0 }
  0x16   : > { %p2243_p8 = pneg %p2454_p7  ;;  %s3996_s3 = sld [smem:[#allocation157_spill]] }
  0x18   : > { %p2468_p9 = pnand %p3977_p6, %p2243_p8 }
  0x19   : > { %s183_s6 = sshll.u32 %s3993_s2, 4  ;;  %s184_s6 = int_to_ptr.vmem [resolvable:$true] %s183_s6 }
  0x1a   : > { %s172_s9 = sshll.u32 %s3994_s1, 4  ;;  %s2295_s14 = scalar_lea.vmem %s184_s6, 16  ;;  %s173_s9 = int_to_ptr.vmem [resolvable:$true] %s172_s9 }
  0x1b   : > { %p2296_p10 = scmp.ne.s32.totalorder %s184_s6, %s2295_s14  ;;  %p2297_p11 = pneg %p2468_p9 }
  0x1c   : > { %s194_s13 = sshll.u32 %s3996_s3, 4  ;;  %p2303_p0 = scmp.lt.s32.totalorder %s184_s6, %s184_s6  ;;  %s2475_s13 = int_to_ptr.vmem [resolvable:$true] %s194_s13 }
  0x1d   : > { %p2298_p12 = pnand %p2297_p11, %p2296_p10  ;;  %p2304_p1 = scmp.lt.s32.totalorder %s2295_s14, %s2295_s14 }
  0x1f   : > { %p2299_p13 = pneg %p2298_p12  ;;  %p2305_p2 = por %p2304_p1, %p2303_p0 }
  0x21   : > { %p2306_p3 = pnand %p2305_p2, %p2299_p13 }
  0x23   : > { %2309 = shalt.err (!%p2306_p3)
}
  0x24   : > { %s2380_s15 = smov [#allocation6]   ;;  %s2310_s16 = scalar_lea.vmem %s173_s9, 64 }
  0x25   : > { %2249 = dma.vmem_to_smem (!%p2468_p9), %s184_s6, 16, %s2380_s15, [#allocation7]  }
  0x26   : > { %p2311_p5 = scmp.ne.s32.totalorder %s173_s9, %s2310_s16  ;;  %p2318_p7 = scmp.lt.s32.totalorder %s173_s9, %s173_s9 }
  0x27   : > { %p2319_p4 = scmp.lt.s32.totalorder %s2310_s16, %s2310_s16 }
  0x28   : > { %p2313_p8 = pnand %p2311_p5, %p2297_p11 }
  0x29   : > { %p2320_p10 = por %p2319_p4, %p2318_p7 }
  0x2a   : > { %p2314_p6 = pneg %p2313_p8 }
  0x2c   : > { %p2321_p12 = pnand %p2320_p10, %p2314_p6 }
  0x2e   : > { %2324 = shalt.err (!%p2321_p12)
}
  0x2f   : > { %s2381_s17 = smov [#allocation4]   ;;  %s2325_s18 = scalar_lea.vmem %s2475_s13, 16 }
  0x30   : > { %2246 = dma.vmem_to_smem (!%p2468_p9), %s173_s9, 64, %s2381_s17, [#allocation5]  }
  0x31   : > { %p2326_p13 = scmp.ne.s32.totalorder %s2475_s13, %s2325_s18  ;;  %p2333_p2 = scmp.lt.s32.totalorder %s2475_s13, %s2475_s13 }
  0x32   : > { %p2334_p3 = scmp.lt.s32.totalorder %s2325_s18, %s2325_s18 }
  0x33   : > { %p2328_p0 = pnand %p2326_p13, %p2297_p11 }
  0x34   : > { %p2335_p4 = por %p2334_p3, %p2333_p2 }
  0x35   : > { %p2329_p1 = pneg %p2328_p0 }
  0x37   : > { %p2336_p6 = pnand %p2335_p4, %p2329_p1 }
  0x39   : > { %2339 = shalt.err (!%p2336_p6)
}
  0x3a   : > { %s2382_s19 = smov [#allocation8]   ;;  %p2054_p7 = scmp.ge.s32.totalorder %s2374_s22, 2 }
  0x3b   : > { %2252 = dma.vmem_to_smem (!%p2468_p9), %s2475_s13, 16, %s2382_s19, [#allocation7]  }
  0x3c   : > { %204 = sbr.rel (%p2054_p7) target bundleno = 85 (0x55), region = 32  ;;  %p3997_p5 = scmp.ne.s32.totalorder (!%p2054_p7), %s3991_s27, 0 }
  0x41   : > { %207 = sbr.rel (!%p3997_p5) target bundleno = 85 (0x55), region = 36  ;;  %s209_s24 = sand.u32 (%p3997_p5), 1, %s2370_s21  }
  0x42   : > { %s2228_s25 = smul.u32 (%p3997_p5), 56, %s2374_s22  ;;  %s3998_s0 = sld [smem:[#allocation154_spill]] (%p3997_p5) }
  0x43   : > { %s2227_s29 = smul.u32 (%p3997_p5), 168, %s209_s24 }
  0x45   : > { %s2512_s27 = scalar_lea.vmem (%p3997_p5), [#allocation3], %s2227_s29 }
  0x48   : > { %s2507_s7 = scalar_lea.vmem %s3998_s0, %s2228_s25 }
  0x49   : > { %v283_v0 = vld [vmem:[%s2507_s7] sm:$0xff]  ;;  %v285_v1 = vld [vmem:[%s2507_s7 + $0x8] sm:$0xff]  ;;  %v287_v2 = vld [vmem:[%s2507_s7 + $0x10] sm:$0xff] }
  0x4a   : > { %284 = vst [vmem:[%s2512_s27] sm:$0xff] %v283_v0  ;;  %286 = vst [vmem:[%s2512_s27 + $0x8] sm:$0xff] %v285_v1  ;;  %v289_v3 = vld [vmem:[%s2507_s7 + $0x18] sm:$0xff]  ;;  %v291_v4 = vld [vmem:[%s2507_s7 + $0x20] sm:$0xff] }
  0x4b   : > { %288 = vst [vmem:[%s2512_s27 + $0x10] sm:$0xff] %v287_v2  ;;  %v293_v5 = vld [vmem:[%s2507_s7 + $0x28] sm:$0xff]  ;;  %290 = vst [vmem:[%s2512_s27 + $0x18] sm:$0xff] %v289_v3  ;;  %v295_v6 = vld [vmem:[%s2507_s7 + $0x30] sm:$0xff] }
  0x4c   : > { %292 = vst [vmem:[%s2512_s27 + $0x20] sm:$0xff] %v291_v4  ;;  %294 = vst [vmem:[%s2512_s27 + $0x28] sm:$0xff] %v293_v5  ;;  %v297_v7 = vld [vmem:[%s2507_s7 + $0x70] sm:$0xff]  ;;  %v299_v8 = vld [vmem:[%s2507_s7 + $0x78] sm:$0xff] }
  0x4d   : > { %296 = vst [vmem:[%s2512_s27 + $0x30] sm:$0xff] %v295_v6  ;;  %298 = vst [vmem:[%s2512_s27 + $0x38] sm:$0xff] %v297_v7  ;;  %v301_v9 = vld [vmem:[%s2507_s7 + $0x80] sm:$0xff]  ;;  %v303_v10 = vld [vmem:[%s2507_s7 + $0x88] sm:$0xff] }
  0x4e   : > { %300 = vst [vmem:[%s2512_s27 + $0x40] sm:$0xff] %v299_v8  ;;  %v305_v11 = vld [vmem:[%s2507_s7 + $0x90] sm:$0xff]  ;;  %302 = vst [vmem:[%s2512_s27 + $0x48] sm:$0xff] %v301_v9  ;;  %v307_v12 = vld [vmem:[%s2507_s7 + $0x98] sm:$0xff] }
  0x4f   : > { %304 = vst [vmem:[%s2512_s27 + $0x50] sm:$0xff] %v303_v10  ;;  %306 = vst [vmem:[%s2512_s27 + $0x58] sm:$0xff] %v305_v11  ;;  %v309_v13 = vld [vmem:[%s2507_s7 + $0xa0] sm:$0xff]  ;;  %v313_v15 = vld [vmem:[%s2507_s7 + $0xe8] sm:$0xff] }
  0x50   : > { %v311_v14 = vld [vmem:[%s2507_s7 + $0xe0] sm:$0xff]  ;;  %308 = vst [vmem:[%s2512_s27 + $0x60] sm:$0xff] %v307_v12  ;;  %310 = vst [vmem:[%s2512_s27 + $0x68] sm:$0xff] %v309_v13  ;;  %v315_v16 = vld [vmem:[%s2507_s7 + $0xf0] sm:$0xff] }
  0x51   : > { %312 = vst [vmem:[%s2512_s27 + $0x70] sm:$0xff] %v311_v14  ;;  %v317_v17 = vld [vmem:[%s2507_s7 + $0xf8] sm:$0xff]  ;;  %314 = vst [vmem:[%s2512_s27 + $0x78] sm:$0xff] %v313_v15  ;;  %v319_v18 = vld [vmem:[%s2507_s7 + $0x100] sm:$0xff] }
  0x52   : > { %316 = vst [vmem:[%s2512_s27 + $0x80] sm:$0xff] %v315_v16  ;;  %318 = vst [vmem:[%s2512_s27 + $0x88] sm:$0xff] %v317_v17  ;;  %v321_v19 = vld [vmem:[%s2507_s7 + $0x108] sm:$0xff]  ;;  %v323_v20 = vld [vmem:[%s2507_s7 + $0x110] sm:$0xff] }
  0x53   : > { %320 = vst [vmem:[%s2512_s27 + $0x90] sm:$0xff] %v319_v18  ;;  %322 = vst [vmem:[%s2512_s27 + $0x98] sm:$0xff] %v321_v19 }
  0x54   : > { %324 = vst [vmem:[%s2512_s27 + $0xa0] sm:$0xff] %v323_v20 }
  0x55 PF: > { %p3999_p9 = scmp.ne.s32.totalorder %s3992_s28, 0 }
  0x56   : > { %s336_s22 = sand.u32 (!%p3999_p9), 1, %s2366_s20   ;;  %p4000_p11 = scmp.eq.s32.totalorder (!%p3999_p9), %s2433_s4, 0 }
  0x57   : > { %333 = sbr.rel (%p3999_p9) target bundleno = 758 (0x2f6), region = 74 }
  0x58   : > { %s2556_s8 = smul.u32 (!%p3999_p9), 168, %s336_s22 }
  0x5c   : > { %2357 = dma.done.wait (%p4000_p11), [#allocation5], 64   ;;  %p4001_p8 = pmov %p4000_p11 }
  0x5e   : > { %2359 = vsyncadd (%p4001_p8), [#allocation5], 4294967232  ;;  %p4002_p10 = pmov %p4001_p8 }
  0x5f   : > { %p4003_p12 = pmov %p4001_p8 }
  0x60   : > { %2361 = dma.done.wait (%p4002_p10), [#allocation7], 32  }
  0x61   : > { %2363 = vsyncadd (%p4003_p12), [#allocation7], 4294967264 }
  0x62   : > { %354 = sfence }
  0x63   : > { %p376_p13 = scmp.lt.s32.totalorder %s2433_s4, 1  ;;  %s2568_s20 = sld [smem:[#allocation4]] }
  0x64   : > { %s2570_s28 = sld [smem:[#allocation4 + $0x80]] }
  0x65   : > { %s4291_s4 = smov (!%p376_p13, %s2433_s4), 1  ;;  %s2573_s10 = sld [smem:[#allocation4 + $0x100]] }
  0x66   : > { %s2230_s11 = smul.u32 56, %s4291_s4  ;;  %s2575_s12 = sld [smem:[#allocation4 + $0x1]] }
  0x67   : > { %s2577_s13 = sld [smem:[#allocation4 + $0x81]] }
  0x68   : > { %s4004_s5 = sld [smem:[#allocation158_spill]] }
  0x69   : > { %s2584_s17 = sld [smem:[#allocation4 + $0x101]] }
  0x6a   : > { %s2586_s18 = sld [smem:[#allocation4 + $0x2]] }
  0x6b   : > { %s2588_s19 = sld [smem:[#allocation4 + $0x82]] }
  0x6c   : > { %s2590_s24 = sld [smem:[#allocation4 + $0x102]] }
  0x6d   : > { %s2592_s25 = sld [smem:[#allocation4 + $0x3]] }
  0x6e   : > { %s2582_s16 = scalar_lea.vmem %s4004_s5, %s2230_s11  ;;  %s2594_s4 = sld [smem:[#allocation4 + $0x83]] }
  0x6f   : > { %4005 = sst [smem:[#allocation14_spill]] %s2582_s16 }
  0x70   : > { %s2596_s29 = sld [smem:[#allocation4 + $0x103]] }
  0x71   : > { %s2598_s30 = sld [smem:[#allocation4 + $0x4]] }
  0x72   : > { %s2600_s6 = sld [smem:[#allocation4 + $0x84]] }
  0x73   : > { %s2602_s7 = sld [smem:[#allocation4 + $0x104]] }
  0x74   : > { %s2604_s27 = sld [smem:[#allocation4 + $0x5]] }
  0x75   : > { %s2606_s22 = sld [smem:[#allocation4 + $0x85]] }
  0x76   : > { %s2608_s11 = sld [smem:[#allocation4 + $0x105]] }
  0x77   : > { %4006 = sst [smem:[#allocation15_spill]] %s2598_s30 }
  0x78   : > { %4007 = sst [smem:[#allocation16_spill]] %s2600_s6 }
  0x79   : > { %4008 = sst [smem:[#allocation17_spill]] %s2602_s7 }
  0x7a   : > { %4009 = sst [smem:[#allocation18_spill]] %s2604_s27 }
  0x7b   : > { %4010 = sst [smem:[#allocation19_spill]] %s2606_s22 }
  0x7c   : > { %4011 = sst [smem:[#allocation20_spill]] %s2608_s11 }
  0x7d   : > { %s2610_s14 = sld [smem:[#allocation4 + $0x6]] }
  0x7e   : > { %s2612_s15 = sld [smem:[#allocation4 + $0x86]] }
  0x7f   : > { %s2614_s9 = sld [smem:[#allocation4 + $0x106]] }
  0x80   : > { %s2616_s0 = sld [smem:[#allocation4 + $0x7]] }
  0x81   : > { %s2618_s1 = sld [smem:[#allocation4 + $0x87]] }
  0x82   : > { %s2620_s2 = sld [smem:[#allocation4 + $0x107]] }
  0x83   : > { %4012 = sst [smem:[#allocation21_spill]] %s2610_s14 }
  0x84   : > { %4013 = sst [smem:[#allocation22_spill]] %s2612_s15 }
  0x85   : > { %4014 = sst [smem:[#allocation23_spill]] %s2614_s9 }
  0x86   : > { %4015 = sst [smem:[#allocation24_spill]] %s2616_s0 }
  0x87   : > { %4016 = sst [smem:[#allocation25_spill]] %s2618_s1 }
  0x88   : > { %4017 = sst [smem:[#allocation26_spill]] %s2620_s2 }
  0x89   : > { %s2622_s3 = sld [smem:[#allocation4 + $0x8]] }
  0x8a   : > { %s2624_s5 = sld [smem:[#allocation4 + $0x88]] }
  0x8b   : > { %s2626_s26 = sld [smem:[#allocation4 + $0x108]] }
  0x8c   : > { %s2628_s21 = sld [smem:[#allocation4 + $0x9]] }
  0x8d   : > { %s2630_s23 = sld [smem:[#allocation4 + $0x89]] }
  0x8e   : > { %s2632_s16 = sld [smem:[#allocation4 + $0x109]] }
  0x8f   : > { %4018 = sst [smem:[#allocation27_spill]] %s2622_s3 }
  0x90   : > { %4019 = sst [smem:[#allocation28_spill]] %s2624_s5 }
  0x91   : > { %4020 = sst [smem:[#allocation29_spill]] %s2626_s26 }
  0x92   : > { %4021 = sst [smem:[#allocation30_spill]] %s2628_s21 }
  0x93   : > { %4022 = sst [smem:[#allocation31_spill]] %s2630_s23 }
  0x94   : > { %4023 = sst [smem:[#allocation32_spill]] %s2632_s16 }
  0x95   : > { %s2634_s15 = sld [smem:[#allocation4 + $0xa]] }
  0x96   : > { %s2636_s9 = sld [smem:[#allocation4 + $0x8a]] }
  0x97   : > { %s2638_s0 = sld [smem:[#allocation4 + $0x10a]] }
  0x98   : > { %s2640_s1 = sld [smem:[#allocation4 + $0xb]] }
  0x99   : > { %s2642_s2 = sld [smem:[#allocation4 + $0x8b]] }
  0x9a   : > { %s2644_s3 = sld [smem:[#allocation4 + $0x10b]] }
  0x9b   : > { %4024 = sst [smem:[#allocation33_spill]] %s2634_s15 }
  0x9c   : > { %4025 = sst [smem:[#allocation34_spill]] %s2636_s9 }
  0x9d   : > { %4026 = sst [smem:[#allocation35_spill]] %s2638_s0 }
  0x9e   : > { %4027 = sst [smem:[#allocation36_spill]] %s2640_s1 }
  0x9f   : > { %4028 = sst [smem:[#allocation37_spill]] %s2642_s2 }
  0xa0   : > { %4029 = sst [smem:[#allocation38_spill]] %s2644_s3 }
  0xa1   : > { %s2646_s5 = sld [smem:[#allocation4 + $0xc]] }
  0xa2   : > { %s2648_s26 = sld [smem:[#allocation4 + $0x8c]] }
  0xa3   : > { %s2650_s21 = sld [smem:[#allocation4 + $0x10c]] }
  0xa4   : > { %s2652_s23 = sld [smem:[#allocation4 + $0xd]] }
  0xa5   : > { %s2654_s16 = sld [smem:[#allocation4 + $0x8d]] }
  0xa6   : > { %s2656_s15 = sld [smem:[#allocation4 + $0x10d]] }
  0xa7   : > { %4030 = sst [smem:[#allocation39_spill]] %s2646_s5 }
  0xa8   : > { %4031 = sst [smem:[#allocation40_spill]] %s2648_s26 }
  0xa9   : > { %4032 = sst [smem:[#allocation41_spill]] %s2650_s21 }
  0xaa   : > { %4033 = sst [smem:[#allocation42_spill]] %s2652_s23 }
  0xab   : > { %4034 = sst [smem:[#allocation43_spill]] %s2654_s16 }
  0xac   : > { %4035 = sst [smem:[#allocation44_spill]] %s2656_s15 }
  0xad   : > { %s2658_s9 = sld [smem:[#allocation4 + $0xe]] }
  0xae   : > { %s2660_s0 = sld [smem:[#allocation4 + $0x8e]] }
  0xaf   : > { %s2662_s1 = sld [smem:[#allocation4 + $0x10e]] }
  0xb0   : > { %s2664_s2 = sld [smem:[#allocation4 + $0xf]] }
  0xb1   : > { %s2666_s3 = sld [smem:[#allocation4 + $0x8f]] }
  0xb2   : > { %s2668_s5 = sld [smem:[#allocation4 + $0x10f]] }
  0xb3   : > { %4036 = sst [smem:[#allocation45_spill]] %s2658_s9 }
  0xb4   : > { %4037 = sst [smem:[#allocation46_spill]] %s2660_s0 }
  0xb5   : > { %4038 = sst [smem:[#allocation47_spill]] %s2662_s1 }
  0xb6   : > { %4039 = sst [smem:[#allocation48_spill]] %s2664_s2 }
  0xb7   : > { %4040 = sst [smem:[#allocation49_spill]] %s2666_s3 }
  0xb8   : > { %4041 = sst [smem:[#allocation50_spill]] %s2668_s5 }
  0xb9   : > { %s2670_s26 = sld [smem:[#allocation4 + $0x10]] }
  0xba   : > { %s2672_s21 = sld [smem:[#allocation4 + $0x90]] }
  0xbb   : > { %s2674_s23 = sld [smem:[#allocation4 + $0x110]] }
  0xbc   : > { %s2676_s16 = sld [smem:[#allocation4 + $0x11]] }
  0xbd   : > { %s2678_s15 = sld [smem:[#allocation4 + $0x91]] }
  0xbe   : > { %s2680_s9 = sld [smem:[#allocation4 + $0x111]] }
  0xbf   : > { %4042 = sst [smem:[#allocation51_spill]] %s2670_s26 }
  0xc0   : > { %4043 = sst [smem:[#allocation52_spill]] %s2672_s21 }
  0xc1   : > { %4044 = sst [smem:[#allocation53_spill]] %s2674_s23 }
  0xc2   : > { %4045 = sst [smem:[#allocation54_spill]] %s2676_s16 }
  0xc3   : > { %4046 = sst [smem:[#allocation55_spill]] %s2678_s15 }
  0xc4   : > { %4047 = sst [smem:[#allocation56_spill]] %s2680_s9 }
  0xc5   : > { %s2682_s0 = sld [smem:[#allocation4 + $0x12]] }
  0xc6   : > { %s2684_s1 = sld [smem:[#allocation4 + $0x92]] }
  0xc7   : > { %s2686_s2 = sld [smem:[#allocation4 + $0x112]] }
  0xc8   : > { %s2688_s3 = sld [smem:[#allocation4 + $0x13]] }
  0xc9   : > { %s2690_s5 = sld [smem:[#allocation4 + $0x93]] }
  0xca   : > { %s2692_s26 = sld [smem:[#allocation4 + $0x113]] }
  0xcb   : > { %4048 = sst [smem:[#allocation57_spill]] %s2682_s0 }
  0xcc   : > { %4049 = sst [smem:[#allocation58_spill]] %s2684_s1 }
  0xcd   : > { %4050 = sst [smem:[#allocation59_spill]] %s2686_s2 }
  0xce   : > { %4051 = sst [smem:[#allocation60_spill]] %s2688_s3 }
  0xcf   : > { %4052 = sst [smem:[#allocation61_spill]] %s2690_s5 }
  0xd0   : > { %4053 = sst [smem:[#allocation62_spill]] %s2692_s26 }
  0xd1   : > { %s2694_s21 = sld [smem:[#allocation4 + $0x14]] }
  0xd2   : > { %s2696_s23 = sld [smem:[#allocation4 + $0x94]] }
  0xd3   : > { %s2698_s16 = sld [smem:[#allocation4 + $0x114]] }
  0xd4   : > { %s2700_s15 = sld [smem:[#allocation4 + $0x15]] }
  0xd5   : > { %s2702_s9 = sld [smem:[#allocation4 + $0x95]] }
  0xd6   : > { %s2704_s0 = sld [smem:[#allocation4 + $0x115]] }
  0xd7   : > { %4054 = sst [smem:[#allocation63_spill]] %s2694_s21 }
  0xd8   : > { %4055 = sst [smem:[#allocation64_spill]] %s2696_s23 }
  0xd9   : > { %4056 = sst [smem:[#allocation65_spill]] %s2698_s16 }
  0xda   : > { %4057 = sst [smem:[#allocation66_spill]] %s2700_s15 }
  0xdb   : > { %4058 = sst [smem:[#allocation67_spill]] %s2702_s9 }
  0xdc   : > { %4059 = sst [smem:[#allocation68_spill]] %s2704_s0 }
  0xdd   : > { %s2706_s1 = sld [smem:[#allocation4 + $0x16]] }
  0xde   : > { %s2708_s2 = sld [smem:[#allocation4 + $0x96]] }
  0xdf   : > { %s2710_s3 = sld [smem:[#allocation4 + $0x116]] }
  0xe0   : > { %s2712_s5 = sld [smem:[#allocation4 + $0x17]] }
  0xe1   : > { %s2714_s26 = sld [smem:[#allocation4 + $0x97]] }
  0xe2   : > { %s2716_s21 = sld [smem:[#allocation4 + $0x117]] }
  0xe3   : > { %4060 = sst [smem:[#allocation69_spill]] %s2706_s1 }
  0xe4   : > { %4061 = sst [smem:[#allocation70_spill]] %s2708_s2 }
  0xe5   : > { %4062 = sst [smem:[#allocation71_spill]] %s2710_s3 }
  0xe6   : > { %4063 = sst [smem:[#allocation72_spill]] %s2712_s5 }
  0xe7   : > { %4064 = sst [smem:[#allocation73_spill]] %s2714_s26 }
  0xe8   : > { %4065 = sst [smem:[#allocation74_spill]] %s2716_s21 }
  0xe9   : > { %s2718_s23 = sld [smem:[#allocation4 + $0x18]] }
  0xea   : > { %s2720_s16 = sld [smem:[#allocation4 + $0x98]] }
  0xeb   : > { %s2722_s15 = sld [smem:[#allocation4 + $0x118]] }
  0xec   : > { %s2724_s9 = sld [smem:[#allocation4 + $0x19]] }
  0xed   : > { %s2726_s0 = sld [smem:[#allocation4 + $0x99]] }
  0xee   : > { %s2728_s1 = sld [smem:[#allocation4 + $0x119]] }
  0xef   : > { %4066 = sst [smem:[#allocation75_spill]] %s2718_s23 }
  0xf0   : > { %4067 = sst [smem:[#allocation76_spill]] %s2720_s16 }
  0xf1   : > { %4068 = sst [smem:[#allocation77_spill]] %s2722_s15 }
  0xf2   : > { %4069 = sst [smem:[#allocation78_spill]] %s2724_s9 }
  0xf3   : > { %4070 = sst [smem:[#allocation79_spill]] %s2726_s0 }
  0xf4   : > { %4071 = sst [smem:[#allocation80_spill]] %s2728_s1 }
  0xf5   : > { %s2730_s2 = sld [smem:[#allocation4 + $0x1a]] }
  0xf6   : > { %s2732_s3 = sld [smem:[#allocation4 + $0x9a]] }
  0xf7   : > { %s2734_s5 = sld [smem:[#allocation4 + $0x11a]] }
  0xf8   : > { %s2736_s26 = sld [smem:[#allocation4 + $0x1b]] }
  0xf9   : > { %s2738_s21 = sld [smem:[#allocation4 + $0x9b]] }
  0xfa   : > { %s2740_s23 = sld [smem:[#allocation4 + $0x11b]] }
  0xfb   : > { %4072 = sst [smem:[#allocation81_spill]] %s2730_s2 }
  0xfc   : > { %4073 = sst [smem:[#allocation82_spill]] %s2732_s3 }
  0xfd   : > { %4074 = sst [smem:[#allocation83_spill]] %s2734_s5 }
  0xfe   : > { %4075 = sst [smem:[#allocation84_spill]] %s2736_s26 }
  0xff   : > { %4076 = sst [smem:[#allocation85_spill]] %s2738_s21 }
 0x100   : > { %4077 = sst [smem:[#allocation86_spill]] %s2740_s23 }
 0x101   : > { %s2742_s16 = sld [smem:[#allocation4 + $0x1c]] }
 0x102   : > { %s2744_s15 = sld [smem:[#allocation4 + $0x9c]] }
 0x103   : > { %s2746_s9 = sld [smem:[#allocation4 + $0x11c]] }
 0x104   : > { %s2748_s0 = sld [smem:[#allocation4 + $0x1d]] }
 0x105   : > { %s2750_s1 = sld [smem:[#allocation4 + $0x9d]] }
 0x106   : > { %s2752_s2 = sld [smem:[#allocation4 + $0x11d]] }
 0x107   : > { %4078 = sst [smem:[#allocation87_spill]] %s2742_s16 }
 0x108   : > { %4079 = sst [smem:[#allocation88_spill]] %s2744_s15 }
 0x109   : > { %4080 = sst [smem:[#allocation89_spill]] %s2746_s9 }
 0x10a   : > { %4081 = sst [smem:[#allocation90_spill]] %s2748_s0 }
 0x10b   : > { %4082 = sst [smem:[#allocation91_spill]] %s2750_s1 }
 0x10c   : > { %4083 = sst [smem:[#allocation92_spill]] %s2752_s2 }
 0x10d   : > { %s2754_s3 = sld [smem:[#allocation4 + $0x1e]] }
 0x10e   : > { %s2756_s5 = sld [smem:[#allocation4 + $0x9e]] }
 0x10f   : > { %s2758_s26 = sld [smem:[#allocation4 + $0x11e]] }
 0x110   : > { %s2760_s21 = sld [smem:[#allocation4 + $0x1f]] }
 0x111   : > { %s2762_s23 = sld [smem:[#allocation4 + $0x9f]] }
 0x112   : > { %s2764_s16 = sld [smem:[#allocation4 + $0x11f]] }
 0x113   : > { %4084 = sst [smem:[#allocation93_spill]] %s2754_s3 }
 0x114   : > { %4085 = sst [smem:[#allocation94_spill]] %s2756_s5 }
 0x115   : > { %4086 = sst [smem:[#allocation95_spill]] %s2758_s26 }
 0x116   : > { %4087 = sst [smem:[#allocation96_spill]] %s2760_s21 }
 0x117   : > { %4088 = sst [smem:[#allocation97_spill]] %s2762_s23 }
 0x118   : > { %4089 = sst [smem:[#allocation98_spill]] %s2764_s16 }
 0x119   : > { %s2766_s15 = sld [smem:[#allocation6]] }
 0x11a   : > { %s2768_s9 = sld [smem:[#allocation6 + $0x1]] }
 0x11b   : > { %s2770_s0 = sld [smem:[#allocation6 + $0x2]] }
 0x11c   : > { %s2772_s1 = sld [smem:[#allocation6 + $0x3]] }
 0x11d   : > { %s2774_s2 = sld [smem:[#allocation6 + $0x4]] }
 0x11e   : > { %s2776_s3 = sld [smem:[#allocation6 + $0x5]] }
 0x11f   : > { %s2778_s5 = sld [smem:[#allocation6 + $0x6]] }
 0x120   : > { %s2780_s26 = sld [smem:[#allocation6 + $0x7]] }
 0x121   : > { %4090 = sst [smem:[#allocation99_spill]] %s2770_s0 }
 0x122   : > { %s2782_s21 = sld [smem:[#allocation6 + $0x8]] }
 0x123   : > { %4091 = sst [smem:[#allocation100_spill]] %s2774_s2 }
 0x124   : > { %4092 = sst [smem:[#allocation101_spill]] %s2776_s3 }
 0x125   : > { %4093 = sst [smem:[#allocation102_spill]] %s2778_s5 }
 0x126   : > { %4094 = sst [smem:[#allocation103_spill]] %s2780_s26 }
 0x127   : > { %s2784_s23 = sld [smem:[#allocation6 + $0x9]] }
 0x128   : > { %4095 = sst [smem:[#allocation104_spill]] %s2782_s21 }
 0x129   : > { %s2786_s16 = sld [smem:[#allocation6 + $0xa]] }
 0x12a   : > { %s2788_s14 = sld [smem:[#allocation6 + $0xb]] }
 0x12b   : > { %s2790_s11 = sld [smem:[#allocation6 + $0xc]] }
 0x12c   : > { %s2792_s22 = sld [smem:[#allocation6 + $0xd]] }
 0x12d   : > { %4096 = sst [smem:[#allocation105_spill]] %s2784_s23 }
 0x12e   : > { %s2794_s27 = sld [smem:[#allocation6 + $0xe]] }
 0x12f   : > { %4097 = sst [smem:[#allocation106_spill]] %s2786_s16 }
 0x130   : > { %4098 = sst [smem:[#allocation107_spill]] %s2788_s14 }
 0x131   : > { %4099 = sst [smem:[#allocation108_spill]] %s2790_s11 }
 0x132   : > { %4100 = sst [smem:[#allocation109_spill]] %s2792_s22 }
 0x133   : > { %s2796_s2 = sld [smem:[#allocation6 + $0xf]] }
 0x134   : > { %4101 = sst [smem:[#allocation110_spill]] %s2794_s27 }
 0x135   : > { %s2798_s3 = sld [smem:[#allocation6 + $0x10]] }
 0x136   : > { %s2800_s5 = sld [smem:[#allocation6 + $0x11]] }
 0x137   : > { %s2802_s26 = sld [smem:[#allocation6 + $0x12]] }
 0x138   : > { %s2804_s21 = sld [smem:[#allocation6 + $0x13]] }
 0x139   : > { %4102 = sst [smem:[#allocation111_spill]] %s2796_s2 }
 0x13a   : > { %s2806_s23 = sld [smem:[#allocation6 + $0x14]] }
 0x13b   : > { %4103 = sst [smem:[#allocation112_spill]] %s2798_s3 }
 0x13c   : > { %4104 = sst [smem:[#allocation113_spill]] %s2800_s5 }
 0x13d   : > { %4105 = sst [smem:[#allocation114_spill]] %s2802_s26 }
 0x13e   : > { %4106 = sst [smem:[#allocation115_spill]] %s2804_s21 }
 0x13f   : > { %s2808_s16 = sld [smem:[#allocation6 + $0x15]] }
 0x140   : > { %4107 = sst [smem:[#allocation116_spill]] %s2806_s23 }
 0x141   : > { %s2810_s14 = sld [smem:[#allocation6 + $0x16]] }
 0x142   : > { %s2812_s11 = sld [smem:[#allocation6 + $0x17]] }
 0x143   : > { %s2814_s22 = sld [smem:[#allocation6 + $0x18]] }
 0x144   : > { %s2816_s27 = sld [smem:[#allocation6 + $0x19]] }
 0x145   : > { %4108 = sst [smem:[#allocation117_spill]] %s2808_s16 }
 0x146   : > { %s2818_s2 = sld [smem:[#allocation6 + $0x1a]] }
 0x147   : > { %4109 = sst [smem:[#allocation118_spill]] %s2810_s14 }
 0x148   : > { %4110 = sst [smem:[#allocation119_spill]] %s2812_s11 }
 0x149   : > { %4111 = sst [smem:[#allocation120_spill]] %s2814_s22 }
 0x14a   : > { %4112 = sst [smem:[#allocation121_spill]] %s2816_s27 }
 0x14b   : > { %s2820_s3 = sld [smem:[#allocation6 + $0x1b]] }
 0x14c   : > { %4113 = sst [smem:[#allocation122_spill]] %s2818_s2 }
 0x14d   : > { %s2822_s5 = sld [smem:[#allocation6 + $0x1c]] }
 0x14e   : > { %s2824_s26 = sld [smem:[#allocation6 + $0x1d]] }
 0x14f   : > { %s2826_s21 = sld [smem:[#allocation6 + $0x1e]] }
 0x150   : > { %s2828_s23 = sld [smem:[#allocation6 + $0x1f]] }
 0x151   : > { %4114 = sst [smem:[#allocation123_spill]] %s2820_s3 }
 0x152   : > { %s2830_s16 = sld [smem:[#allocation8]] }
 0x153   : > { %4115 = sst [smem:[#allocation124_spill]] %s2822_s5 }
 0x154   : > { %4116 = sst [smem:[#allocation125_spill]] %s2824_s26 }
 0x155   : > { %4117 = sst [smem:[#allocation126_spill]] %s2826_s21 }
 0x156   : > { %4118 = sst [smem:[#allocation127_spill]] %s2828_s23 }
 0x157   : > { %s2832_s14 = sld [smem:[#allocation8 + $0x1]] }
 0x158   : > { %s2834_s11 = sld [smem:[#allocation8 + $0x2]] }
 0x159   : > { %s2836_s22 = sld [smem:[#allocation8 + $0x3]] }
 0x15a   : > { %s2838_s27 = sld [smem:[#allocation8 + $0x4]] }
 0x15b   : > { %s2840_s2 = sld [smem:[#allocation8 + $0x5]] }
 0x15c   : > { %s2842_s3 = sld [smem:[#allocation8 + $0x6]] }
 0x15d   : > { %s2844_s5 = sld [smem:[#allocation8 + $0x7]] }
 0x15e   : > { %s2846_s26 = sld [smem:[#allocation8 + $0x8]] }
 0x15f   : > { %4119 = sst [smem:[#allocation128_spill]] %s2836_s22 }
 0x160   : > { %4120 = sst [smem:[#allocation129_spill]] %s2838_s27 }
 0x161   : > { %4121 = sst [smem:[#allocation130_spill]] %s2840_s2 }
 0x162   : > { %4122 = sst [smem:[#allocation131_spill]] %s2842_s3 }
 0x163   : > { %4123 = sst [smem:[#allocation132_spill]] %s2844_s5 }
 0x164   : > { %4124 = sst [smem:[#allocation133_spill]] %s2846_s26 }
 0x165   : > { %s2848_s21 = sld [smem:[#allocation8 + $0x9]] }
 0x166   : > { %s2850_s23 = sld [smem:[#allocation8 + $0xa]] }
 0x167   : > { %s2852_s7 = sld [smem:[#allocation8 + $0xb]] }
 0x168   : > { %s2854_s6 = sld [smem:[#allocation8 + $0xc]] }
 0x169   : > { %s2856_s30 = sld [smem:[#allocation8 + $0xd]] }
 0x16a   : > { %s2858_s22 = sld [smem:[#allocation8 + $0xe]] }
 0x16b   : > { %4125 = sst [smem:[#allocation134_spill]] %s2848_s21 }
 0x16c   : > { %4126 = sst [smem:[#allocation135_spill]] %s2850_s23 }
 0x16d   : > { %4127 = sst [smem:[#allocation136_spill]] %s2852_s7 }
 0x16e   : > { %4128 = sst [smem:[#allocation137_spill]] %s2854_s6 }
 0x16f   : > { %4129 = sst [smem:[#allocation138_spill]] %s2856_s30 }
 0x170   : > { %4130 = sst [smem:[#allocation139_spill]] %s2858_s22 }
 0x171   : > { %s2860_s27 = sld [smem:[#allocation8 + $0xf]] }
 0x172   : > { %s2862_s2 = sld [smem:[#allocation8 + $0x10]] }
 0x173   : > { %s2864_s3 = sld [smem:[#allocation8 + $0x11]] }
 0x174   : > { %s2866_s5 = sld [smem:[#allocation8 + $0x12]] }
 0x175   : > { %s2868_s26 = sld [smem:[#allocation8 + $0x13]] }
 0x176   : > { %s2870_s21 = sld [smem:[#allocation8 + $0x14]] }
 0x177   : > { %4131 = sst [smem:[#allocation140_spill]] %s2860_s27 }
 0x178   : > { %4132 = sst [smem:[#allocation141_spill]] %s2862_s2 }
 0x179   : > { %4133 = sst [smem:[#allocation142_spill]] %s2864_s3 }
 0x17a   : > { %4134 = sst [smem:[#allocation143_spill]] %s2866_s5 }
 0x17b   : > { %4135 = sst [smem:[#allocation144_spill]] %s2868_s26 }
 0x17c   : > { %4136 = sst [smem:[#allocation145_spill]] %s2870_s21 }
 0x17d   : > { %s2872_s23 = sld [smem:[#allocation8 + $0x15]] }
 0x17e   : > { %s2874_s7 = sld [smem:[#allocation8 + $0x16]] }
 0x17f   : > { %s2876_s6 = sld [smem:[#allocation8 + $0x17]] }
 0x180   : > { %s2878_s30 = sld [smem:[#allocation8 + $0x18]] }
 0x181   : > { %s2880_s22 = sld [smem:[#allocation8 + $0x19]] }
 0x182   : > { %s2882_s27 = sld [smem:[#allocation8 + $0x1a]] }
 0x183   : > { %4137 = sst [smem:[#allocation146_spill]] %s2872_s23 }
 0x184   : > { %4138 = sst [smem:[#allocation147_spill]] %s2874_s7  ;;  %s2896_s7 = smov 0  }
 0x185   : > { %s2884_s2 = sld [smem:[#allocation8 + $0x1b]] }
 0x186   : > { %s2886_s3 = sld [smem:[#allocation8 + $0x1c]] }
 0x187   : > { %s2888_s5 = sld [smem:[#allocation8 + $0x1d]] }
 0x188   : > { %s2890_s26 = sld [smem:[#allocation8 + $0x1e]] }
 0x189   : > { %s2892_s21 = sld [smem:[#allocation8 + $0x1f]] }
 0x18a   : > { %s2894_s23 = sld [smem:[#allocation2]] }
 0x18c   : > { %4139 = sst [smem:[#allocation148_spill]] %s2886_s3 }
 0x18d   : > { %4140 = sst [smem:[#allocation149_spill]] %s2888_s5 }
 0x18e   : > { %4141 = sst [smem:[#allocation150_spill]] %s2890_s26 }
 0x18f   : > { %4142 = sst [smem:[#allocation151_spill]] %s2892_s21 }
 0x190   : > { %4143 = sst [smem:[#allocation152_spill]] %s2894_s23 }
 0x191 LB: >> { %s3982_s21 = sshll.u32 %s2378_s7, 5  ;;  %v600_v21 = vstv %s2568_s20  ;;  %v605_v22 = vstv %s2570_s28  ;;  %s4144_s5 = scalar_lea.vmem [#allocation3], %s2556_s8  ;;  %v614_v23 = vstv %s2573_s10  ;;  %v2910_v24 = vstv %s2766_s15  ;;  %s2378_s7 = sphi %s2896_s7, %s549_s7  }
 0x192   : >> { %s551_s23 = sshra.s32 %s3982_s21, 5  ;;  %v2913_v25 = vstv %s2830_s16  ;;  %v2916_v26 = vstv %s2575_s12  ;;  %v2919_v29 = vstv %s2577_s13  ;;  %v2922_v30 = vstv %s2584_s17  ;;  %s4145_s0 = sld [smem:[#allocation99_spill]] }
 0x193   : >> { %s2219_s26 = sshll.u32 %s551_s23, 3  ;;  %s4148_s23 = sld [smem:[#allocation16_spill]] }
 0x194   : >> { %s554_s3 = scalar_lea.vmem %s4144_s5, %s2219_s26 [#allocation3]  ;;  %s4147_s5 = sld [smem:[#allocation15_spill]] }
 0x195   : >> { %v555_v27 = vld [vmem:[%s554_s3] sm:$0xff]  ;;  %v2221_v28 = vld [vmem:[%s554_s3 + $0x38] sm:$0xff]  ;;  %v2223_v47 = vld [vmem:[%s554_s3 + $0x70] sm:$0xff]  ;;  %s4146_s3 = sld [smem:[#allocation128_spill]] }
 0x196   : >> { %v556_v31 = vunpack.c.0.s8 %v555_v27  ;;  %v557_v32 = vunpack.c.1.s8 %v555_v27  ;;  %v558_v33 = vunpack.c.2.s8 %v555_v27  ;;  %v559_v34 = vunpack.c.3.s8 %v555_v27  ;;  %s4149_s26 = sld [smem:[#allocation17_spill]] }
 0x197   : >> { %v572_v35 = vunpack.c.0.s8 %v2221_v28  ;;  %v573_v36 = vunpack.c.1.s8 %v2221_v28  ;;  %v574_v37 = vunpack.c.2.s8 %v2221_v28  ;;  %v575_v38 = vunpack.c.3.s8 %v2221_v28  ;;  %s4150_s21 = sld [smem:[#allocation100_spill]] }
 0x198   : >> { %v560_v39 = vand.u32 255, %v556_v31  ;;  %v561_v40 = vand.u32 255, %v557_v32  ;;  %v562_v41 = vand.u32 255, %v558_v33  ;;  %v563_v42 = vand.u32 255, %v559_v34 }
 0x199   : >> { %v576_v43 = vand.u32 255, %v572_v35  ;;  %v577_v44 = vand.u32 255, %v573_v36  ;;  %v578_v45 = vand.u32 255, %v574_v37  ;;  %v579_v46 = vand.u32 255, %v575_v38 }
 0x19a   : >> { %v2924_v48 = vcvt.s32.f32 %v560_v39  ;;  %v2926_v49 = vcvt.s32.f32 %v561_v40  ;;  %v2928_v50 = vcvt.s32.f32 %v562_v41  ;;  %v2930_v51 = vcvt.s32.f32 %v563_v42 }
 0x19b   : >> { %v2932_v52 = vcvt.s32.f32 %v576_v43  ;;  %v2934_v53 = vcvt.s32.f32 %v577_v44  ;;  %v2936_v54 = vcvt.s32.f32 %v578_v45  ;;  %v2938_v55 = vcvt.s32.f32 %v579_v46 }
 0x19c   : >> { %v588_v56 = vunpack.c.0.s8 %v2223_v47  ;;  %v589_v57 = vunpack.c.1.s8 %v2223_v47  ;;  %v590_v58 = vunpack.c.2.s8 %v2223_v47  ;;  %v591_v59 = vunpack.c.3.s8 %v2223_v47 }
 0x19d   : >> { %v601_v60 = vmul.f32 %v600_v21, %v2924_v48  ;;  %v602_v61 = vmul.f32 %v600_v21, %v2926_v49  ;;  %v603_v62 = vmul.f32 %v600_v21, %v2928_v50  ;;  %v604_v63 = vmul.f32 %v600_v21, %v2930_v51 }
 0x19e   : >> { %v592_v0 = vand.u32 255, %v588_v56  ;;  %v593_v1 = vand.u32 255, %v589_v57  ;;  %v594_v2 = vand.u32 255, %v590_v58  ;;  %v595_v3 = vand.u32 255, %v591_v59 }
 0x19f   : >> { %v606_v4 = vmul.f32 %v605_v22, %v2932_v52  ;;  %v607_v5 = vmul.f32 %v605_v22, %v2934_v53  ;;  %v608_v6 = vmul.f32 %v605_v22, %v2936_v54  ;;  %v609_v7 = vmul.f32 %v605_v22, %v2938_v55 }
 0x1a0   : >> { %v2948_v8 = vcvt.s32.f32 %v592_v0  ;;  %v2950_v9 = vcvt.s32.f32 %v593_v1  ;;  %v2952_v10 = vcvt.s32.f32 %v594_v2  ;;  %v2954_v11 = vcvt.s32.f32 %v595_v3 }
 0x1a1   : >> { %v610_v12 = vadd.f32 %v606_v4, %v601_v60  ;;  %v611_v13 = vadd.f32 %v607_v5, %v602_v61  ;;  %v612_v14 = vadd.f32 %v608_v6, %v603_v62  ;;  %v613_v15 = vadd.f32 %v609_v7, %v604_v63 }
 0x1a2   : >> { %v615_v16 = vmul.f32 %v614_v23, %v2948_v8  ;;  %v616_v17 = vmul.f32 %v614_v23, %v2950_v9  ;;  %v617_v18 = vmul.f32 %v614_v23, %v2952_v10  ;;  %v618_v19 = vmul.f32 %v614_v23, %v2954_v11 }
 0x1a3   : >> { %v638_v20 = vmul.f32 %v2916_v26, %v2924_v48  ;;  %v2963_v21 = vstv %s2768_s9  ;;  %v2966_v22 = vstv %s2832_s14  ;;  %v674_v27 = vstv %s2586_s18 }
 0x1a4   : >> { %v639_v28 = vmul.f32 %v2916_v26, %v2926_v49  ;;  %v679_v31 = vstv %s2588_s19  ;;  %v2973_v32 = vstv %s2590_s24  ;;  %v2976_v33 = vstv %s4145_s0  ;;  %s4151_s0 = sld [smem:[#allocation129_spill]] }
 0x1a5   : >> { %v619_v23 = vadd.f32 %v615_v16, %v610_v12  ;;  %v620_v34 = vadd.f32 %v616_v17, %v611_v13  ;;  %v621_v35 = vadd.f32 %v617_v18, %v612_v14  ;;  %v643_v36 = vmul.f32 %v2919_v29, %v2932_v52 }
 0x1a6   : >> { %v622_v37 = vadd.f32 %v618_v19, %v613_v15  ;;  %v640_v38 = vmul.f32 %v2916_v26, %v2928_v50  ;;  %v644_v39 = vmul.f32 %v2919_v29, %v2934_v53  ;;  %v645_v40 = vmul.f32 %v2919_v29, %v2936_v54 }
 0x1a7   : >> { %v641_v41 = vmul.f32 %v2916_v26, %v2930_v51  ;;  %v646_v42 = vmul.f32 %v2919_v29, %v2938_v55  ;;  %v647_v43 = vadd.f32 %v643_v36, %v638_v20  ;;  %v2991_v44 = vstv %s2834_s11 }
 0x1a8   : >> { %v711_v45 = vstv %s2592_s25  ;;  %v716_v46 = vstv %s2594_s4  ;;  %v2996_v47 = vstv %s2596_s29  ;;  %v2999_v56 = vstv %s2772_s1 }
 0x1a9   : >> { %v624_v57 = vadd.f32 %v2910_v24, %v619_v23  ;;  %v625_v26 = vadd.f32 %v2910_v24, %v620_v34  ;;  %v626_v58 = vadd.f32 %v2910_v24, %v621_v35  ;;  %v652_v29 = vmul.f32 %v2922_v30, %v2948_v8 }
 0x1aa   : >> { %v627_v59 = vadd.f32 %v2910_v24, %v622_v37  ;;  %v648_v60 = vadd.f32 %v644_v39, %v639_v28  ;;  %v649_v61 = vadd.f32 %v645_v40, %v640_v38  ;;  %v653_v62 = vmul.f32 %v2922_v30, %v2950_v9 }
 0x1ab   : >> { %v650_v63 = vadd.f32 %v646_v42, %v641_v41  ;;  %v654_v0 = vmul.f32 %v2922_v30, %v2952_v10  ;;  %v655_v1 = vmul.f32 %v2922_v30, %v2954_v11  ;;  %v656_v2 = vadd.f32 %v652_v29, %v647_v43 }
 0x1ac   : >> { %v3014_v3 = vstv %s4146_s3  ;;  %v3017_v4 = vstv %s4147_s5  ;;  %v3020_v5 = vstv %s4148_s23  ;;  %v3023_v24 = vstv %s4149_s26  ;;  %s4154_s3 = sld [smem:[#allocation20_spill]] }
 0x1ad   : >> { %v628_v6 = vmax.f32 %v624_v57, 0.0  ;;  %v629_v7 = vmax.f32 %v625_v26, 0.0  ;;  %v630_v12 = vmax.f32 %v626_v58, 0.0  ;;  %v3026_v13 = vstv %s4150_s21  ;;  %s4153_s21 = sld [smem:[#allocation19_spill]] }
 0x1ae   : >> { %v657_v14 = vadd.f32 %v653_v62, %v648_v60  ;;  %v675_v15 = vmul.f32 %v674_v27, %v2924_v48  ;;  %v680_v16 = vmul.f32 %v679_v31, %v2932_v52  ;;  %v3031_v30 = vstv %s4151_s0  ;;  %s4152_s0 = sld [smem:[#allocation18_spill]] }
 0x1af   : >> { %v631_v17 = vmax.f32 %v627_v59, 0.0  ;;  %v658_v18 = vadd.f32 %v654_v0, %v649_v61  ;;  %v659_v19 = vadd.f32 %v655_v1, %v650_v63  ;;  %v661_v20 = vadd.f32 %v2963_v21, %v656_v2  ;;  %s4155_s5 = sld [smem:[#allocation101_spill]] }
 0x1b0   : >> { %v676_v28 = vmul.f32 %v674_v27, %v2926_v49  ;;  %v677_v23 = vmul.f32 %v674_v27, %v2928_v50  ;;  %v681_v34 = vmul.f32 %v679_v31, %v2934_v53  ;;  %v682_v35 = vmul.f32 %v679_v31, %v2936_v54  ;;  %s4156_s23 = sld [smem:[#allocation21_spill]] }
 0x1b1   : >> { %v3039_v36 = vmul.f32 %v2913_v25, %v628_v6  ;;  %v3042_v37 = vmul.f32 %v2913_v25, %v629_v7  ;;  %v3045_v38 = vmul.f32 %v2913_v25, %v630_v12  ;;  %v678_v39 = vmul.f32 %v674_v27, %v2930_v51  ;;  %s4157_s26 = sld [smem:[#allocation22_spill]] }
 0x1b2   : >> { %v662_v40 = vadd.f32 %v2963_v21, %v657_v14  ;;  %v683_v41 = vmul.f32 %v679_v31, %v2938_v55  ;;  %v684_v42 = vadd.f32 %v680_v16, %v675_v15  ;;  %v689_v43 = vmul.f32 %v2973_v32, %v2948_v8 }
 0x1b3   : >> { %v3053_v57 = vmul.f32 %v2913_v25, %v631_v17  ;;  %v3056_v26 = vadd.f32 %v2963_v21, %v658_v18  ;;  %v3059_v58 = vadd.f32 %v2963_v21, %v659_v19  ;;  %v665_v29 = vmax.f32 %v661_v20, 0.0 }
 0x1b4   : >> { %v685_v59 = vadd.f32 %v681_v34, %v676_v28  ;;  %v686_v27 = vadd.f32 %v682_v35, %v677_v23  ;;  %v690_v60 = vmul.f32 %v2973_v32, %v2950_v9  ;;  %v691_v31 = vmul.f32 %v2973_v32, %v2952_v10 }
 0x1b5   : >> { %v712_v61 = vmul.f32 %v711_v45, %v2924_v48  ;;  %v713_v25 = vmul.f32 %v711_v45, %v2926_v49  ;;  %v717_v62 = vmul.f32 %v716_v46, %v2932_v52  ;;  %v718_v63 = vmul.f32 %v716_v46, %v2934_v53 }
 0x1b6   : >> { %v666_v0 = vmax.f32 %v662_v40, 0.0  ;;  %v687_v21 = vadd.f32 %v683_v41, %v678_v39  ;;  %v692_v1 = vmul.f32 %v2973_v32, %v2954_v11  ;;  %v693_v2 = vadd.f32 %v689_v43, %v684_v42 }
 0x1b7   : >> { %v714_v6 = vmul.f32 %v711_v45, %v2928_v50  ;;  %v715_v7 = vmul.f32 %v711_v45, %v2930_v51  ;;  %v719_v12 = vmul.f32 %v716_v46, %v2936_v54  ;;  %v720_v14 = vmul.f32 %v716_v46, %v2938_v55 }
 0x1b8   : >> { %v667_v15 = vmax.f32 %v3056_v26, 0.0  ;;  %v668_v16 = vmax.f32 %v3059_v58, 0.0  ;;  %v694_v17 = vadd.f32 %v690_v60, %v685_v59  ;;  %v695_v18 = vadd.f32 %v691_v31, %v686_v27 }
 0x1b9   : >> { %v721_v19 = vadd.f32 %v717_v62, %v712_v61  ;;  %v722_v20 = vadd.f32 %v718_v63, %v713_v25  ;;  %v726_v32 = vmul.f32 %v2996_v47, %v2948_v8  ;;  %v727_v28 = vmul.f32 %v2996_v47, %v2950_v9 }
 0x1ba   : >> { %v3082_v45 = vmul.f32 %v2966_v22, %v665_v29  ;;  %v3085_v23 = vmul.f32 %v2966_v22, %v666_v0  ;;  %v696_v46 = vadd.f32 %v692_v1, %v687_v21  ;;  %v698_v34 = vadd.f32 %v2976_v33, %v693_v2 }
 0x1bb   : >> { %v723_v35 = vadd.f32 %v719_v12, %v714_v6  ;;  %v724_v39 = vadd.f32 %v720_v14, %v715_v7  ;;  %v728_v40 = vmul.f32 %v2996_v47, %v2952_v10  ;;  %v729_v41 = vmul.f32 %v2996_v47, %v2954_v11 }
 0x1bc   : >> { %v699_v42 = vadd.f32 %v2976_v33, %v694_v17  ;;  %v700_v43 = vadd.f32 %v2976_v33, %v695_v18  ;;  %v749_v26 = vmul.f32 %v3017_v4, %v2924_v48  ;;  %v750_v58 = vmul.f32 %v3017_v4, %v2926_v49 }
 0x1bd   : >> { %v730_v29 = vadd.f32 %v726_v32, %v721_v19  ;;  %v731_v59 = vadd.f32 %v727_v28, %v722_v20  ;;  %v751_v27 = vmul.f32 %v3017_v4, %v2928_v50  ;;  %v752_v60 = vmul.f32 %v3017_v4, %v2930_v51 }
 0x1be   : >> { %v754_v47 = vmul.f32 %v3020_v5, %v2932_v52  ;;  %v755_v31 = vmul.f32 %v3020_v5, %v2934_v53  ;;  %v756_v61 = vmul.f32 %v3020_v5, %v2936_v54  ;;  %v757_v25 = vmul.f32 %v3020_v5, %v2938_v55 }
 0x1bf   : >> { %v701_v62 = vadd.f32 %v2976_v33, %v696_v46  ;;  %v702_v63 = vmax.f32 %v698_v34, 0.0  ;;  %v732_v0 = vadd.f32 %v728_v40, %v723_v35  ;;  %v733_v21 = vadd.f32 %v729_v41, %v724_v39 }
 0x1c0   : >> { %v703_v1 = vmax.f32 %v699_v42, 0.0  ;;  %v704_v2 = vmax.f32 %v700_v43, 0.0  ;;  %v758_v4 = vadd.f32 %v754_v47, %v749_v26  ;;  %v759_v6 = vadd.f32 %v755_v31, %v750_v58 }
 0x1c1   : >> { %v735_v7 = vadd.f32 %v2999_v56, %v730_v29  ;;  %v736_v12 = vadd.f32 %v2999_v56, %v731_v59  ;;  %v760_v14 = vadd.f32 %v756_v61, %v751_v27  ;;  %v761_v17 = vadd.f32 %v757_v25, %v752_v60 }
 0x1c2   : >> { %v763_v5 = vmul.f32 %v3023_v24, %v2948_v8  ;;  %v764_v33 = vmul.f32 %v3023_v24, %v2950_v9  ;;  %v765_v18 = vmul.f32 %v3023_v24, %v2952_v10  ;;  %v766_v19 = vmul.f32 %v3023_v24, %v2954_v11 }
 0x1c3   : >> { %v3122_v20 = vmul.f32 %v2966_v22, %v667_v15  ;;  %v705_v32 = vmax.f32 %v701_v62, 0.0  ;;  %v737_v28 = vadd.f32 %v2999_v56, %v732_v0  ;;  %v738_v46 = vadd.f32 %v2999_v56, %v733_v21 }
 0x1c4   : >> { %v767_v34 = vadd.f32 %v763_v5, %v758_v4  ;;  %v768_v35 = vadd.f32 %v764_v33, %v759_v6  ;;  %v789_v39 = vstv %s4152_s0  ;;  %v794_v40 = vstv %s4153_s21  ;;  %s4158_s0 = sld [smem:[#allocation23_spill]] }
 0x1c5   : >> { %v3129_v41 = vmul.f32 %v2966_v22, %v668_v16  ;;  %v3132_v42 = vmul.f32 %v2991_v44, %v702_v63  ;;  %v3135_v24 = vmul.f32 %v2991_v44, %v703_v1  ;;  %v3138_v15 = vmul.f32 %v2991_v44, %v704_v2  ;;  %s4159_s21 = sld [smem:[#allocation130_spill]] }
 0x1c6   : >> { %v739_v43 = vmax.f32 %v735_v7, 0.0  ;;  %v740_v26 = vmax.f32 %v736_v12, 0.0  ;;  %v769_v56 = vadd.f32 %v765_v18, %v760_v14  ;;  %v770_v58 = vadd.f32 %v766_v19, %v761_v17 }
 0x1c7   : >> { %v3141_v29 = vmul.f32 %v2991_v44, %v705_v32  ;;  %v741_v59 = vmax.f32 %v737_v28, 0.0  ;;  %v790_v22 = vmul.f32 %v789_v39, %v2924_v48  ;;  %v795_v16 = vmul.f32 %v794_v40, %v2932_v52 }
 0x1c8   : >> { %v742_v27 = vmax.f32 %v738_v46, 0.0  ;;  %v772_v60 = vadd.f32 %v3026_v13, %v767_v34  ;;  %v773_v47 = vadd.f32 %v3026_v13, %v768_v35  ;;  %v803_v31 = vstv %s4154_s3  ;;  %s4160_s3 = sld [smem:[#allocation24_spill]] }
 0x1c9   : >> { %v791_v61 = vmul.f32 %v789_v39, %v2926_v49  ;;  %v792_v25 = vmul.f32 %v789_v39, %v2928_v50  ;;  %v796_v62 = vmul.f32 %v794_v40, %v2934_v53  ;;  %v797_v44 = vmul.f32 %v794_v40, %v2936_v54 }
 0x1ca   : >> { %v3153_v63 = vmul.f32 %v3014_v3, %v739_v43  ;;  %v3156_v0 = vmul.f32 %v3014_v3, %v740_v26  ;;  %v774_v21 = vadd.f32 %v3026_v13, %v769_v56  ;;  %v775_v1 = vadd.f32 %v3026_v13, %v770_v58 }
 0x1cb   : >> { %v793_v2 = vmul.f32 %v789_v39, %v2930_v51  ;;  %v798_v4 = vmul.f32 %v794_v40, %v2938_v55  ;;  %v799_v6 = vadd.f32 %v795_v16, %v790_v22  ;;  %v804_v7 = vmul.f32 %v803_v31, %v2948_v8 }
 0x1cc   : >> { %v3164_v12 = vmul.f32 %v3014_v3, %v741_v59  ;;  %v3167_v14 = vmul.f32 %v3014_v3, %v742_v27  ;;  %v776_v17 = vmax.f32 %v772_v60, 0.0  ;;  %v777_v5 = vmax.f32 %v773_v47, 0.0 }
 0x1cd   : >> { %v800_v33 = vadd.f32 %v796_v62, %v791_v61  ;;  %v801_v18 = vadd.f32 %v797_v44, %v792_v25  ;;  %v805_v13 = vmul.f32 %v803_v31, %v2950_v9  ;;  %v806_v19 = vmul.f32 %v803_v31, %v2952_v10 }
 0x1ce   : >> { %v778_v32 = vmax.f32 %v774_v21, 0.0  ;;  %v779_v28 = vmax.f32 %v775_v1, 0.0  ;;  %v812_v46 = vstv %s4155_s5  ;;  %v830_v34 = vstv %s4156_s23  ;;  %s4161_s5 = sld [smem:[#allocation25_spill]] }
 0x1cf   : >> { %v802_v35 = vadd.f32 %v798_v4, %v793_v2  ;;  %v807_v39 = vmul.f32 %v803_v31, %v2954_v11  ;;  %v808_v40 = vadd.f32 %v804_v7, %v799_v6  ;;  %v835_v43 = vstv %s4157_s26  ;;  %s4162_s23 = sld [smem:[#allocation102_spill]] }
 0x1d0   : >> { %v781_v3 = vmul.f32 %v3031_v30, %v776_v17  ;;  %v831_v26 = vmul.f32 %v830_v34, %v2924_v48  ;;  %v832_v56 = vmul.f32 %v830_v34, %v2926_v49  ;;  %v833_v58 = vmul.f32 %v830_v34, %v2928_v50  ;;  %s4163_s26 = sld [smem:[#allocation26_spill]] }
 0x1d1   : >> { %v782_v59 = vmul.f32 %v3031_v30, %v777_v5  ;;  %v809_v22 = vadd.f32 %v805_v13, %v800_v33  ;;  %v810_v16 = vadd.f32 %v806_v19, %v801_v18  ;;  %v834_v27 = vmul.f32 %v830_v34, %v2930_v51 }
 0x1d2   : >> { %v836_v60 = vmul.f32 %v835_v43, %v2932_v52  ;;  %v837_v47 = vmul.f32 %v835_v43, %v2934_v53  ;;  %v838_v31 = vmul.f32 %v835_v43, %v2936_v54  ;;  %v839_v61 = vmul.f32 %v835_v43, %v2938_v55 }
 0x1d3   : >> { %v783_v25 = vmul.f32 %v3031_v30, %v778_v32  ;;  %v811_v62 = vadd.f32 %v807_v39, %v802_v35  ;;  %v813_v44 = vadd.f32 %v812_v46, %v808_v40  ;;  %v844_v21 = vstv %s4158_s0  ;;  %s4164_s0 = sld [smem:[#allocation131_spill]] }
 0x1d4   : >> { %v784_v1 = vmul.f32 %v3031_v30, %v779_v28  ;;  %v840_v2 = vadd.f32 %v836_v60, %v831_v26  ;;  %v841_v4 = vadd.f32 %v837_v47, %v832_v56  ;;  %v842_v6 = vadd.f32 %v838_v31, %v833_v58 }
 0x1d5   : >> { %v3189_v7 = vadd.f32 %v781_v3, %v3039_v36  ;;  %v814_v17 = vadd.f32 %v812_v46, %v809_v22  ;;  %v815_v5 = vadd.f32 %v812_v46, %v810_v16  ;;  %v843_v33 = vadd.f32 %v839_v61, %v834_v27 }
 0x1d6   : >> { %v845_v18 = vmul.f32 %v844_v21, %v2948_v8  ;;  %v846_v13 = vmul.f32 %v844_v21, %v2950_v9  ;;  %v847_v19 = vmul.f32 %v844_v21, %v2952_v10  ;;  %v848_v32 = vmul.f32 %v844_v21, %v2954_v11 }
 0x1d7   : >> { %v816_v30 = vadd.f32 %v812_v46, %v811_v62  ;;  %v817_v28 = vmax.f32 %v813_v44, 0.0  ;;  %v821_v34 = vstv %s4159_s21  ;;  %v871_v35 = vstv %s4160_s3  ;;  %s4165_s21 = sld [smem:[#allocation103_spill]] }
 0x1d8   : >> { %v849_v39 = vadd.f32 %v845_v18, %v840_v2  ;;  %v850_v40 = vadd.f32 %v846_v13, %v841_v4  ;;  %v851_v36 = vadd.f32 %v847_v19, %v842_v6  ;;  %v876_v43 = vstv %s4161_s5  ;;  %s4166_s3 = sld [smem:[#allocation27_spill]] }
 0x1d9   : >> { %v818_v3 = vmax.f32 %v814_v17, 0.0  ;;  %v819_v26 = vmax.f32 %v815_v5, 0.0  ;;  %v852_v56 = vadd.f32 %v848_v32, %v843_v33  ;;  %v853_v58 = vstv %s4162_s23  ;;  %s4167_s5 = sld [smem:[#allocation28_spill]] }
 0x1da   : >> { %v872_v22 = vmul.f32 %v871_v35, %v2924_v48  ;;  %v873_v16 = vmul.f32 %v871_v35, %v2926_v49  ;;  %v874_v27 = vmul.f32 %v871_v35, %v2928_v50  ;;  %v875_v60 = vmul.f32 %v871_v35, %v2930_v51  ;;  %s4168_s23 = sld [smem:[#allocation29_spill]] }
 0x1db   : >> { %v877_v46 = vmul.f32 %v876_v43, %v2932_v52  ;;  %v878_v47 = vmul.f32 %v876_v43, %v2934_v53  ;;  %v879_v31 = vmul.f32 %v876_v43, %v2936_v54  ;;  %v880_v61 = vmul.f32 %v876_v43, %v2938_v55 }
 0x1dc   : >> { %v820_v62 = vmax.f32 %v816_v30, 0.0  ;;  %v854_v44 = vadd.f32 %v853_v58, %v849_v39  ;;  %v855_v21 = vadd.f32 %v853_v58, %v850_v40  ;;  %v856_v2 = vadd.f32 %v853_v58, %v851_v36 }
 0x1dd   : >> { %v3208_v4 = vadd.f32 %v782_v59, %v3042_v37  ;;  %v3211_v6 = vadd.f32 %v783_v25, %v3045_v38  ;;  %v3214_v17 = vadd.f32 %v784_v1, %v3053_v57  ;;  %v822_v5 = vmul.f32 %v821_v34, %v817_v28 }
 0x1de   : >> { %v823_v33 = vmul.f32 %v821_v34, %v818_v3  ;;  %v824_v18 = vmul.f32 %v821_v34, %v819_v26  ;;  %v857_v13 = vadd.f32 %v853_v58, %v852_v56  ;;  %v881_v19 = vadd.f32 %v877_v46, %v872_v22 }
 0x1df   : >> { %v882_v32 = vadd.f32 %v878_v47, %v873_v16  ;;  %v883_v30 = vadd.f32 %v879_v31, %v874_v27  ;;  %v884_v35 = vadd.f32 %v880_v61, %v875_v60  ;;  %v885_v39 = vstv %s4163_s26  ;;  %s4169_s26 = sld [smem:[#allocation132_spill]] }
 0x1e0   : >> { %v825_v37 = vmul.f32 %v821_v34, %v820_v62  ;;  %v858_v59 = vmax.f32 %v854_v44, 0.0  ;;  %v859_v40 = vmax.f32 %v855_v21, 0.0  ;;  %v860_v38 = vmax.f32 %v856_v2, 0.0 }
 0x1e1   : >> { %v886_v57 = vmul.f32 %v885_v39, %v2948_v8  ;;  %v887_v25 = vmul.f32 %v885_v39, %v2950_v9  ;;  %v888_v1 = vmul.f32 %v885_v39, %v2952_v10  ;;  %v889_v28 = vmul.f32 %v885_v39, %v2954_v11 }
 0x1e2   : >> { %v861_v36 = vmax.f32 %v857_v13, 0.0  ;;  %v862_v43 = vstv %s4164_s0  ;;  %v894_v3 = vstv %s4165_s21  ;;  %v912_v26 = vstv %s4166_s3  ;;  %s4170_s0 = sld [smem:[#allocation104_spill]] }
 0x1e3   : >> { %v890_v56 = vadd.f32 %v886_v57, %v881_v19  ;;  %v891_v58 = vadd.f32 %v887_v25, %v882_v32  ;;  %v892_v22 = vadd.f32 %v888_v1, %v883_v30  ;;  %v893_v34 = vadd.f32 %v889_v28, %v884_v35  ;;  %s4171_s21 = sld [smem:[#allocation133_spill]] }
 0x1e4   : >> { %v3225_v16 = vadd.f32 %v822_v5, %v3082_v45  ;;  %v3228_v27 = vadd.f32 %v823_v33, %v3085_v23  ;;  %v3231_v60 = vadd.f32 %v824_v18, %v3122_v20  ;;  %v917_v46 = vstv %s4167_s5  ;;  %s4172_s3 = sld [smem:[#allocation30_spill]] }
 0x1e5   : >> { %v3235_v47 = vadd.f32 %v825_v37, %v3129_v41  ;;  %v863_v31 = vmul.f32 %v862_v43, %v858_v59  ;;  %v864_v61 = vmul.f32 %v862_v43, %v859_v40  ;;  %v865_v62 = vmul.f32 %v862_v43, %v860_v38  ;;  %s4173_s5 = sld [smem:[#allocation31_spill]] }
 0x1e6   : >> { %v866_v44 = vmul.f32 %v862_v43, %v861_v36  ;;  %v895_v21 = vadd.f32 %v894_v3, %v890_v56  ;;  %v896_v2 = vadd.f32 %v894_v3, %v891_v58  ;;  %v913_v45 = vmul.f32 %v912_v26, %v2924_v48 }
 0x1e7   : >> { %v897_v5 = vadd.f32 %v894_v3, %v892_v22  ;;  %v898_v23 = vadd.f32 %v894_v3, %v893_v34  ;;  %v914_v33 = vmul.f32 %v912_v26, %v2926_v49  ;;  %v918_v20 = vmul.f32 %v917_v46, %v2932_v52 }
 0x1e8   : >> { %v915_v18 = vmul.f32 %v912_v26, %v2928_v50  ;;  %v919_v41 = vmul.f32 %v917_v46, %v2934_v53  ;;  %v920_v13 = vmul.f32 %v917_v46, %v2936_v54  ;;  %v926_v19 = vstv %s4168_s23  ;;  %s4174_s23 = sld [smem:[#allocation32_spill]] }
 0x1e9   : >> { %v3245_v32 = vadd.f32 %v863_v31, %v3132_v42  ;;  %v3248_v30 = vadd.f32 %v864_v61, %v3135_v24  ;;  %v3251_v35 = vadd.f32 %v865_v62, %v3138_v15  ;;  %v903_v39 = vstv %s4169_s26  ;;  %s4175_s26 = sld [smem:[#allocation33_spill]] }
 0x1ea   : >> { %v899_v37 = vmax.f32 %v895_v21, 0.0  ;;  %v900_v59 = vmax.f32 %v896_v2, 0.0  ;;  %v916_v40 = vmul.f32 %v912_v26, %v2930_v51  ;;  %v921_v38 = vmul.f32 %v917_v46, %v2938_v55 }
 0x1eb   : >> { %v901_v57 = vmax.f32 %v897_v5, 0.0  ;;  %v902_v42 = vmax.f32 %v898_v23, 0.0  ;;  %v922_v25 = vadd.f32 %v918_v20, %v913_v45  ;;  %v927_v24 = vmul.f32 %v926_v19, %v2948_v8 }
 0x1ec   : >> { %v923_v1 = vadd.f32 %v919_v41, %v914_v33  ;;  %v924_v28 = vadd.f32 %v920_v13, %v915_v18  ;;  %v928_v15 = vmul.f32 %v926_v19, %v2950_v9  ;;  %v929_v36 = vmul.f32 %v926_v19, %v2952_v10 }
 0x1ed   : >> { %v3260_v43 = vadd.f32 %v866_v44, %v3141_v29  ;;  %v935_v3 = vstv %s4170_s0  ;;  %v3264_v56 = vstv %s4171_s21  ;;  %v953_v26 = vstv %s4172_s3  ;;  %s4176_s0 = sld [smem:[#allocation105_spill]] }
 0x1ee   : >> { %v904_v58 = vmul.f32 %v903_v39, %v899_v37  ;;  %v905_v22 = vmul.f32 %v903_v39, %v900_v59  ;;  %v925_v34 = vadd.f32 %v921_v38, %v916_v40  ;;  %v958_v46 = vstv %s4173_s5  ;;  %s4177_s21 = sld [smem:[#allocation34_spill]] }
 0x1ef   : >> { %v906_v31 = vmul.f32 %v903_v39, %v901_v57  ;;  %v907_v61 = vmul.f32 %v903_v39, %v902_v42  ;;  %v930_v62 = vmul.f32 %v926_v19, %v2954_v11  ;;  %v931_v21 = vadd.f32 %v927_v24, %v922_v25  ;;  %s4178_s3 = sld [smem:[#allocation35_spill]] }
 0x1f0   : >> { %v932_v2 = vadd.f32 %v928_v15, %v923_v1  ;;  %v933_v45 = vadd.f32 %v929_v36, %v924_v28  ;;  %v954_v5 = vmul.f32 %v953_v26, %v2924_v48  ;;  %v955_v29 = vmul.f32 %v953_v26, %v2926_v49  ;;  %s4179_s5 = sld [smem:[#allocation134_spill]] }
 0x1f1   : >> { %v956_v44 = vmul.f32 %v953_v26, %v2928_v50  ;;  %v959_v23 = vmul.f32 %v958_v46, %v2932_v52  ;;  %v960_v33 = vmul.f32 %v958_v46, %v2934_v53  ;;  %v961_v20 = vmul.f32 %v958_v46, %v2936_v54 }
 0x1f2   : >> { %v3276_v18 = vadd.f32 %v904_v58, %v3153_v63  ;;  %v957_v41 = vmul.f32 %v953_v26, %v2930_v51  ;;  %v962_v13 = vmul.f32 %v958_v46, %v2938_v55  ;;  %v967_v19 = vstv %s4174_s23  ;;  %s4180_s23 = sld [smem:[#allocation106_spill]] }
 0x1f3   : >> { %v3282_v39 = vadd.f32 %v905_v22, %v3156_v0  ;;  %v3285_v37 = vadd.f32 %v906_v31, %v3164_v12  ;;  %v934_v59 = vadd.f32 %v930_v62, %v925_v34  ;;  %v936_v40 = vadd.f32 %v935_v3, %v931_v21 }
 0x1f4   : >> { %v937_v38 = vadd.f32 %v935_v3, %v932_v2  ;;  %v938_v57 = vadd.f32 %v935_v3, %v933_v45  ;;  %v963_v63 = vadd.f32 %v959_v23, %v954_v5  ;;  %v964_v42 = vadd.f32 %v960_v33, %v955_v29 }
 0x1f5   : >> { %v965_v25 = vadd.f32 %v961_v20, %v956_v44  ;;  %v968_v24 = vmul.f32 %v967_v19, %v2948_v8  ;;  %v969_v1 = vmul.f32 %v967_v19, %v2950_v9  ;;  %v970_v28 = vmul.f32 %v967_v19, %v2952_v10 }
 0x1f6   : >> { %v3291_v0 = vadd.f32 %v907_v61, %v3167_v14  ;;  %v966_v12 = vadd.f32 %v962_v13, %v957_v41  ;;  %v971_v15 = vmul.f32 %v967_v19, %v2954_v11  ;;  %v994_v36 = vstv %s4175_s26  ;;  %s4181_s26 = sld [smem:[#allocation36_spill]] }
 0x1f7   : >> { %v939_v26 = vadd.f32 %v935_v3, %v934_v59  ;;  %v940_v58 = vmax.f32 %v936_v40, 0.0  ;;  %v976_v22 = vstv %s4176_s0  ;;  %v999_v34 = vstv %s4177_s21  ;;  %s4182_s0 = sld [smem:[#allocation37_spill]] }
 0x1f8   : >> { %v941_v46 = vmax.f32 %v937_v38, 0.0  ;;  %v995_v31 = vmul.f32 %v994_v36, %v2924_v48  ;;  %v996_v62 = vmul.f32 %v994_v36, %v2926_v49  ;;  %v997_v21 = vmul.f32 %v994_v36, %v2928_v50  ;;  %s4183_s21 = sld [smem:[#allocation38_spill]] }
 0x1f9   : >> { %v942_v2 = vmax.f32 %v938_v57, 0.0  ;;  %v972_v45 = vadd.f32 %v968_v24, %v963_v63  ;;  %v973_v14 = vadd.f32 %v969_v1, %v964_v42  ;;  %v974_v61 = vadd.f32 %v970_v28, %v965_v25 }
 0x1fa   : >> { %v975_v5 = vadd.f32 %v971_v15, %v966_v12  ;;  %v1000_v29 = vmul.f32 %v999_v34, %v2932_v52  ;;  %v1001_v3 = vmul.f32 %v999_v34, %v2934_v53  ;;  %v1002_v44 = vmul.f32 %v999_v34, %v2936_v54 }
 0x1fb   : >> { %v943_v23 = vmax.f32 %v939_v26, 0.0  ;;  %v998_v33 = vmul.f32 %v994_v36, %v2930_v51  ;;  %v1003_v20 = vmul.f32 %v999_v34, %v2938_v55  ;;  %v1008_v41 = vstv %s4178_s3  ;;  %s4184_s3 = sld [smem:[#allocation135_spill]] }
 0x1fc   : >> { %v945_v13 = vmul.f32 %v3264_v56, %v940_v58  ;;  %v1004_v19 = vadd.f32 %v1000_v29, %v995_v31  ;;  %v1005_v59 = vadd.f32 %v1001_v3, %v996_v62  ;;  %v1006_v40 = vadd.f32 %v1002_v44, %v997_v21 }
 0x1fd   : >> { %v946_v38 = vmul.f32 %v3264_v56, %v941_v46  ;;  %v977_v57 = vadd.f32 %v976_v22, %v972_v45  ;;  %v978_v63 = vadd.f32 %v976_v22, %v973_v14  ;;  %v979_v42 = vadd.f32 %v976_v22, %v974_v61 }
 0x1fe   : >> { %v980_v25 = vadd.f32 %v976_v22, %v975_v5  ;;  %v1009_v24 = vmul.f32 %v1008_v41, %v2948_v8  ;;  %v1010_v1 = vmul.f32 %v1008_v41, %v2950_v9  ;;  %v1011_v28 = vmul.f32 %v1008_v41, %v2952_v10 }
 0x1ff   : >> { %v947_v12 = vmul.f32 %v3264_v56, %v942_v2  ;;  %v948_v15 = vmul.f32 %v3264_v56, %v943_v23  ;;  %v1007_v36 = vadd.f32 %v1003_v20, %v998_v33  ;;  %v1012_v26 = vmul.f32 %v1008_v41, %v2954_v11 }
 0x200   : >> { %v3315_v58 = vadd.f32 %v945_v13, %v3189_v7  ;;  %v1013_v34 = vadd.f32 %v1009_v24, %v1004_v19  ;;  %v1014_v46 = vadd.f32 %v1010_v1, %v1005_v59  ;;  %v1015_v22 = vadd.f32 %v1011_v28, %v1006_v40 }
 0x201   : >> { %v981_v31 = vmax.f32 %v977_v57, 0.0  ;;  %v985_v62 = vstv %s4179_s5  ;;  %v1017_v21 = vstv %s4180_s23  ;;  %v1035_v45 = vstv %s4181_s26  ;;  %s4185_s5 = sld [smem:[#allocation107_spill]] }
 0x202   : >> { %v982_v14 = vmax.f32 %v978_v63, 0.0  ;;  %v983_v61 = vmax.f32 %v979_v42, 0.0  ;;  %v984_v5 = vmax.f32 %v980_v25, 0.0  ;;  %v1040_v29 = vstv %s4182_s0  ;;  %s4186_s23 = sld [smem:[#allocation39_spill]] }
 0x203   : >> { %v1016_v2 = vadd.f32 %v1012_v26, %v1007_v36  ;;  %v1018_v3 = vadd.f32 %v1017_v21, %v1013_v34  ;;  %v1019_v56 = vadd.f32 %v1017_v21, %v1014_v46  ;;  %v1020_v44 = vadd.f32 %v1017_v21, %v1015_v22  ;;  %s4187_s26 = sld [smem:[#allocation40_spill]] }
 0x204   : >> { %v1036_v23 = vmul.f32 %v1035_v45, %v2924_v48  ;;  %v1037_v7 = vmul.f32 %v1035_v45, %v2926_v49  ;;  %v1038_v33 = vmul.f32 %v1035_v45, %v2928_v50  ;;  %v1039_v20 = vmul.f32 %v1035_v45, %v2930_v51  ;;  %s4188_s0 = sld [smem:[#allocation41_spill]] }
 0x205   : >> { %v1041_v41 = vmul.f32 %v1040_v29, %v2932_v52  ;;  %v1042_v13 = vmul.f32 %v1040_v29, %v2934_v53  ;;  %v1043_v19 = vmul.f32 %v1040_v29, %v2936_v54  ;;  %v1044_v59 = vmul.f32 %v1040_v29, %v2938_v55 }
 0x206   : >> { %v3330_v40 = vadd.f32 %v946_v38, %v3208_v4  ;;  %v3333_v57 = vadd.f32 %v947_v12, %v3211_v6  ;;  %v3336_v63 = vadd.f32 %v948_v15, %v3214_v17  ;;  %v986_v42 = vmul.f32 %v985_v62, %v981_v31 }
 0x207   : >> { %v987_v25 = vmul.f32 %v985_v62, %v982_v14  ;;  %v988_v24 = vmul.f32 %v985_v62, %v983_v61  ;;  %v989_v1 = vmul.f32 %v985_v62, %v984_v5  ;;  %v1021_v28 = vadd.f32 %v1017_v21, %v1016_v2 }
 0x208   : >> { %v1045_v36 = vadd.f32 %v1041_v41, %v1036_v23  ;;  %v1046_v26 = vadd.f32 %v1042_v13, %v1037_v7  ;;  %v1047_v34 = vadd.f32 %v1043_v19, %v1038_v33  ;;  %v1048_v46 = vadd.f32 %v1044_v59, %v1039_v20 }
 0x209   : >> { %v1022_v4 = vmax.f32 %v1018_v3, 0.0  ;;  %v1023_v38 = vmax.f32 %v1019_v56, 0.0  ;;  %v1024_v22 = vmax.f32 %v1020_v44, 0.0  ;;  %v1049_v6 = vstv %s4183_s21  ;;  %s4189_s21 = sld [smem:[#allocation136_spill]] }
 0x20a   : >> { %v1050_v17 = vmul.f32 %v1049_v6, %v2948_v8  ;;  %v1051_v12 = vmul.f32 %v1049_v6, %v2950_v9  ;;  %v1052_v15 = vmul.f32 %v1049_v6, %v2952_v10  ;;  %v1053_v31 = vmul.f32 %v1049_v6, %v2954_v11 }
 0x20b   : >> { %v1025_v62 = vmax.f32 %v1021_v28, 0.0  ;;  %v1026_v21 = vstv %s4184_s3  ;;  %v1058_v45 = vstv %s4185_s5  ;;  %v1076_v14 = vstv %s4186_s23  ;;  %s4190_s3 = sld [smem:[#allocation108_spill]] }
 0x20c   : >> { %v1054_v61 = vadd.f32 %v1050_v17, %v1045_v36  ;;  %v1055_v5 = vadd.f32 %v1051_v12, %v1046_v26  ;;  %v1056_v29 = vadd.f32 %v1052_v15, %v1047_v34  ;;  %v1057_v2 = vadd.f32 %v1053_v31, %v1048_v46  ;;  %s4191_s5 = sld [smem:[#allocation137_spill]] }
 0x20d   : >> { %v3347_v3 = vadd.f32 %v986_v42, %v3225_v16  ;;  %v3350_v56 = vadd.f32 %v987_v25, %v3228_v27  ;;  %v3353_v44 = vadd.f32 %v988_v24, %v3231_v60  ;;  %v1081_v23 = vstv %s4187_s26  ;;  %s4192_s23 = sld [smem:[#allocation42_spill]] }
 0x20e   : >> { %v3357_v7 = vadd.f32 %v989_v1, %v3235_v47  ;;  %v1027_v33 = vmul.f32 %v1026_v21, %v1022_v4  ;;  %v1028_v20 = vmul.f32 %v1026_v21, %v1023_v38  ;;  %v1029_v41 = vmul.f32 %v1026_v21, %v1024_v22  ;;  %s4193_s26 = sld [smem:[#allocation43_spill]] }
 0x20f   : >> { %v1030_v13 = vmul.f32 %v1026_v21, %v1025_v62  ;;  %v1059_v19 = vadd.f32 %v1058_v45, %v1054_v61  ;;  %v1060_v59 = vadd.f32 %v1058_v45, %v1055_v5  ;;  %v1077_v16 = vmul.f32 %v1076_v14, %v2924_v48 }
 0x210   : >> { %v1061_v42 = vadd.f32 %v1058_v45, %v1056_v29  ;;  %v1062_v27 = vadd.f32 %v1058_v45, %v1057_v2  ;;  %v1078_v25 = vmul.f32 %v1076_v14, %v2926_v49  ;;  %v1082_v60 = vmul.f32 %v1081_v23, %v2932_v52 }
 0x211   : >> { %v1079_v24 = vmul.f32 %v1076_v14, %v2928_v50  ;;  %v1083_v47 = vmul.f32 %v1081_v23, %v2934_v53  ;;  %v1084_v1 = vmul.f32 %v1081_v23, %v2936_v54  ;;  %v1090_v28 = vstv %s4188_s0  ;;  %s4194_s0 = sld [smem:[#allocation44_spill]] }
 0x212   : >> { %v3367_v36 = vadd.f32 %v1027_v33, %v3245_v32  ;;  %v3370_v26 = vadd.f32 %v1028_v20, %v3248_v30  ;;  %v3373_v34 = vadd.f32 %v1029_v41, %v3251_v35  ;;  %v1067_v46 = vstv %s4189_s21  ;;  %s4195_s21 = sld [smem:[#allocation45_spill]] }
 0x213   : >> { %v1063_v4 = vmax.f32 %v1059_v19, 0.0  ;;  %v1064_v38 = vmax.f32 %v1060_v59, 0.0  ;;  %v1080_v22 = vmul.f32 %v1076_v14, %v2930_v51  ;;  %v1085_v6 = vmul.f32 %v1081_v23, %v2938_v55 }
 0x214   : >> { %v1065_v17 = vmax.f32 %v1061_v42, 0.0  ;;  %v1066_v32 = vmax.f32 %v1062_v27, 0.0  ;;  %v1086_v12 = vadd.f32 %v1082_v60, %v1077_v16  ;;  %v1091_v30 = vmul.f32 %v1090_v28, %v2948_v8 }
 0x215   : >> { %v1087_v15 = vadd.f32 %v1083_v47, %v1078_v25  ;;  %v1088_v31 = vadd.f32 %v1084_v1, %v1079_v24  ;;  %v1092_v35 = vmul.f32 %v1090_v28, %v2950_v9  ;;  %v1093_v62 = vmul.f32 %v1090_v28, %v2952_v10 }
 0x216   : >> { %v3382_v21 = vadd.f32 %v1030_v13, %v3260_v43  ;;  %v1099_v45 = vstv %s4190_s3  ;;  %v3386_v61 = vstv %s4191_s5  ;;  %v1117_v14 = vstv %s4192_s23  ;;  %s4196_s3 = sld [smem:[#allocation109_spill]] }
 0x217   : >> { %v1068_v5 = vmul.f32 %v1067_v46, %v1063_v4  ;;  %v1069_v29 = vmul.f32 %v1067_v46, %v1064_v38  ;;  %v1089_v2 = vadd.f32 %v1085_v6, %v1080_v22  ;;  %v1122_v23 = vstv %s4193_s26  ;;  %s4197_s5 = sld [smem:[#allocation46_spill]] }
 0x218   : >> { %v1070_v33 = vmul.f32 %v1067_v46, %v1065_v17  ;;  %v1071_v20 = vmul.f32 %v1067_v46, %v1066_v32  ;;  %v1094_v41 = vmul.f32 %v1090_v28, %v2954_v11  ;;  %v1095_v19 = vadd.f32 %v1091_v30, %v1086_v12  ;;  %s4198_s23 = sld [smem:[#allocation47_spill]] }
 0x219   : >> { %v1096_v59 = vadd.f32 %v1092_v35, %v1087_v15  ;;  %v1097_v16 = vadd.f32 %v1093_v62, %v1088_v31  ;;  %v1118_v42 = vmul.f32 %v1117_v14, %v2924_v48  ;;  %v1119_v43 = vmul.f32 %v1117_v14, %v2926_v49  ;;  %s4199_s26 = sld [smem:[#allocation138_spill]] }
 0x21a   : >> { %v1120_v13 = vmul.f32 %v1117_v14, %v2928_v50  ;;  %v1123_v27 = vmul.f32 %v1122_v23, %v2932_v52  ;;  %v1124_v25 = vmul.f32 %v1122_v23, %v2934_v53  ;;  %v1125_v60 = vmul.f32 %v1122_v23, %v2936_v54 }
 0x21b   : >> { %v3398_v24 = vadd.f32 %v1068_v5, %v3276_v18  ;;  %v1121_v47 = vmul.f32 %v1117_v14, %v2930_v51  ;;  %v1126_v1 = vmul.f32 %v1122_v23, %v2938_v55  ;;  %v1131_v28 = vstv %s4194_s0  ;;  %s4200_s0 = sld [smem:[#allocation110_spill]] }
 0x21c   : >> { %v3404_v46 = vadd.f32 %v1069_v29, %v3282_v39  ;;  %v3407_v4 = vadd.f32 %v1070_v33, %v3285_v37  ;;  %v1098_v38 = vadd.f32 %v1094_v41, %v1089_v2  ;;  %v1100_v22 = vadd.f32 %v1099_v45, %v1095_v19 }
 0x21d   : >> { %v1101_v6 = vadd.f32 %v1099_v45, %v1096_v59  ;;  %v1102_v17 = vadd.f32 %v1099_v45, %v1097_v16  ;;  %v1127_v18 = vadd.f32 %v1123_v27, %v1118_v42  ;;  %v1128_v32 = vadd.f32 %v1124_v25, %v1119_v43 }
 0x21e   : >> { %v1129_v12 = vadd.f32 %v1125_v60, %v1120_v13  ;;  %v1132_v30 = vmul.f32 %v1131_v28, %v2948_v8  ;;  %v1133_v15 = vmul.f32 %v1131_v28, %v2950_v9  ;;  %v1134_v31 = vmul.f32 %v1131_v28, %v2952_v10 }
 0x21f   : >> { %v3413_v39 = vadd.f32 %v1071_v20, %v3291_v0  ;;  %v1130_v37 = vadd.f32 %v1126_v1, %v1121_v47  ;;  %v1135_v35 = vmul.f32 %v1131_v28, %v2954_v11  ;;  %v1158_v62 = vstv %s4195_s21  ;;  %s4201_s21 = sld [smem:[#allocation48_spill]] }
 0x220   : >> { %v1103_v14 = vadd.f32 %v1099_v45, %v1098_v38  ;;  %v1104_v5 = vmax.f32 %v1100_v22, 0.0  ;;  %v1140_v29 = vstv %s4196_s3  ;;  %v1163_v2 = vstv %s4197_s5  ;;  %s4202_s3 = sld [smem:[#allocation49_spill]] }
 0x221   : >> { %v1105_v23 = vmax.f32 %v1101_v6, 0.0  ;;  %v1159_v33 = vmul.f32 %v1158_v62, %v2924_v48  ;;  %v1160_v41 = vmul.f32 %v1158_v62, %v2926_v49  ;;  %v1161_v19 = vmul.f32 %v1158_v62, %v2928_v50  ;;  %s4204_s5 = sld [smem:[#allocation139_spill]] }
 0x222   : >> { %v1106_v59 = vmax.f32 %v1102_v17, 0.0  ;;  %v1136_v16 = vadd.f32 %v1132_v30, %v1127_v18  ;;  %v1137_v0 = vadd.f32 %v1133_v15, %v1128_v32  ;;  %v1138_v20 = vadd.f32 %v1134_v31, %v1129_v12 }
 0x223   : >> { %v1139_v42 = vadd.f32 %v1135_v35, %v1130_v37  ;;  %v1164_v43 = vmul.f32 %v1163_v2, %v2932_v52  ;;  %v1165_v45 = vmul.f32 %v1163_v2, %v2934_v53  ;;  %v1166_v13 = vmul.f32 %v1163_v2, %v2936_v54 }
 0x224   : >> { %v1107_v27 = vmax.f32 %v1103_v14, 0.0  ;;  %v1162_v25 = vmul.f32 %v1158_v62, %v2930_v51  ;;  %v1167_v60 = vmul.f32 %v1163_v2, %v2938_v55  ;;  %v1172_v47 = vstv %s4198_s23  ;;  %s4205_s23 = sld [smem:[#allocation50_spill]] }
 0x225   : >> { %v1109_v1 = vmul.f32 %v3386_v61, %v1104_v5  ;;  %v1168_v28 = vadd.f32 %v1164_v43, %v1159_v33  ;;  %v1169_v38 = vadd.f32 %v1165_v45, %v1160_v41  ;;  %v1170_v22 = vadd.f32 %v1166_v13, %v1161_v19 }
 0x226   : >> { %v1110_v6 = vmul.f32 %v3386_v61, %v1105_v23  ;;  %v1141_v17 = vadd.f32 %v1140_v29, %v1136_v16  ;;  %v1142_v18 = vadd.f32 %v1140_v29, %v1137_v0  ;;  %v1143_v32 = vadd.f32 %v1140_v29, %v1138_v20 }
 0x227   : >> { %v1144_v12 = vadd.f32 %v1140_v29, %v1139_v42  ;;  %v1173_v30 = vmul.f32 %v1172_v47, %v2948_v8  ;;  %v1174_v15 = vmul.f32 %v1172_v47, %v2950_v9  ;;  %v1175_v31 = vmul.f32 %v1172_v47, %v2952_v10 }
 0x228   : >> { %v1111_v37 = vmul.f32 %v3386_v61, %v1106_v59  ;;  %v1112_v35 = vmul.f32 %v3386_v61, %v1107_v27  ;;  %v1171_v62 = vadd.f32 %v1167_v60, %v1162_v25  ;;  %v1176_v14 = vmul.f32 %v1172_v47, %v2954_v11 }
 0x229   : >> { %v3437_v5 = vadd.f32 %v1109_v1, %v3315_v58  ;;  %v1177_v2 = vadd.f32 %v1173_v30, %v1168_v28  ;;  %v1178_v23 = vadd.f32 %v1174_v15, %v1169_v38  ;;  %v1179_v29 = vadd.f32 %v1175_v31, %v1170_v22 }
 0x22a   : >> { %v1145_v33 = vmax.f32 %v1141_v17, 0.0  ;;  %v1149_v41 = vstv %s4199_s26  ;;  %v1181_v19 = vstv %s4200_s0  ;;  %v1199_v16 = vstv %s4201_s21  ;;  %s4206_s26 = sld [smem:[#allocation111_spill]] }
 0x22b   : >> { %4203 = vst [vmem:[#allocation153_spill] sm:$0xff] %v3437_v5  ;;  %v1146_v0 = vmax.f32 %v1142_v18, 0.0  ;;  %v1147_v20 = vmax.f32 %v1143_v32, 0.0  ;;  %v1148_v42 = vmax.f32 %v1144_v12, 0.0  ;;  %v1204_v43 = vstv %s4202_s3  ;;  %s4207_s0 = sld [smem:[#allocation51_spill]] }
 0x22c   : >> { %v1180_v59 = vadd.f32 %v1176_v14, %v1171_v62  ;;  %v1182_v45 = vadd.f32 %v1181_v19, %v1177_v2  ;;  %v1183_v61 = vadd.f32 %v1181_v19, %v1178_v23  ;;  %v1184_v13 = vadd.f32 %v1181_v19, %v1179_v29  ;;  %s4208_s21 = sld [smem:[#allocation52_spill]] }
 0x22d   : >> { %v1200_v27 = vmul.f32 %v1199_v16, %v2924_v48  ;;  %v1201_v58 = vmul.f32 %v1199_v16, %v2926_v49  ;;  %v1202_v25 = vmul.f32 %v1199_v16, %v2928_v50  ;;  %v1203_v60 = vmul.f32 %v1199_v16, %v2930_v51  ;;  %s4209_s3 = sld [smem:[#allocation53_spill]] }
 0x22e   : >> { %v1205_v47 = vmul.f32 %v1204_v43, %v2932_v52  ;;  %v1206_v1 = vmul.f32 %v1204_v43, %v2934_v53  ;;  %v1207_v28 = vmul.f32 %v1204_v43, %v2936_v54  ;;  %v1208_v38 = vmul.f32 %v1204_v43, %v2938_v55 }
 0x22f   : >> { %v3452_v22 = vadd.f32 %v1110_v6, %v3330_v40  ;;  %v3455_v17 = vadd.f32 %v1111_v37, %v3333_v57  ;;  %v1150_v18 = vmul.f32 %v1149_v41, %v1145_v33  ;;  %v1151_v32 = vmul.f32 %v1149_v41, %v1146_v0 }
 0x230   : >> { %v1152_v12 = vmul.f32 %v1149_v41, %v1147_v20  ;;  %v1185_v30 = vadd.f32 %v1181_v19, %v1180_v59  ;;  %v1186_v15 = vmax.f32 %v1182_v45, 0.0  ;;  %v1187_v31 = vmax.f32 %v1183_v61, 0.0 }
 0x231   : >> { %v1190_v62 = vstv %s4204_s5  ;;  %v1209_v14 = vadd.f32 %v1205_v47, %v1200_v27  ;;  %v1210_v2 = vadd.f32 %v1206_v1, %v1201_v58  ;;  %v1211_v23 = vadd.f32 %v1207_v28, %v1202_v25  ;;  %s4210_s5 = sld [smem:[#allocation140_spill]] }
 0x232   : >> { %v1153_v29 = vmul.f32 %v1149_v41, %v1148_v42  ;;  %v1188_v16 = vmax.f32 %v1184_v13, 0.0  ;;  %v1212_v43 = vadd.f32 %v1208_v38, %v1203_v60  ;;  %v1213_v5 = vstv %s4205_s23  ;;  %s4211_s23 = sld [smem:[#allocation112_spill]] }
 0x233   : >> { %v1214_v40 = vmul.f32 %v1213_v5, %v2948_v8  ;;  %v1215_v57 = vmul.f32 %v1213_v5, %v2950_v9  ;;  %v1216_v6 = vmul.f32 %v1213_v5, %v2952_v10  ;;  %v1217_v37 = vmul.f32 %v1213_v5, %v2954_v11 }
 0x234   : >> { %v3464_v33 = vadd.f32 %v1112_v35, %v3336_v63  ;;  %v1189_v19 = vmax.f32 %v1185_v30, 0.0  ;;  %v1191_v0 = vmul.f32 %v1190_v62, %v1186_v15  ;;  %v1192_v20 = vmul.f32 %v1190_v62, %v1187_v31 }
 0x235   : >> { %v1218_v41 = vadd.f32 %v1214_v40, %v1209_v14  ;;  %v1219_v42 = vadd.f32 %v1215_v57, %v1210_v2  ;;  %v1220_v59 = vadd.f32 %v1216_v6, %v1211_v23  ;;  %v1222_v45 = vstv %s4206_s26  ;;  %s4212_s26 = sld [smem:[#allocation141_spill]] }
 0x236   : >> { %v3468_v61 = vadd.f32 %v1150_v18, %v3347_v3  ;;  %v3471_v13 = vadd.f32 %v1151_v32, %v3350_v56  ;;  %v3474_v27 = vadd.f32 %v1152_v12, %v3353_v44  ;;  %v1240_v5 = vstv %s4207_s0  ;;  %s4213_s0 = sld [smem:[#allocation54_spill]] }
 0x237   : >> { %v3478_v63 = vadd.f32 %v1153_v29, %v3357_v7  ;;  %v1193_v35 = vmul.f32 %v1190_v62, %v1188_v16  ;;  %v1221_v58 = vadd.f32 %v1217_v37, %v1212_v43  ;;  %v1245_v25 = vstv %s4208_s21  ;;  %s4214_s21 = sld [smem:[#allocation55_spill]] }
 0x238   : >> { %v1194_v60 = vmul.f32 %v1190_v62, %v1189_v19  ;;  %v1223_v47 = vadd.f32 %v1222_v45, %v1218_v41  ;;  %v1224_v1 = vadd.f32 %v1222_v45, %v1219_v42  ;;  %v1225_v28 = vadd.f32 %v1222_v45, %v1220_v59 }
 0x239   : >> { %v3482_v3 = vadd.f32 %v1191_v0, %v3367_v36  ;;  %v3485_v56 = vadd.f32 %v1192_v20, %v3370_v26  ;;  %v1241_v44 = vmul.f32 %v1240_v5, %v2924_v48  ;;  %v1242_v7 = vmul.f32 %v1240_v5, %v2926_v49 }
 0x23a   : >> { %v1243_v38 = vmul.f32 %v1240_v5, %v2928_v50  ;;  %v1244_v18 = vmul.f32 %v1240_v5, %v2930_v51  ;;  %v1246_v32 = vmul.f32 %v1245_v25, %v2932_v52  ;;  %v1247_v12 = vmul.f32 %v1245_v25, %v2934_v53 }
 0x23b   : >> { %v1226_v36 = vadd.f32 %v1222_v45, %v1221_v58  ;;  %v1248_v30 = vmul.f32 %v1245_v25, %v2936_v54  ;;  %v1249_v26 = vmul.f32 %v1245_v25, %v2938_v55  ;;  %v1254_v15 = vstv %s4209_s3  ;;  %s4215_s3 = sld [smem:[#allocation56_spill]] }
 0x23c   : >> { %v3497_v31 = vadd.f32 %v1193_v35, %v3373_v34  ;;  %v1227_v62 = vmax.f32 %v1223_v47, 0.0  ;;  %v1228_v14 = vmax.f32 %v1224_v1, 0.0  ;;  %v1229_v2 = vmax.f32 %v1225_v28, 0.0 }
 0x23d   : >> { %v3500_v23 = vadd.f32 %v1194_v60, %v3382_v21  ;;  %v1231_v29 = vstv %s4210_s5  ;;  %v1263_v16 = vstv %s4211_s23  ;;  %v3505_v43 = vstv %s4212_s26  ;;  %s4216_s5 = sld [smem:[#allocation113_spill]] }
 0x23e   : >> { %v1250_v40 = vadd.f32 %v1246_v32, %v1241_v44  ;;  %v1251_v57 = vadd.f32 %v1247_v12, %v1242_v7  ;;  %v1255_v6 = vmul.f32 %v1254_v15, %v2948_v8  ;;  %v1256_v37 = vmul.f32 %v1254_v15, %v2950_v9  ;;  %s4217_s23 = sld [smem:[#allocation57_spill]] }
 0x23f   : >> { %v1230_v19 = vmax.f32 %v1226_v36, 0.0  ;;  %v1252_v34 = vadd.f32 %v1248_v30, %v1243_v38  ;;  %v1253_v0 = vadd.f32 %v1249_v26, %v1244_v18  ;;  %v1281_v20 = vstv %s4213_s0  ;;  %s4218_s26 = sld [smem:[#allocation58_spill]] }
 0x240   : >> { %v1232_v41 = vmul.f32 %v1231_v29, %v1227_v62  ;;  %v1233_v42 = vmul.f32 %v1231_v29, %v1228_v14  ;;  %v1234_v59 = vmul.f32 %v1231_v29, %v1229_v2  ;;  %v1286_v45 = vstv %s4214_s21  ;;  %s4219_s0 = sld [smem:[#allocation59_spill]] }
 0x241   : >> { %v1257_v21 = vmul.f32 %v1254_v15, %v2952_v10  ;;  %v1258_v5 = vmul.f32 %v1254_v15, %v2954_v11  ;;  %v1282_v35 = vmul.f32 %v1281_v20, %v2924_v48  ;;  %v1283_v58 = vmul.f32 %v1281_v20, %v2926_v49  ;;  %s4220_s21 = sld [smem:[#allocation142_spill]] }
 0x242   : >> { %v1259_v25 = vadd.f32 %v1255_v6, %v1250_v40  ;;  %v1260_v60 = vadd.f32 %v1256_v37, %v1251_v57  ;;  %v1284_v47 = vmul.f32 %v1281_v20, %v2928_v50  ;;  %v1285_v1 = vmul.f32 %v1281_v20, %v2930_v51 }
 0x243   : >> { %v1287_v28 = vmul.f32 %v1286_v45, %v2932_v52  ;;  %v1288_v44 = vmul.f32 %v1286_v45, %v2934_v53  ;;  %v1289_v7 = vmul.f32 %v1286_v45, %v2936_v54  ;;  %v1290_v38 = vmul.f32 %v1286_v45, %v2938_v55 }
 0x244   : >> { %v1235_v18 = vmul.f32 %v1231_v29, %v1230_v19  ;;  %v3522_v32 = vadd.f32 %v1232_v41, %v3398_v24  ;;  %v3525_v12 = vadd.f32 %v1233_v42, %v3404_v46  ;;  %v1295_v36 = vstv %s4215_s3  ;;  %s4221_s3 = sld [smem:[#allocation114_spill]] }
 0x245   : >> { %v1261_v30 = vadd.f32 %v1257_v21, %v1252_v34  ;;  %v1262_v26 = vadd.f32 %v1258_v5, %v1253_v0  ;;  %v1291_v15 = vadd.f32 %v1287_v28, %v1282_v35  ;;  %v1292_v62 = vadd.f32 %v1288_v44, %v1283_v58 }
 0x246   : >> { %v1264_v14 = vadd.f32 %v1263_v16, %v1259_v25  ;;  %v1265_v2 = vadd.f32 %v1263_v16, %v1260_v60  ;;  %v1293_v40 = vadd.f32 %v1289_v7, %v1284_v47  ;;  %v1294_v57 = vadd.f32 %v1290_v38, %v1285_v1 }
 0x247   : >> { %v1296_v29 = vmul.f32 %v1295_v36, %v2948_v8  ;;  %v1297_v24 = vmul.f32 %v1295_v36, %v2950_v9  ;;  %v1298_v6 = vmul.f32 %v1295_v36, %v2952_v10  ;;  %v1299_v46 = vmul.f32 %v1295_v36, %v2954_v11 }
 0x248   : >> { %v3533_v37 = vadd.f32 %v1234_v59, %v3407_v4  ;;  %v3536_v19 = vadd.f32 %v1235_v18, %v3413_v39  ;;  %v1304_v34 = vstv %s4216_s5  ;;  %v1322_v0 = vstv %s4217_s23  ;;  %s4222_s5 = sld [smem:[#allocation60_spill]] }
 0x249   : >> { %v1266_v20 = vadd.f32 %v1263_v16, %v1261_v30  ;;  %v1300_v41 = vadd.f32 %v1296_v29, %v1291_v15  ;;  %v1301_v42 = vadd.f32 %v1297_v24, %v1292_v62  ;;  %v1327_v45 = vstv %s4218_s26  ;;  %s4223_s23 = sld [smem:[#allocation61_spill]] }
 0x24a   : >> { %v1267_v21 = vadd.f32 %v1263_v16, %v1262_v26  ;;  %v1268_v5 = vmax.f32 %v1264_v14, 0.0  ;;  %v1269_v35 = vmax.f32 %v1265_v2, 0.0  ;;  %v1323_v58 = vmul.f32 %v1322_v0, %v2924_v48  ;;  %s4225_s26 = sld [smem:[#allocation62_spill]] }
 0x24b   : >> { %v1302_v25 = vadd.f32 %v1298_v6, %v1293_v40  ;;  %v1303_v60 = vadd.f32 %v1299_v46, %v1294_v57  ;;  %v1324_v47 = vmul.f32 %v1322_v0, %v2926_v49  ;;  %v1336_v4 = vstv %s4219_s0  ;;  %s4226_s0 = sld [smem:[#allocation143_spill]] }
 0x24c   : >> { %v1325_v59 = vmul.f32 %v1322_v0, %v2928_v50  ;;  %v1328_v39 = vmul.f32 %v1327_v45, %v2932_v52  ;;  %v1329_v1 = vmul.f32 %v1327_v45, %v2934_v53  ;;  %v1330_v28 = vmul.f32 %v1327_v45, %v2936_v54 }
 0x24d   : >> { %v1305_v44 = vadd.f32 %v1304_v34, %v1300_v41  ;;  %v1306_v7 = vadd.f32 %v1304_v34, %v1301_v42  ;;  %v1326_v16 = vmul.f32 %v1322_v0, %v2930_v51  ;;  %v1331_v38 = vmul.f32 %v1327_v45, %v2938_v55 }
 0x24e   : >> { %v1270_v18 = vmax.f32 %v1266_v20, 0.0  ;;  %v1271_v36 = vmax.f32 %v1267_v21, 0.0  ;;  %v1273_v30 = vmul.f32 %v3505_v43, %v1268_v5  ;;  %v1332_v26 = vadd.f32 %v1328_v39, %v1323_v58  ;;  %v4224_v21 = vld [vmem:[#allocation153_spill] sm:$0xff] }
 0x24f   : >> { %v1274_v15 = vmul.f32 %v3505_v43, %v1269_v35  ;;  %v1307_v62 = vadd.f32 %v1304_v34, %v1302_v25  ;;  %v1308_v14 = vadd.f32 %v1304_v34, %v1303_v60  ;;  %v1333_v2 = vadd.f32 %v1329_v1, %v1324_v47 }
 0x250   : >> { %v1334_v40 = vadd.f32 %v1330_v28, %v1325_v59  ;;  %v1337_v57 = vmul.f32 %v1336_v4, %v2948_v8  ;;  %v1338_v29 = vmul.f32 %v1336_v4, %v2950_v9  ;;  %v1339_v24 = vmul.f32 %v1336_v4, %v2952_v10 }
 0x251   : >> { %v1309_v6 = vmax.f32 %v1305_v44, 0.0  ;;  %v1310_v46 = vmax.f32 %v1306_v7, 0.0  ;;  %v1335_v0 = vadd.f32 %v1331_v38, %v1326_v16  ;;  %v1340_v20 = vmul.f32 %v1336_v4, %v2954_v11 }
 0x252   : >> { %v1275_v41 = vmul.f32 %v3505_v43, %v1270_v18  ;;  %v1276_v34 = vmul.f32 %v3505_v43, %v1271_v36  ;;  %v1313_v42 = vstv %s4220_s21  ;;  %v1341_v45 = vadd.f32 %v1337_v57, %v1332_v26  ;;  %s4227_s21 = sld [smem:[#allocation63_spill]] }
 0x253   : >> { %v3560_v5 = vadd.f32 %v1273_v30, %v4224_v21  ;;  %v1342_v35 = vadd.f32 %v1338_v29, %v1333_v2  ;;  %v1345_v58 = vstv %s4221_s3  ;;  %v1363_v25 = vstv %s4222_s5  ;;  %s4228_s3 = sld [smem:[#allocation115_spill]] }
 0x254   : >> { %v3565_v60 = vadd.f32 %v1274_v15, %v3452_v22  ;;  %v1311_v47 = vmax.f32 %v1307_v62, 0.0  ;;  %v1343_v59 = vadd.f32 %v1339_v24, %v1334_v40  ;;  %v1368_v39 = vstv %s4223_s23  ;;  %s4229_s5 = sld [smem:[#allocation64_spill]] }
 0x255   : >> { %v1312_v1 = vmax.f32 %v1308_v14, 0.0  ;;  %v1314_v4 = vmul.f32 %v1313_v42, %v1309_v6  ;;  %v1315_v28 = vmul.f32 %v1313_v42, %v1310_v46  ;;  %v1344_v44 = vadd.f32 %v1340_v20, %v1335_v0  ;;  %s4230_s23 = sld [smem:[#allocation65_spill]] }
 0x256   : >> { %v1346_v7 = vadd.f32 %v1345_v58, %v1341_v45  ;;  %v1364_v43 = vmul.f32 %v1363_v25, %v2924_v48  ;;  %v1365_v16 = vmul.f32 %v1363_v25, %v2926_v49  ;;  %v1366_v38 = vmul.f32 %v1363_v25, %v2928_v50 }
 0x257   : >> { %v1347_v18 = vadd.f32 %v1345_v58, %v1342_v35  ;;  %v1369_v36 = vmul.f32 %v1368_v39, %v2932_v52  ;;  %v1370_v22 = vmul.f32 %v1368_v39, %v2934_v53  ;;  %v1371_v30 = vmul.f32 %v1368_v39, %v2936_v54 }
 0x258   : >> { %v3575_v26 = vadd.f32 %v1275_v41, %v3455_v17  ;;  %v3578_v15 = vadd.f32 %v1276_v34, %v3464_v33  ;;  %v1316_v62 = vmul.f32 %v1313_v42, %v1311_v47  ;;  %v1348_v14 = vadd.f32 %v1345_v58, %v1343_v59 }
 0x259   : >> { %v1317_v2 = vmul.f32 %v1313_v42, %v1312_v1  ;;  %v3581_v40 = vadd.f32 %v1314_v4, %v3468_v61  ;;  %v1367_v57 = vmul.f32 %v1363_v25, %v2930_v51  ;;  %v1372_v29 = vmul.f32 %v1368_v39, %v2938_v55 }
 0x25a   : >> { %v3586_v24 = vadd.f32 %v1315_v28, %v3471_v13  ;;  %v1373_v17 = vadd.f32 %v1369_v36, %v1364_v43  ;;  %v1374_v6 = vadd.f32 %v1370_v22, %v1365_v16  ;;  %v1375_v46 = vadd.f32 %v1371_v30, %v1366_v38 }
 0x25b   : >> { %v1349_v33 = vadd.f32 %v1345_v58, %v1344_v44  ;;  %v1350_v0 = vmax.f32 %v1346_v7, 0.0  ;;  %v1351_v20 = vmax.f32 %v1347_v18, 0.0  ;;  %v1377_v41 = vstv %s4225_s26  ;;  %s4231_s26 = sld [smem:[#allocation144_spill]] }
 0x25c   : >> { %v1352_v34 = vmax.f32 %v1348_v14, 0.0  ;;  %v1378_v61 = vmul.f32 %v1377_v41, %v2948_v8  ;;  %v1379_v42 = vmul.f32 %v1377_v41, %v2950_v9  ;;  %v1380_v45 = vmul.f32 %v1377_v41, %v2952_v10 }
 0x25d   : >> { %v1354_v21 = vstv %s4226_s0  ;;  %v1376_v35 = vadd.f32 %v1372_v29, %v1367_v57  ;;  %v1381_v13 = vmul.f32 %v1377_v41, %v2954_v11  ;;  %v1404_v25 = vstv %s4227_s21  ;;  %s4232_s0 = sld [smem:[#allocation116_spill]] }
 0x25e   : >> { %v1382_v47 = vadd.f32 %v1378_v61, %v1373_v17  ;;  %v1383_v59 = vadd.f32 %v1379_v42, %v1374_v6  ;;  %v1384_v39 = vadd.f32 %v1380_v45, %v1375_v46  ;;  %v1386_v58 = vstv %s4228_s3  ;;  %s4233_s21 = sld [smem:[#allocation66_spill]] }
 0x25f   : >> { %v3597_v1 = vadd.f32 %v1316_v62, %v3474_v27  ;;  %v3600_v4 = vadd.f32 %v1317_v2, %v3478_v63  ;;  %v1353_v28 = vmax.f32 %v1349_v33, 0.0  ;;  %v1409_v44 = vstv %s4229_s5  ;;  %s4234_s3 = sld [smem:[#allocation145_spill]] }
 0x260   : >> { %v1355_v7 = vmul.f32 %v1354_v21, %v1350_v0  ;;  %v1356_v43 = vmul.f32 %v1354_v21, %v1351_v20  ;;  %v1357_v16 = vmul.f32 %v1354_v21, %v1352_v34  ;;  %v1405_v38 = vmul.f32 %v1404_v25, %v2924_v48  ;;  %s4235_s5 = sld [smem:[#allocation67_spill]] }
 0x261   : >> { %v1385_v18 = vadd.f32 %v1381_v13, %v1376_v35  ;;  %v1387_v36 = vadd.f32 %v1386_v58, %v1382_v47  ;;  %v1388_v22 = vadd.f32 %v1386_v58, %v1383_v59  ;;  %v1389_v30 = vadd.f32 %v1386_v58, %v1384_v39 }
 0x262   : >> { %v1406_v14 = vmul.f32 %v1404_v25, %v2926_v49  ;;  %v1407_v27 = vmul.f32 %v1404_v25, %v2928_v50  ;;  %v1410_v63 = vmul.f32 %v1409_v44, %v2932_v52  ;;  %v1411_v62 = vmul.f32 %v1409_v44, %v2934_v53 }
 0x263   : >> { %v1408_v2 = vmul.f32 %v1404_v25, %v2930_v51  ;;  %v1412_v57 = vmul.f32 %v1409_v44, %v2936_v54  ;;  %v1413_v29 = vmul.f32 %v1409_v44, %v2938_v55  ;;  %v1418_v17 = vstv %s4230_s23  ;;  %s4236_s23 = sld [smem:[#allocation68_spill]] }
 0x264   : >> { %v1358_v6 = vmul.f32 %v1354_v21, %v1353_v28  ;;  %v3613_v46 = vadd.f32 %v1355_v7, %v3482_v3  ;;  %v3616_v33 = vadd.f32 %v1356_v43, %v3485_v56  ;;  %v1395_v0 = vstv %s4231_s26  ;;  %s4237_s26 = sld [smem:[#allocation69_spill]] }
 0x265   : >> { %v1390_v20 = vadd.f32 %v1386_v58, %v1385_v18  ;;  %v1391_v41 = vmax.f32 %v1387_v36, 0.0  ;;  %v1392_v34 = vmax.f32 %v1388_v22, 0.0  ;;  %v1393_v61 = vmax.f32 %v1389_v30, 0.0 }
 0x266   : >> { %v1414_v42 = vadd.f32 %v1410_v63, %v1405_v38  ;;  %v1415_v45 = vadd.f32 %v1411_v62, %v1406_v14  ;;  %v1419_v35 = vmul.f32 %v1418_v17, %v2948_v8  ;;  %v1420_v21 = vmul.f32 %v1418_v17, %v2950_v9 }
 0x267   : >> { %v1416_v3 = vadd.f32 %v1412_v57, %v1407_v27  ;;  %v1417_v13 = vadd.f32 %v1413_v29, %v1408_v2  ;;  %v1421_v56 = vmul.f32 %v1418_v17, %v2952_v10  ;;  %v1422_v25 = vmul.f32 %v1418_v17, %v2954_v11 }
 0x268   : >> { %v3624_v47 = vadd.f32 %v1357_v16, %v3497_v31  ;;  %v3627_v59 = vadd.f32 %v1358_v6, %v3500_v23  ;;  %v1427_v39 = vstv %s4232_s0  ;;  %v1445_v58 = vstv %s4233_s21  ;;  %s4238_s0 = sld [smem:[#allocation117_spill]] }
 0x269   : >> { %v1394_v28 = vmax.f32 %v1390_v20, 0.0  ;;  %v1396_v44 = vmul.f32 %v1395_v0, %v1391_v41  ;;  %v1436_v7 = vstv %s4234_s3  ;;  %v1450_v43 = vstv %s4235_s5  ;;  %s4239_s21 = sld [smem:[#allocation70_spill]] }
 0x26a   : >> { %v1397_v38 = vmul.f32 %v1395_v0, %v1392_v34  ;;  %v1398_v18 = vmul.f32 %v1395_v0, %v1393_v61  ;;  %v1423_v36 = vadd.f32 %v1419_v35, %v1414_v42  ;;  %v1424_v22 = vadd.f32 %v1420_v21, %v1415_v45  ;;  %s4240_s3 = sld [smem:[#allocation71_spill]] }
 0x26b   : >> { %v1425_v30 = vadd.f32 %v1421_v56, %v1416_v3  ;;  %v1426_v14 = vadd.f32 %v1422_v25, %v1417_v13  ;;  %v1446_v27 = vmul.f32 %v1445_v58, %v2924_v48  ;;  %v1447_v31 = vmul.f32 %v1445_v58, %v2926_v49  ;;  %s4241_s5 = sld [smem:[#allocation146_spill]] }
 0x26c   : >> { %v1448_v23 = vmul.f32 %v1445_v58, %v2928_v50  ;;  %v1451_v16 = vmul.f32 %v1450_v43, %v2932_v52  ;;  %v1452_v63 = vmul.f32 %v1450_v43, %v2934_v53  ;;  %v1453_v62 = vmul.f32 %v1450_v43, %v2936_v54 }
 0x26d   : >> { %v1399_v2 = vmul.f32 %v1395_v0, %v1394_v28  ;;  %v1449_v57 = vmul.f32 %v1445_v58, %v2930_v51  ;;  %v1454_v29 = vmul.f32 %v1450_v43, %v2938_v55  ;;  %v1459_v17 = vstv %s4236_s23  ;;  %s4242_s23 = sld [smem:[#allocation118_spill]] }
 0x26e   : >> { %v3643_v6 = vadd.f32 %v1396_v44, %v3522_v32  ;;  %v3646_v20 = vadd.f32 %v1397_v38, %v3525_v12  ;;  %v3649_v41 = vadd.f32 %v1398_v18, %v3533_v37  ;;  %v1428_v34 = vadd.f32 %v1427_v39, %v1423_v36 }
 0x26f   : >> { %v1429_v61 = vadd.f32 %v1427_v39, %v1424_v22  ;;  %v1430_v0 = vadd.f32 %v1427_v39, %v1425_v30  ;;  %v1431_v42 = vadd.f32 %v1427_v39, %v1426_v14  ;;  %v1455_v45 = vadd.f32 %v1451_v16, %v1446_v27 }
 0x270   : >> { %v1456_v35 = vadd.f32 %v1452_v63, %v1447_v31  ;;  %v1457_v21 = vadd.f32 %v1453_v62, %v1448_v23  ;;  %v1460_v3 = vmul.f32 %v1459_v17, %v2948_v8  ;;  %v1461_v32 = vmul.f32 %v1459_v17, %v2950_v9 }
 0x271   : >> { %v1458_v13 = vadd.f32 %v1454_v29, %v1449_v57  ;;  %v1462_v12 = vmul.f32 %v1459_v17, %v2952_v10  ;;  %v1463_v37 = vmul.f32 %v1459_v17, %v2954_v11  ;;  %v1486_v56 = vstv %s4237_s26  ;;  %s4243_s26 = sld [smem:[#allocation72_spill]] }
 0x272   : >> { %v3657_v25 = vadd.f32 %v1399_v2, %v3536_v19  ;;  %v1432_v58 = vmax.f32 %v1428_v34, 0.0  ;;  %v1468_v28 = vstv %s4238_s0  ;;  %v1491_v39 = vstv %s4239_s21  ;;  %s4244_s0 = sld [smem:[#allocation73_spill]] }
 0x273   : >> { %v1433_v44 = vmax.f32 %v1429_v61, 0.0  ;;  %v1434_v43 = vmax.f32 %v1430_v0, 0.0  ;;  %v1487_v38 = vmul.f32 %v1486_v56, %v2924_v48  ;;  %v1488_v18 = vmul.f32 %v1486_v56, %v2926_v49  ;;  %s4245_s21 = sld [smem:[#allocation147_spill]] }
 0x274   : >> { %v1435_v36 = vmax.f32 %v1431_v42, 0.0  ;;  %v1464_v22 = vadd.f32 %v1460_v3, %v1455_v45  ;;  %v1465_v30 = vadd.f32 %v1461_v32, %v1456_v35  ;;  %v1500_v14 = vstv %s4240_s3  ;;  %s4246_s3 = sld [smem:[#allocation74_spill]] }
 0x275   : >> { %v1466_v27 = vadd.f32 %v1462_v12, %v1457_v21  ;;  %v1467_v31 = vadd.f32 %v1463_v37, %v1458_v13  ;;  %v1492_v23 = vmul.f32 %v1491_v39, %v2932_v52  ;;  %v1493_v19 = vmul.f32 %v1491_v39, %v2934_v53 }
 0x276   : >> { %v1489_v16 = vmul.f32 %v1486_v56, %v2928_v50  ;;  %v1490_v63 = vmul.f32 %v1486_v56, %v2930_v51  ;;  %v1494_v62 = vmul.f32 %v1491_v39, %v2936_v54  ;;  %v1495_v2 = vmul.f32 %v1491_v39, %v2938_v55 }
 0x277   : >> { %v1437_v57 = vmul.f32 %v1436_v7, %v1432_v58  ;;  %v1438_v29 = vmul.f32 %v1436_v7, %v1433_v44  ;;  %v1496_v17 = vadd.f32 %v1492_v23, %v1487_v38  ;;  %v1497_v34 = vadd.f32 %v1493_v19, %v1488_v18 }
 0x278   : >> { %v1439_v61 = vmul.f32 %v1436_v7, %v1434_v43  ;;  %v1440_v0 = vmul.f32 %v1436_v7, %v1435_v36  ;;  %v1469_v42 = vadd.f32 %v1468_v28, %v1464_v22  ;;  %v1470_v45 = vadd.f32 %v1468_v28, %v1465_v30 }
 0x279   : >> { %v1471_v35 = vadd.f32 %v1468_v28, %v1466_v27  ;;  %v1472_v21 = vadd.f32 %v1468_v28, %v1467_v31  ;;  %v1501_v3 = vmul.f32 %v1500_v14, %v2948_v8  ;;  %v1502_v32 = vmul.f32 %v1500_v14, %v2950_v9 }
 0x27a   : >> { %v1498_v13 = vadd.f32 %v1494_v62, %v1489_v16  ;;  %v1499_v12 = vadd.f32 %v1495_v2, %v1490_v63  ;;  %v1503_v37 = vmul.f32 %v1500_v14, %v2952_v10  ;;  %v1504_v56 = vmul.f32 %v1500_v14, %v2954_v11 }
 0x27b   : >> { %v3675_v7 = vadd.f32 %v1437_v57, %v3560_v5  ;;  %v3678_v58 = vadd.f32 %v1438_v29, %v3565_v60  ;;  %v1505_v39 = vadd.f32 %v1501_v3, %v1496_v17  ;;  %v1506_v44 = vadd.f32 %v1502_v32, %v1497_v34 }
 0x27c   : >> { %v1473_v28 = vmax.f32 %v1469_v42, 0.0  ;;  %v1477_v43 = vstv %s4241_s5  ;;  %v1509_v38 = vstv %s4242_s23  ;;  %v1527_v18 = vstv %s4243_s26  ;;  %s4247_s5 = sld [smem:[#allocation119_spill]] }
 0x27d   : >> { %v1474_v36 = vmax.f32 %v1470_v45, 0.0  ;;  %v1475_v22 = vmax.f32 %v1471_v35, 0.0  ;;  %v1476_v30 = vmax.f32 %v1472_v21, 0.0  ;;  %v1532_v27 = vstv %s4244_s0  ;;  %s4248_s23 = sld [smem:[#allocation75_spill]] }
 0x27e   : >> { %v1507_v31 = vadd.f32 %v1503_v37, %v1498_v13  ;;  %v1508_v23 = vadd.f32 %v1504_v56, %v1499_v12  ;;  %v1510_v19 = vadd.f32 %v1509_v38, %v1505_v39  ;;  %v1511_v14 = vadd.f32 %v1509_v38, %v1506_v44  ;;  %s4249_s26 = sld [smem:[#allocation76_spill]] }
 0x27f   : >> { %v1528_v5 = vmul.f32 %v1527_v18, %v2924_v48  ;;  %v1529_v60 = vmul.f32 %v1527_v18, %v2926_v49  ;;  %v1530_v16 = vmul.f32 %v1527_v18, %v2928_v50  ;;  %v1531_v63 = vmul.f32 %v1527_v18, %v2930_v51  ;;  %s4250_s0 = sld [smem:[#allocation77_spill]] }
 0x280   : >> { %v1533_v62 = vmul.f32 %v1532_v27, %v2932_v52  ;;  %v1534_v2 = vmul.f32 %v1532_v27, %v2934_v53  ;;  %v1535_v57 = vmul.f32 %v1532_v27, %v2936_v54  ;;  %v1536_v29 = vmul.f32 %v1532_v27, %v2938_v55 }
 0x281   : >> { %v3693_v17 = vadd.f32 %v1439_v61, %v3575_v26  ;;  %v3696_v34 = vadd.f32 %v1440_v0, %v3578_v15  ;;  %v1478_v42 = vmul.f32 %v1477_v43, %v1473_v28  ;;  %v1479_v45 = vmul.f32 %v1477_v43, %v1474_v36 }
 0x282   : >> { %v1512_v35 = vadd.f32 %v1509_v38, %v1507_v31  ;;  %v1513_v21 = vadd.f32 %v1509_v38, %v1508_v23  ;;  %v1514_v3 = vmax.f32 %v1510_v19, 0.0  ;;  %v1518_v32 = vstv %s4245_s21  ;;  %s4251_s21 = sld [smem:[#allocation120_spill]] }
 0x283   : >> { %v1537_v13 = vadd.f32 %v1533_v62, %v1528_v5  ;;  %v1538_v12 = vadd.f32 %v1534_v2, %v1529_v60  ;;  %v1539_v37 = vadd.f32 %v1535_v57, %v1530_v16  ;;  %v1540_v56 = vadd.f32 %v1536_v29, %v1531_v63 }
 0x284   : >> { %v1480_v39 = vmul.f32 %v1477_v43, %v1475_v22  ;;  %v1481_v44 = vmul.f32 %v1477_v43, %v1476_v30  ;;  %v1515_v18 = vmax.f32 %v1511_v14, 0.0  ;;  %v1541_v27 = vstv %s4246_s3  ;;  %s4252_s3 = sld [smem:[#allocation78_spill]] }
 0x285   : >> { %v1542_v26 = vmul.f32 %v1541_v27, %v2948_v8  ;;  %v1543_v15 = vmul.f32 %v1541_v27, %v2950_v9  ;;  %v1544_v61 = vmul.f32 %v1541_v27, %v2952_v10  ;;  %v1545_v0 = vmul.f32 %v1541_v27, %v2954_v11 }
 0x286   : >> { %v1516_v28 = vmax.f32 %v1512_v35, 0.0  ;;  %v1517_v38 = vmax.f32 %v1513_v21, 0.0  ;;  %v1519_v36 = vmul.f32 %v1518_v32, %v1514_v3  ;;  %v1550_v31 = vstv %s4247_s5  ;;  %s4253_s5 = sld [smem:[#allocation79_spill]] }
 0x287   : >> { %v1546_v23 = vadd.f32 %v1542_v26, %v1537_v13  ;;  %v1547_v19 = vadd.f32 %v1543_v15, %v1538_v12  ;;  %v1548_v22 = vadd.f32 %v1544_v61, %v1539_v37  ;;  %v1549_v43 = vadd.f32 %v1545_v0, %v1540_v56 }
 0x288   : >> { %v3706_v30 = vadd.f32 %v1478_v42, %v3581_v40  ;;  %v3709_v14 = vadd.f32 %v1479_v45, %v3586_v24  ;;  %v3712_v5 = vadd.f32 %v1480_v39, %v3597_v1  ;;  %v1568_v60 = vstv %s4248_s23  ;;  %s4254_s23 = sld [smem:[#allocation80_spill]] }
 0x289   : >> { %v3716_v16 = vadd.f32 %v1481_v44, %v3600_v4  ;;  %v1520_v63 = vmul.f32 %v1518_v32, %v1515_v18  ;;  %v1551_v62 = vadd.f32 %v1550_v31, %v1546_v23  ;;  %v1573_v2 = vstv %s4249_s26  ;;  %s4255_s26 = sld [smem:[#allocation121_spill]] }
 0x28a   : >> { %v1521_v57 = vmul.f32 %v1518_v32, %v1516_v28  ;;  %v1522_v29 = vmul.f32 %v1518_v32, %v1517_v38  ;;  %v1552_v35 = vadd.f32 %v1550_v31, %v1547_v19  ;;  %v1553_v21 = vadd.f32 %v1550_v31, %v1548_v22 }
 0x28b   : >> { %v3720_v40 = vadd.f32 %v1519_v36, %v3613_v46  ;;  %v1554_v24 = vadd.f32 %v1550_v31, %v1549_v43  ;;  %v1569_v1 = vmul.f32 %v1568_v60, %v2924_v48  ;;  %v1570_v42 = vmul.f32 %v1568_v60, %v2926_v49 }
 0x28c   : >> { %v1571_v4 = vmul.f32 %v1568_v60, %v2928_v50  ;;  %v1572_v45 = vmul.f32 %v1568_v60, %v2930_v51  ;;  %v1574_v3 = vmul.f32 %v1573_v2, %v2932_v52  ;;  %v1575_v32 = vmul.f32 %v1573_v2, %v2934_v53 }
 0x28d   : >> { %v1555_v13 = vmax.f32 %v1551_v62, 0.0  ;;  %v1576_v12 = vmul.f32 %v1573_v2, %v2936_v54  ;;  %v1577_v46 = vmul.f32 %v1573_v2, %v2938_v55  ;;  %v1582_v37 = vstv %s4250_s0  ;;  %s4256_s0 = sld [smem:[#allocation81_spill]] }
 0x28e   : >> { %v3732_v56 = vadd.f32 %v1520_v63, %v3616_v33  ;;  %v1556_v39 = vmax.f32 %v1552_v35, 0.0  ;;  %v1557_v44 = vmax.f32 %v1553_v21, 0.0  ;;  %v1559_v18 = vstv %s2876_s6 }
 0x28f   : >> { %v3736_v27 = vadd.f32 %v1521_v57, %v3624_v47  ;;  %v3739_v26 = vadd.f32 %v1522_v29, %v3627_v59  ;;  %v1558_v15 = vmax.f32 %v1554_v24, 0.0  ;;  %v1591_v61 = vstv %s4251_s21  ;;  %s4257_s21 = sld [smem:[#allocation82_spill]] }
 0x290   : >> { %v1578_v0 = vadd.f32 %v1574_v3, %v1569_v1  ;;  %v1579_v28 = vadd.f32 %v1575_v32, %v1570_v42  ;;  %v1583_v38 = vmul.f32 %v1582_v37, %v2948_v8  ;;  %v3744_v36 = vstv %s2878_s30 }
 0x291   : >> { %v1560_v33 = vmul.f32 %v1559_v18, %v1555_v13  ;;  %v1580_v31 = vadd.f32 %v1576_v12, %v1571_v4  ;;  %v1581_v23 = vadd.f32 %v1577_v46, %v1572_v45  ;;  %v1609_v19 = vstv %s4252_s3  ;;  %s4258_s3 = sld [smem:[#allocation83_spill]] }
 0x292   : >> { %v1561_v22 = vmul.f32 %v1559_v18, %v1556_v39  ;;  %v1562_v43 = vmul.f32 %v1559_v18, %v1557_v44  ;;  %v1584_v47 = vmul.f32 %v1582_v37, %v2950_v9  ;;  %v1614_v60 = vstv %s4253_s5  ;;  %s4259_s5 = sld [smem:[#allocation122_spill]] }
 0x293   : >> { %v1563_v59 = vmul.f32 %v1559_v18, %v1558_v15  ;;  %v1585_v63 = vmul.f32 %v1582_v37, %v2952_v10  ;;  %v1610_v62 = vmul.f32 %v1609_v19, %v2924_v48  ;;  %v1611_v2 = vmul.f32 %v1609_v19, %v2926_v49 }
 0x294   : >> { %v1586_v57 = vmul.f32 %v1582_v37, %v2954_v11  ;;  %v1587_v29 = vadd.f32 %v1583_v38, %v1578_v0  ;;  %v1612_v35 = vmul.f32 %v1609_v19, %v2928_v50  ;;  %v1613_v21 = vmul.f32 %v1609_v19, %v2930_v51 }
 0x295   : >> { %v1615_v24 = vmul.f32 %v1614_v60, %v2932_v52  ;;  %v1616_v1 = vmul.f32 %v1614_v60, %v2934_v53  ;;  %v1617_v42 = vmul.f32 %v1614_v60, %v2936_v54  ;;  %v1618_v4 = vmul.f32 %v1614_v60, %v2938_v55 }
 0x296   : >> { %v3760_v45 = vadd.f32 %v1560_v33, %v3643_v6  ;;  %v3763_v3 = vadd.f32 %v1561_v22, %v3646_v20  ;;  %v1588_v32 = vadd.f32 %v1584_v47, %v1579_v28  ;;  %v1623_v13 = vstv %s4254_s23  ;;  %s4260_s23 = sld [smem:[#allocation84_spill]] }
 0x297   : >> { %v3767_v12 = vadd.f32 %v1562_v43, %v3649_v41  ;;  %v1589_v46 = vadd.f32 %v1585_v63, %v1580_v31  ;;  %v1619_v37 = vadd.f32 %v1615_v24, %v1610_v62  ;;  %v1620_v39 = vadd.f32 %v1616_v1, %v1611_v2 }
 0x298   : >> { %v1590_v44 = vadd.f32 %v1586_v57, %v1581_v23  ;;  %v1592_v18 = vadd.f32 %v1591_v61, %v1587_v29  ;;  %v1621_v15 = vadd.f32 %v1617_v42, %v1612_v35  ;;  %v1622_v0 = vadd.f32 %v1618_v4, %v1613_v21 }
 0x299   : >> { %v1624_v6 = vmul.f32 %v1623_v13, %v2948_v8  ;;  %v1625_v20 = vmul.f32 %v1623_v13, %v2950_v9  ;;  %v1626_v28 = vmul.f32 %v1623_v13, %v2952_v10  ;;  %v1627_v38 = vmul.f32 %v1623_v13, %v2954_v11 }
 0x29a   : >> { %v3774_v33 = vadd.f32 %v1563_v59, %v3657_v25  ;;  %v1593_v41 = vadd.f32 %v1591_v61, %v1588_v32  ;;  %v1632_v31 = vstv %s4255_s26  ;;  %v1650_v19 = vstv %s4256_s0  ;;  %s4261_s26 = sld [smem:[#allocation85_spill]] }
 0x29b   : >> { %v1594_v22 = vadd.f32 %v1591_v61, %v1589_v46  ;;  %v1628_v43 = vadd.f32 %v1624_v6, %v1619_v37  ;;  %v1629_v23 = vadd.f32 %v1625_v20, %v1620_v39  ;;  %v1655_v47 = vstv %s4257_s21  ;;  %s4262_s0 = sld [smem:[#allocation86_spill]] }
 0x29c   : >> { %v1595_v60 = vadd.f32 %v1591_v61, %v1590_v44  ;;  %v1596_v63 = vmax.f32 %v1592_v18, 0.0  ;;  %v1630_v62 = vadd.f32 %v1626_v28, %v1621_v15  ;;  %v1651_v2 = vmul.f32 %v1650_v19, %v2924_v48  ;;  %s4263_s21 = sld [smem:[#allocation123_spill]] }
 0x29d   : >> { %v1631_v57 = vadd.f32 %v1627_v38, %v1622_v0  ;;  %v1633_v29 = vadd.f32 %v1632_v31, %v1628_v43  ;;  %v1652_v35 = vmul.f32 %v1650_v19, %v2926_v49  ;;  %v1653_v25 = vmul.f32 %v1650_v19, %v2928_v50 }
 0x29e   : >> { %v1634_v59 = vadd.f32 %v1632_v31, %v1629_v23  ;;  %v1656_v21 = vmul.f32 %v1655_v47, %v2932_v52  ;;  %v1657_v24 = vmul.f32 %v1655_v47, %v2934_v53  ;;  %v1658_v1 = vmul.f32 %v1655_v47, %v2936_v54 }
 0x29f   : >> { %v1597_v42 = vmax.f32 %v1593_v41, 0.0  ;;  %v1654_v61 = vmul.f32 %v1650_v19, %v2930_v51  ;;  %v1659_v4 = vmul.f32 %v1655_v47, %v2938_v55  ;;  %v1664_v32 = vstv %s4258_s3  ;;  %s4264_s3 = sld [smem:[#allocation87_spill]] }
 0x2a0   : >> { %v1598_v13 = vmax.f32 %v1594_v22, 0.0  ;;  %v1599_v46 = vmax.f32 %v1595_v60, 0.0  ;;  %v1601_v37 = vmul.f32 %v3744_v36, %v1596_v63  ;;  %v1660_v39 = vadd.f32 %v1656_v21, %v1651_v2 }
 0x2a1   : >> { %v1635_v44 = vadd.f32 %v1632_v31, %v1630_v62  ;;  %v1636_v18 = vadd.f32 %v1632_v31, %v1631_v57  ;;  %v1637_v15 = vmax.f32 %v1633_v29, 0.0  ;;  %v1641_v0 = vstv %s2880_s22 }
 0x2a2   : >> { %v1638_v6 = vmax.f32 %v1634_v59, 0.0  ;;  %v1661_v20 = vadd.f32 %v1657_v24, %v1652_v35  ;;  %v1662_v28 = vadd.f32 %v1658_v1, %v1653_v25  ;;  %v1665_v38 = vmul.f32 %v1664_v32, %v2948_v8 }
 0x2a3   : >> { %v1663_v41 = vadd.f32 %v1659_v4, %v1654_v61  ;;  %v1666_v19 = vmul.f32 %v1664_v32, %v2950_v9  ;;  %v1667_v22 = vmul.f32 %v1664_v32, %v2952_v10  ;;  %v1668_v43 = vmul.f32 %v1664_v32, %v2954_v11 }
 0x2a4   : >> { %v1602_v23 = vmul.f32 %v3744_v36, %v1597_v42  ;;  %v1603_v31 = vmul.f32 %v3744_v36, %v1598_v13  ;;  %v1604_v47 = vmul.f32 %v3744_v36, %v1599_v46  ;;  %v1669_v60 = vadd.f32 %v1665_v38, %v1660_v39 }
 0x2a5   : >> { %v3798_v63 = vadd.f32 %v1601_v37, %v3675_v7  ;;  %v1639_v62 = vmax.f32 %v1635_v44, 0.0  ;;  %v1673_v2 = vstv %s4259_s5  ;;  %v1691_v57 = vstv %s4260_s23  ;;  %s4265_s5 = sld [smem:[#allocation88_spill]] }
 0x2a6   : >> { %v1640_v29 = vmax.f32 %v1636_v18, 0.0  ;;  %v1642_v35 = vmul.f32 %v1641_v0, %v1637_v15  ;;  %v1643_v25 = vmul.f32 %v1641_v0, %v1638_v6  ;;  %v1696_v59 = vstv %s4261_s26  ;;  %s4266_s23 = sld [smem:[#allocation89_spill]] }
 0x2a7   : >> { %v1670_v21 = vadd.f32 %v1666_v19, %v1661_v20  ;;  %v1671_v24 = vadd.f32 %v1667_v22, %v1662_v28  ;;  %v1672_v1 = vadd.f32 %v1668_v43, %v1663_v41  ;;  %v1674_v61 = vadd.f32 %v1673_v2, %v1669_v60  ;;  %s4267_s26 = sld [smem:[#allocation90_spill]] }
 0x2a8   : >> { %v1692_v42 = vmul.f32 %v1691_v57, %v2924_v48  ;;  %v1693_v4 = vmul.f32 %v1691_v57, %v2926_v49  ;;  %v1694_v36 = vmul.f32 %v1691_v57, %v2928_v50  ;;  %v1695_v7 = vmul.f32 %v1691_v57, %v2930_v51 }
 0x2a9   : >> { %v1697_v32 = vmul.f32 %v1696_v59, %v2932_v52  ;;  %v1698_v13 = vmul.f32 %v1696_v59, %v2934_v53  ;;  %v1699_v46 = vmul.f32 %v1696_v59, %v2936_v54  ;;  %v1700_v37 = vmul.f32 %v1696_v59, %v2938_v55 }
 0x2aa   : >> { %v3812_v39 = vadd.f32 %v1602_v23, %v3678_v58  ;;  %v3815_v44 = vadd.f32 %v1603_v31, %v3693_v17  ;;  %v3818_v18 = vadd.f32 %v1604_v47, %v3696_v34  ;;  %v1644_v15 = vmul.f32 %v1641_v0, %v1639_v62 }
 0x2ab   : >> { %v1645_v6 = vmul.f32 %v1641_v0, %v1640_v29  ;;  %v3821_v20 = vadd.f32 %v1642_v35, %v3706_v30  ;;  %v3824_v28 = vadd.f32 %v1643_v25, %v3709_v14  ;;  %v1675_v38 = vadd.f32 %v1673_v2, %v1670_v21 }
 0x2ac   : >> { %v1676_v58 = vadd.f32 %v1673_v2, %v1671_v24  ;;  %v1701_v41 = vadd.f32 %v1697_v32, %v1692_v42  ;;  %v1702_v19 = vadd.f32 %v1698_v13, %v1693_v4  ;;  %v1703_v17 = vadd.f32 %v1699_v46, %v1694_v36 }
 0x2ad   : >> { %v1677_v22 = vadd.f32 %v1673_v2, %v1672_v1  ;;  %v1678_v43 = vmax.f32 %v1674_v61, 0.0  ;;  %v1704_v34 = vadd.f32 %v1700_v37, %v1695_v7  ;;  %v1705_v23 = vstv %s4262_s0  ;;  %s4268_s0 = sld [smem:[#allocation91_spill]] }
 0x2ae   : >> { %v1706_v0 = vmul.f32 %v1705_v23, %v2948_v8  ;;  %v1707_v30 = vmul.f32 %v1705_v23, %v2950_v9  ;;  %v1708_v31 = vmul.f32 %v1705_v23, %v2952_v10  ;;  %v1709_v14 = vmul.f32 %v1705_v23, %v2954_v11 }
 0x2af   : >> { %v3832_v47 = vadd.f32 %v1644_v15, %v3712_v5  ;;  %v1682_v60 = vstv %s2882_s27  ;;  %v1714_v62 = vstv %s4263_s21  ;;  %v1732_v57 = vstv %s4264_s3  ;;  %s4269_s21 = sld [smem:[#allocation124_spill]] }
 0x2b0   : >> { %v1679_v29 = vmax.f32 %v1675_v38, 0.0  ;;  %v1710_v2 = vadd.f32 %v1706_v0, %v1701_v41  ;;  %v1711_v35 = vadd.f32 %v1707_v30, %v1702_v19  ;;  %v1712_v25 = vadd.f32 %v1708_v31, %v1703_v17  ;;  %s4270_s3 = sld [smem:[#allocation148_spill]] }
 0x2b1   : >> { %v1680_v59 = vmax.f32 %v1676_v58, 0.0  ;;  %v1681_v21 = vmax.f32 %v1677_v22, 0.0  ;;  %v1713_v24 = vadd.f32 %v1709_v14, %v1704_v34  ;;  %v1737_v1 = vstv %s4265_s5  ;;  %s4271_s5 = sld [smem:[#allocation92_spill]] }
 0x2b2   : >> { %v1683_v61 = vmul.f32 %v1682_v60, %v1678_v43  ;;  %v1715_v42 = vadd.f32 %v1714_v62, %v1710_v2  ;;  %v1733_v4 = vmul.f32 %v1732_v57, %v2924_v48  ;;  %v1734_v5 = vmul.f32 %v1732_v57, %v2926_v49 }
 0x2b3   : >> { %v1735_v36 = vmul.f32 %v1732_v57, %v2928_v50  ;;  %v1738_v7 = vmul.f32 %v1737_v1, %v2932_v52  ;;  %v1739_v32 = vmul.f32 %v1737_v1, %v2934_v53  ;;  %v1740_v13 = vmul.f32 %v1737_v1, %v2936_v54 }
 0x2b4   : >> { %v1684_v46 = vmul.f32 %v1682_v60, %v1679_v29  ;;  %v1716_v37 = vadd.f32 %v1714_v62, %v1711_v35  ;;  %v1717_v15 = vadd.f32 %v1714_v62, %v1712_v25  ;;  %v1746_v38 = vstv %s4266_s23  ;;  %s4272_s23 = sld [smem:[#allocation125_spill]] }
 0x2b5   : >> { %v1718_v58 = vadd.f32 %v1714_v62, %v1713_v24  ;;  %v1719_v41 = vmax.f32 %v1715_v42, 0.0  ;;  %v1736_v19 = vmul.f32 %v1732_v57, %v2930_v51  ;;  %v1741_v17 = vmul.f32 %v1737_v1, %v2938_v55 }
 0x2b6   : >> { %v1685_v22 = vmul.f32 %v1682_v60, %v1680_v59  ;;  %v1723_v43 = vstv %s2884_s2  ;;  %v1742_v34 = vadd.f32 %v1738_v7, %v1733_v4  ;;  %v1743_v23 = vadd.f32 %v1739_v32, %v1734_v5 }
 0x2b7   : >> { %v1744_v0 = vadd.f32 %v1740_v13, %v1735_v36  ;;  %v1747_v30 = vmul.f32 %v1746_v38, %v2948_v8  ;;  %v1748_v31 = vmul.f32 %v1746_v38, %v2950_v9  ;;  %v1749_v14 = vmul.f32 %v1746_v38, %v2952_v10 }
 0x2b8   : >> { %v3852_v62 = vadd.f32 %v1645_v6, %v3716_v16  ;;  %v1686_v29 = vmul.f32 %v1682_v60, %v1681_v21  ;;  %v1720_v57 = vmax.f32 %v1716_v37, 0.0  ;;  %v1721_v2 = vmax.f32 %v1717_v15, 0.0 }
 0x2b9   : >> { %v1722_v35 = vmax.f32 %v1718_v58, 0.0  ;;  %v1724_v25 = vmul.f32 %v1723_v43, %v1719_v41  ;;  %v1745_v59 = vadd.f32 %v1741_v17, %v1736_v19  ;;  %v1750_v24 = vmul.f32 %v1746_v38, %v2954_v11 }
 0x2ba   : >> { %v3856_v1 = vadd.f32 %v1683_v61, %v3720_v40  ;;  %v3859_v42 = vadd.f32 %v1684_v46, %v3732_v56  ;;  %v3862_v4 = vadd.f32 %v1685_v22, %v3736_v27  ;;  %v1751_v16 = vadd.f32 %v1747_v30, %v1742_v34 }
 0x2bb   : >> { %v1752_v6 = vadd.f32 %v1748_v31, %v1743_v23  ;;  %v1753_v60 = vadd.f32 %v1749_v14, %v1744_v0  ;;  %v1773_v21 = vstv %s4267_s26  ;;  %v1778_v5 = vstv %s4268_s0  ;;  %s4273_s26 = sld [smem:[#allocation93_spill]] }
 0x2bc   : >> { %v3867_v36 = vadd.f32 %v1686_v29, %v3739_v26  ;;  %v1725_v7 = vmul.f32 %v1723_v43, %v1720_v57  ;;  %v1755_v32 = vstv %s4269_s21  ;;  %v1764_v13 = vstv %s4270_s3  ;;  %s4274_s0 = sld [smem:[#allocation94_spill]] }
 0x2bd   : >> { %v1726_v40 = vmul.f32 %v1723_v43, %v1721_v2  ;;  %v1727_v61 = vmul.f32 %v1723_v43, %v1722_v35  ;;  %v3872_v56 = vadd.f32 %v1724_v25, %v3760_v45  ;;  %v1754_v46 = vadd.f32 %v1750_v24, %v1745_v59  ;;  %s4275_s21 = sld [smem:[#allocation95_spill]] }
 0x2be   : >> { %v1774_v27 = vmul.f32 %v1773_v21, %v2924_v48  ;;  %v1775_v37 = vmul.f32 %v1773_v21, %v2926_v49  ;;  %v1779_v15 = vmul.f32 %v1778_v5, %v2932_v52  ;;  %v1780_v38 = vmul.f32 %v1778_v5, %v2934_v53  ;;  %s4276_s3 = sld [smem:[#allocation149_spill]] }
 0x2bf   : >> { %v1756_v26 = vadd.f32 %v1755_v32, %v1751_v16  ;;  %v1757_v58 = vadd.f32 %v1755_v32, %v1752_v6  ;;  %v1758_v41 = vadd.f32 %v1755_v32, %v1753_v60  ;;  %v1787_v19 = vstv %s4271_s5  ;;  %s4277_s5 = sld [smem:[#allocation126_spill]] }
 0x2c0   : >> { %v1776_v17 = vmul.f32 %v1773_v21, %v2928_v50  ;;  %v1777_v45 = vmul.f32 %v1773_v21, %v2930_v51  ;;  %v1781_v22 = vmul.f32 %v1778_v5, %v2936_v54  ;;  %v1782_v43 = vmul.f32 %v1778_v5, %v2938_v55 }
 0x2c1   : >> { %v3884_v34 = vadd.f32 %v1725_v7, %v3763_v3  ;;  %v3887_v23 = vadd.f32 %v1726_v40, %v3767_v12  ;;  %v3890_v0 = vadd.f32 %v1727_v61, %v3774_v33  ;;  %v1796_v30 = vstv %s4272_s23  ;;  %s4278_s23 = sld [smem:[#allocation96_spill]] }
 0x2c2   : >> { %v1783_v31 = vadd.f32 %v1779_v15, %v1774_v27  ;;  %v1784_v14 = vadd.f32 %v1780_v38, %v1775_v37  ;;  %v1788_v29 = vmul.f32 %v1787_v19, %v2948_v8  ;;  %v1789_v57 = vmul.f32 %v1787_v19, %v2950_v9 }
 0x2c3   : >> { %v1759_v2 = vadd.f32 %v1755_v32, %v1754_v46  ;;  %v1760_v35 = vmax.f32 %v1756_v26, 0.0  ;;  %v1761_v25 = vmax.f32 %v1757_v58, 0.0  ;;  %v1814_v59 = vstv %s4273_s26  ;;  %s4279_s26 = sld [smem:[#allocation97_spill]] }
 0x2c4   : >> { %v1762_v24 = vmax.f32 %v1758_v41, 0.0  ;;  %v1785_v3 = vadd.f32 %v1781_v22, %v1776_v17  ;;  %v1786_v16 = vadd.f32 %v1782_v43, %v1777_v45  ;;  %v1819_v6 = vstv %s4274_s0  ;;  %s4280_s0 = sld [smem:[#allocation150_spill]] }
 0x2c5   : >> { %v1815_v12 = vmul.f32 %v1814_v59, %v2924_v48  ;;  %v1816_v33 = vmul.f32 %v1814_v59, %v2926_v49  ;;  %v1817_v60 = vmul.f32 %v1814_v59, %v2928_v50  ;;  %v1818_v21 = vmul.f32 %v1814_v59, %v2930_v51 }
 0x2c6   : >> { %v1790_v5 = vmul.f32 %v1787_v19, %v2952_v10  ;;  %v1791_v7 = vmul.f32 %v1787_v19, %v2954_v11  ;;  %v1792_v32 = vadd.f32 %v1788_v29, %v1783_v31  ;;  %v1793_v40 = vadd.f32 %v1789_v57, %v1784_v14 }
 0x2c7   : >> { %v1820_v61 = vmul.f32 %v1819_v6, %v2932_v52  ;;  %v1821_v46 = vmul.f32 %v1819_v6, %v2934_v53  ;;  %v1822_v27 = vmul.f32 %v1819_v6, %v2936_v54  ;;  %v1823_v37 = vmul.f32 %v1819_v6, %v2938_v55 }
 0x2c8   : >> { %v1763_v15 = vmax.f32 %v1759_v2, 0.0  ;;  %v1765_v38 = vmul.f32 %v1764_v13, %v1760_v35  ;;  %v1766_v26 = vmul.f32 %v1764_v13, %v1761_v25  ;;  %v1828_v58 = vstv %s4275_s21  ;;  %s4281_s21 = sld [smem:[#allocation98_spill]] }
 0x2c9   : >> { %v1824_v41 = vadd.f32 %v1820_v61, %v1815_v12  ;;  %v1825_v17 = vadd.f32 %v1821_v46, %v1816_v33  ;;  %v1826_v45 = vadd.f32 %v1822_v27, %v1817_v60  ;;  %v1827_v22 = vadd.f32 %v1823_v37, %v1818_v21 }
 0x2ca   : >> { %v1794_v43 = vadd.f32 %v1790_v5, %v1785_v3  ;;  %v1795_v19 = vadd.f32 %v1791_v7, %v1786_v16  ;;  %v1797_v31 = vadd.f32 %v1796_v30, %v1792_v32  ;;  %v1798_v14 = vadd.f32 %v1796_v30, %v1793_v40 }
 0x2cb   : >> { %v1829_v29 = vmul.f32 %v1828_v58, %v2948_v8  ;;  %v1830_v57 = vmul.f32 %v1828_v58, %v2950_v9  ;;  %v1831_v2 = vmul.f32 %v1828_v58, %v2952_v10  ;;  %v1832_v35 = vmul.f32 %v1828_v58, %v2954_v11 }
 0x2cc   : >> { %v1767_v25 = vmul.f32 %v1764_v13, %v1762_v24  ;;  %v1768_v59 = vmul.f32 %v1764_v13, %v1763_v15  ;;  %v3913_v6 = vadd.f32 %v1765_v38, %v3798_v63  ;;  %v3916_v3 = vadd.f32 %v1766_v26, %v3812_v39 }
 0x2cd   : >> { %v1833_v16 = vadd.f32 %v1829_v29, %v1824_v41  ;;  %v1834_v12 = vadd.f32 %v1830_v57, %v1825_v17  ;;  %v1835_v33 = vadd.f32 %v1831_v2, %v1826_v45  ;;  %v1836_v60 = vadd.f32 %v1832_v35, %v1827_v22 }
 0x2ce   : >> { %v1799_v21 = vadd.f32 %v1796_v30, %v1794_v43  ;;  %v1805_v5 = vstv %s4276_s3  ;;  %v1837_v7 = vstv %s4277_s5  ;;  %v1855_v32 = vstv %s4278_s23  ;;  %s4282_s3 = sld [smem:[#allocation127_spill]] }
 0x2cf   : >> { %v1800_v40 = vadd.f32 %v1796_v30, %v1795_v19  ;;  %v1801_v61 = vmax.f32 %v1797_v31, 0.0  ;;  %v1802_v46 = vmax.f32 %v1798_v14, 0.0  ;;  %v1860_v27 = vstv %s4279_s26  ;;  %s4283_s5 = sld [smem:[#allocation151_spill]] }
 0x2d0   : >> { %v1838_v24 = vadd.f32 %v1837_v7, %v1833_v16  ;;  %v1839_v13 = vadd.f32 %v1837_v7, %v1834_v12  ;;  %v1840_v37 = vadd.f32 %v1837_v7, %v1835_v33  ;;  %v1841_v63 = vadd.f32 %v1837_v7, %v1836_v60  ;;  %s4284_s23 = sld [smem:[#allocation152_spill]] }
 0x2d1   : >> { %v1856_v39 = vmul.f32 %v1855_v32, %v2924_v48  ;;  %v1857_v15 = vmul.f32 %v1855_v32, %v2926_v49  ;;  %v1858_v38 = vmul.f32 %v1855_v32, %v2928_v50  ;;  %v1859_v26 = vmul.f32 %v1855_v32, %v2930_v51  ;;  %s4285_s26 = sld [smem:[#allocation14_spill]] }
 0x2d2   : >> { %v1861_v58 = vmul.f32 %v1860_v27, %v2932_v52  ;;  %v1862_v30 = vmul.f32 %v1860_v27, %v2934_v53  ;;  %v1863_v41 = vmul.f32 %v1860_v27, %v2936_v54  ;;  %v1864_v17 = vmul.f32 %v1860_v27, %v2938_v55 }
 0x2d3   : >> { %v1771_v45 = vadd.f32 %v1767_v25, %v3815_v44  ;;  %v1772_v22 = vadd.f32 %v1768_v59, %v3818_v18  ;;  %v1803_v48 = vmax.f32 %v1799_v21, 0.0  ;;  %v1804_v43 = vmax.f32 %v1800_v40, 0.0 }
 0x2d4   : >> { %v1806_v49 = vmul.f32 %v1805_v5, %v1801_v61  ;;  %v1807_v19 = vmul.f32 %v1805_v5, %v1802_v46  ;;  %v1842_v50 = vmax.f32 %v1838_v24, 0.0  ;;  %v1846_v31 = vstv %s4280_s0  ;;  %s4286_s0 = sshll.u32 %s2378_s7, 5  ;;  %s549_s7 = sadd.s32 1, %s2378_s7  }
 0x2d5   : >> { %v1865_v51 = vadd.f32 %v1861_v58, %v1856_v39  ;;  %v1866_v52 = vadd.f32 %v1862_v30, %v1857_v15  ;;  %v1867_v14 = vadd.f32 %v1863_v41, %v1858_v38  ;;  %v1868_v53 = vadd.f32 %v1864_v17, %v1859_v26  ;;  %p546_p0 = scmp.ge.s32.totalorder %s549_s7, 7  }
 0x2d6   : >> { %v1843_v29 = vmax.f32 %v1839_v13, 0.0  ;;  %v1844_v54 = vmax.f32 %v1840_v37, 0.0  ;;  %v1845_v57 = vmax.f32 %v1841_v63, 0.0  ;;  %v1869_v55 = vstv %s4281_s21  ;;  %s1933_s21 = sshra.s32 %s4286_s0, 3 }
 0x2d7   : >> { %v1870_v2 = vmul.f32 %v1869_v55, %v2948_v8  ;;  %v1871_v44 = vmul.f32 %v1869_v55, %v2950_v9  ;;  %v1872_v18 = vmul.f32 %v1869_v55, %v2952_v10  ;;  %v1873_v35 = vmul.f32 %v1869_v55, %v2954_v11 }
 0x2d8   : >> { %v1808_v25 = vmul.f32 %v1805_v5, %v1803_v48  ;;  %v1809_v59 = vmul.f32 %v1805_v5, %v1804_v43  ;;  %v1810_v16 = vadd.f32 %v1806_v49, %v3821_v20  ;;  %v1878_v12 = vstv %s4282_s3  ;;  %s2224_s3 = sshll.u32 %s1933_s21, 1 }
 0x2d9   : >> { %v1874_v33 = vadd.f32 %v1870_v2, %v1865_v51  ;;  %v1875_v60 = vadd.f32 %v1871_v44, %v1866_v52  ;;  %v1876_v21 = vadd.f32 %v1872_v18, %v1867_v14  ;;  %v1877_v7 = vadd.f32 %v1873_v35, %v1868_v53 }
 0x2da   : >> { %v1847_v32 = vmul.f32 %v1846_v31, %v1842_v50  ;;  %v1848_v40 = vmul.f32 %v1846_v31, %v1843_v29  ;;  %v1849_v61 = vmul.f32 %v1846_v31, %v1844_v54  ;;  %v1850_v8 = vmul.f32 %v1846_v31, %v1845_v57 }
 0x2db   : >> { %v1879_v46 = vadd.f32 %v1878_v12, %v1874_v33  ;;  %v1880_v9 = vadd.f32 %v1878_v12, %v1875_v60  ;;  %v1881_v27 = vadd.f32 %v1878_v12, %v1876_v21  ;;  %v1882_v10 = vadd.f32 %v1878_v12, %v1877_v7 }
 0x2dc   : >> { %v1811_v11 = vadd.f32 %v1807_v19, %v3824_v28  ;;  %v1812_v5 = vadd.f32 %v1808_v25, %v3832_v47  ;;  %v1813_v20 = vadd.f32 %v1809_v59, %v3852_v62  ;;  %v1887_v24 = vstv %s4283_s5  ;;  %s1936_s5 = scalar_lea.vmem %s4285_s26, %s2224_s3 }
 0x2dd   : >> { %v1883_v13 = vmax.f32 %v1879_v46, 0.0  ;;  %v1884_v37 = vmax.f32 %v1880_v9, 0.0  ;;  %v1885_v63 = vmax.f32 %v1881_v27, 0.0  ;;  %v1886_v39 = vmax.f32 %v1882_v10, 0.0 }
 0x2de   : >> { %v1851_v15 = vadd.f32 %v1847_v32, %v3856_v1  ;;  %v1852_v38 = vadd.f32 %v1848_v40, %v3859_v42  ;;  %v1853_v26 = vadd.f32 %v1849_v61, %v3862_v4  ;;  %v1854_v58 = vadd.f32 %v1850_v8, %v3867_v36 }
 0x2df   : >> { %v1888_v30 = vmul.f32 %v1887_v24, %v1883_v13  ;;  %v1889_v28 = vmul.f32 %v1887_v24, %v1884_v37  ;;  %v1890_v41 = vmul.f32 %v1887_v24, %v1885_v63  ;;  %v1891_v47 = vmul.f32 %v1887_v24, %v1886_v39 }
 0x2e0   : >> { %v1896_v62 = vadd.f32 %v1810_v16, %v3913_v6  ;;  %v1897_v17 = vadd.f32 %v1811_v11, %v3916_v3  ;;  %v1898_v48 = vadd.f32 %v1812_v5, %v1771_v45  ;;  %v1899_v43 = vadd.f32 %v1813_v20, %v1772_v22 }
 0x2e1   : >> { %v1892_v49 = vadd.f32 %v1888_v30, %v3872_v56  ;;  %v1893_v1 = vadd.f32 %v1889_v28, %v3884_v34  ;;  %v1894_v42 = vadd.f32 %v1890_v41, %v3887_v23  ;;  %v1895_v4 = vadd.f32 %v1891_v47, %v3890_v0 }
 0x2e2   : >> { %v1908_v51 = vstv %s4284_s23  ;;  %v2383_v34 = vmov 0  }
 0x2e3   : >> { %v1900_v36 = vadd.f32 %v1892_v49, %v1851_v15  ;;  %v1901_v19 = vadd.f32 %v1893_v1, %v1852_v38  ;;  %v1902_v50 = vadd.f32 %v1894_v42, %v1853_v26  ;;  %v1903_v31 = vadd.f32 %v1895_v4, %v1854_v58 }
 0x2e5   : >> { %v1904_v52 = vadd.f32 %v1900_v36, %v1896_v62  ;;  %v1905_v6 = vadd.f32 %v1901_v19, %v1897_v17  ;;  %v1906_v14 = vadd.f32 %v1902_v50, %v1898_v48  ;;  %v1907_v3 = vadd.f32 %v1903_v31, %v1899_v43 }
 0x2e7   : >> { %v1909_v45 = vadd.f32 %v1908_v51, %v1904_v52  ;;  %v1910_v22 = vadd.f32 %v1908_v51, %v1905_v6  ;;  %v1911_v53 = vadd.f32 %v1908_v51, %v1906_v14  ;;  %v1912_v56 = vadd.f32 %v1908_v51, %v1907_v3 }
 0x2e9   : >> { %vm1913_vm0 = vcmp.gt.f32.partialorder %v1909_v45, 0.0  ;;  %vm1914_vm1 = vcmp.gt.f32.partialorder %v1910_v22, 0.0  ;;  %vm1915_vm2 = vcmp.gt.f32.partialorder %v1911_v53, 0.0  ;;  %vm1916_vm3 = vcmp.gt.f32.partialorder %v1912_v56, 0.0 }
 0x2ea   : >> { %vm1917_vm4 = vmpackc.low %vm1914_vm1, %vm1913_vm0 }
 0x2eb   : >> { %vm1918_vm5 = vmpackc.low %vm1916_vm3, %vm1915_vm2 }
 0x2ec   : >> { %vm1919_vm6 = vmpackc.even %vm1918_vm5, %vm1917_vm4 }
 0x2ed   : >> { %v1920_v23 = vsel %vm1919_vm6, 16843009, %v2383_v34 }
 0x2ee   : >> { %v1921_v0 = vunpack.c.0.s8 %v1920_v23  ;;  %v1922_v29 = vunpack.c.1.s8 %v1920_v23  ;;  %v1923_v54 = vunpack.c.2.s8 %v1920_v23  ;;  %v1924_v57 = vunpack.c.3.s8 %v1920_v23 }
 0x2f0   : >> { %v1925_v55 = vpack.c.b16 %v1921_v0, %v1921_v0  ;;  %v1927_v2 = vpack.c.b16 %v1922_v29, %v1922_v29  ;;  %v1929_v44 = vpack.c.b16 %v1923_v54, %v1923_v54  ;;  %v1931_v18 = vpack.c.b16 %v1924_v57, %v1924_v57 }
 0x2f1   : > { %548 = sbr.rel (!%p546_p0) target bundleno = 401 (0x191), region = 137 }
 0x2f2   : >> { %v1926_v35 = vpack.c.b8 %v1925_v55, %v1925_v55  ;;  %v1928_v25 = vpack.c.b8 %v1927_v2, %v1927_v2  ;;  %v1930_v59 = vpack.c.b8 %v1929_v44, %v1929_v44  ;;  %v1932_v16 = vpack.c.b8 %v1931_v18, %v1931_v18 }
 0x2f4   : >> { %1937 = vst [vmem:[%s1936_s5] sm:$0x3] %v1926_v35  ;;  %1938 = vst [vmem:[%s1936_s5 + $0x2] sm:$0x3] %v1928_v25 }
 0x2f5   : >> { %1939 = vst [vmem:[%s1936_s5 + $0x4] sm:$0x3] %v1930_v59  ;;  %1940 = vst [vmem:[%s1936_s5 + $0x6] sm:$0x3] %v1932_v16 }
 0x2f6 PF: > { %s4287_s22 = sld [smem:[#allocation12_spill]] }
 0x2f7   : > { %s4288_s20 = sld [smem:[#allocation11_spill]] }
 0x2f8   : > { %s4289_s21 = sld [smem:[#allocation13_spill]] }
 0x2fc   : > { %p15_p1 = scmp.ge.s32.totalorder %s4287_s22, 4  }
 0x2fe   :  { %17 = sbr.rel (!%p15_p1) target bundleno = 10 (0xa), region = 148 }
 0x303   :  { %1962 = vsyncpa [#allocation5], 1 }
 0x304   :  { %1964 = vsyncpa [#allocation5 + $0x1], 1 }
 0x305   :  { %1965 = vsyncpa [#allocation7], 1 }

</bundles_post_ra>
